<compile_context>
chip_gen: v7x
topology: tpu7x:2x2x1
jax: 0.10.0
libtpu: 0.0.40
codegen_flags: <defaults>
</compile_context>

<pallas_src>
import functools

import jax
import jax.numpy as jnp
from jax import lax
from jax.experimental import pallas as pl
from jax.experimental.pallas import tpu as pltpu


HIDDEN_SIZE = 10


# ----------------------------------------------------------------------------
# Fully fused kernel.
#   x_ref     : (Tc, D, Nb)   raw input chunk (batch on lanes)
#   eps_ref   : (Tc, E, Nb)   reparameterization noise chunk
#   wih_ref   : (H, D)        input weight            (loop invariant)
#   whh_ref   : (H, H)        recurrent weight        (loop invariant)
#   bias_ref  : (H, 1)        b_ih + b_hh             (loop invariant)
#   whead_ref : (2E, H)       concat(W_mean, W_var)   (loop invariant)
#   bhead_ref : (2E, 1)       concat(b_mean, b_var)   (loop invariant)
#   out_ref   : (Tc, 3E, Nb)  packed [mean | var | z] per timestep
#   h_carry   : (H, Nb)       VMEM scratch carrying h across time chunks
# Grid: (batch blocks [parallel], time chunks [arbitrary]).
# ----------------------------------------------------------------------------
def _fused_rnn_kernel(x_ref, eps_ref, wih_ref, whh_ref, bias_ref,
                      whead_ref, bhead_ref, out_ref, h_carry):
    c = pl.program_id(1)            # time-chunk index (innermost, sequential)

    @pl.when(c == 0)
    def _():
        h_carry[...] = jnp.zeros(h_carry.shape, h_carry.dtype)

    tc = x_ref.shape[0]
    d_in = x_ref.shape[1]
    n = x_ref.shape[2]
    h_dim = whh_ref.shape[0]
    e2 = whead_ref.shape[0]
    e = e2 // 2

    # ---- hoisted loop-invariant loads + lane broadcasts ---------------------
    # (JAX does not CSE broadcast_in_dim: do these once per chunk, NOT inside
    #  the unrolled time loop.)
    wih = wih_ref[...]
    whh = whh_ref[...]
    whead = whead_ref[...]
    bias_b = jnp.broadcast_to(bias_ref[...], (h_dim, n))     # (H, Nb)
    bhead_b = jnp.broadcast_to(bhead_ref[...], (e2, n))      # (2E, Nb)
    wih_cols = [jnp.broadcast_to(wih[:, d:d + 1], (h_dim, n))
                for d in range(d_in)]
    whh_cols = [jnp.broadcast_to(whh[:, j:j + 1], (h_dim, n))
                for j in range(h_dim)]
    whead_cols = [jnp.broadcast_to(whead[:, j:j + 1], (e2, n))
                  for j in range(h_dim)]

    n_acc = min(4, h_dim)   # independent partial sums -> shorter dep chain

    def step(t, h_prev):
        # ---- input projection: xw_t = W_ih @ x_t + (b_ih + b_hh) -----------
        # Independent of h_prev -> off the serial h->h chain, scheduler
        # overlaps it with the previous step's tail.
        xt = x_ref[t]                                   # (D, Nb)
        xw = bias_b
        for d in range(d_in):
            xw = xw + wih_cols[d] * xt[d:d + 1, :]

        # ---- recurrence: h_t = tanh(xw_t + W_hh @ h_{t-1}) ------------------
        # W_hh @ h as h_dim VPU broadcast-FMAs (no MXU push->pop latency on the
        # critical path), accumulated in n_acc independent partial sums.
        accs = [whh_cols[j] * h_prev[j:j + 1, :] for j in range(n_acc)]
        for j in range(n_acc, h_dim):
            accs[j % n_acc] = accs[j % n_acc] + whh_cols[j] * h_prev[j:j + 1, :]
        pre = xw
        for a in accs:
            pre = pre + a
        h = jnp.tanh(pre)                               # EUP slot, off the VALU

        # ---- fused mean/var heads + reparameterization on live h vregs ------
        head = bhead_b                                  # (2E, Nb)
        for j in range(h_dim):
            head = head + whead_cols[j] * h[j:j + 1, :]
        mean = head[0:e, :]
        var = head[e:e2, :]
        z = mean + var * eps_ref[t]

        # packed lane-dense output rows: [mean | var | z]
        out_ref[t, 0:e, :] = mean
        out_ref[t, e:2 * e, :] = var
        out_ref[t, 2 * e:3 * e, :] = z
        return h

    # Unrolled time loop over the Tc steps of this chunk; h stays in vregs.
    h_carry[...] = lax.fori_loop(0, tc, step, h_carry[...], unroll=True)


def rnn_emb_kin_forward(data, params, eps4, *, emb_dim=1,
                        time_chunk=16, batch_block=1024):
    """Pallas forward for RnnEmbKin.

    data: (d0, d1, in_dim, L) float32
    eps4: (d0, d1, emb_dim, L) float32 uniform noise (the torch.rand epsilon)
    returns (mean, var, z), each (d0, d1, emb_dim, L)
    """
    d0, d1, D, L = data.shape
    N = d0 * d1
    H = HIDDEN_SIZE
    E = emb_dim

    W_ih, W_hh, b_ih, b_hh, W_m, b_m, W_v, b_v = params

    # ---- batch (lane) padding & blocking ------------------------------------
    # N sits on the 128-lane axis of every block: pad to a multiple of 128,
    # and tile it so the leading "parallel" grid axis can spread across
    # TensorCores (v7x megacore) while each block keeps its own h scratch.
    N_pad = pl.cdiv(N, 128) * 128
    n_block = min(batch_block, N_pad)
    NB = pl.cdiv(N_pad, n_block)
    N_pad = NB * n_block

    # ---- time chunking -------------------------------------------------------
    if L <= time_chunk:
        Tc, C, L_pad = L, 1, L
    else:
        Tc = time_chunk
        C = pl.cdiv(L, Tc)
        L_pad = C * Tc

    # ---- layout: (d0,d1,*,L) -> (L, *, N): batch on lanes, time streamed -----
    x = jnp.transpose(data.reshape(N, D, L), (2, 1, 0))          # (L, D, N)
    eps = jnp.transpose(eps4.reshape(N, E, L), (2, 1, 0))        # (L, E, N)
    x = jnp.pad(x, ((0, L_pad - L), (0, 0), (0, N_pad - N)))
    eps = jnp.pad(eps, ((0, L_pad - L), (0, 0), (0, N_pad - N)))

    bias = (b_ih + b_hh)[:, None]                                # (H, 1)
    whead = jnp.concatenate([W_m, W_v], axis=0)                  # (2E, H)
    bhead = jnp.concatenate([b_m, b_v])[:, None]                 # (2E, 1)

    # ---- explicit VMEM budget (double-buffered streamed blocks + invariants) --
    blk = 4 * Tc * n_block * (D + E + 3 * E)
    inv = 4 * (H * D + H * H + H + 2 * E * H + 2 * E + H * n_block)
    vmem_bytes = int(min(100 * 1024 * 1024,
                         max(4 * 1024 * 1024, 3 * blk + 4 * inv)))

    grid_spec = pltpu.PrefetchScalarGridSpec(
        num_scalar_prefetch=0,
        grid=(NB, C),
        in_specs=[
            pl.BlockSpec((Tc, D, n_block), lambda nb, c: (c, 0, nb)),
            pl.BlockSpec((Tc, E, n_block), lambda nb, c: (c, 0, nb)),
            pl.BlockSpec((H, D), lambda nb, c: (0, 0)),
            pl.BlockSpec((H, H), lambda nb, c: (0, 0)),
            pl.BlockSpec((H, 1), lambda nb, c: (0, 0)),
            pl.BlockSpec((2 * E, H), lambda nb, c: (0, 0)),
            pl.BlockSpec((2 * E, 1), lambda nb, c: (0, 0)),
        ],
        out_specs=pl.BlockSpec((Tc, 3 * E, n_block), lambda nb, c: (c, 0, nb)),
        scratch_shapes=[pltpu.VMEM((H, n_block), jnp.float32)],  # carried h
    )

    out = pl.pallas_call(
        _fused_rnn_kernel,
        out_shape=jax.ShapeDtypeStruct((L_pad, 3 * E, N_pad), jnp.float32),
        grid_spec=grid_spec,
        compiler_params=pltpu.CompilerParams(
            # batch blocks independent (megacore), time chunks sequential
            dimension_semantics=("parallel", "arbitrary"),
            vmem_limit_bytes=vmem_bytes),
    )(x, eps, W_ih, W_hh, bias, whead, bhead)

    out = out[:L, :, :N]                                         # (L, 3E, N)

    def unlayout(a):   # (L, E, N) -> (d0, d1, E, L)   (tiny: only 3E rows now)
        return jnp.transpose(a, (2, 1, 0)).reshape(d0, d1, E, L)

    mean = unlayout(out[:, 0:E, :])
    var = unlayout(out[:, E:2 * E, :])
    z = unlayout(out[:, 2 * E:3 * E, :])
    return mean, var, z


# ----------------------------------------------------------------------------
# Pure-JAX reference matching the PyTorch module semantics.
# ----------------------------------------------------------------------------
def _ref_forward(data, params, eps4, *, emb_dim=1):
    d0, d1, D, L = data.shape
    N = d0 * d1
    H = HIDDEN_SIZE
    W_ih, W_hh, b_ih, b_hh, W_m, b_m, W_v, b_v = params

    x = jnp.transpose(data.reshape(N, D, L), (0, 2, 1))  # (N, L, D) batch_first
    h = jnp.zeros((N, H), jnp.float32)
    hs = []
    for t in range(L):
        h = jnp.tanh(x[:, t] @ W_ih.T + b_ih + h @ W_hh.T + b_hh)
        hs.append(h)
    rnn_out = jnp.stack(hs, axis=1)                      # (N, L, H)
    rnn_states = rnn_out.reshape(d0, d1, L, H)
    mean = jnp.transpose(rnn_states @ W_m.T + b_m, (0, 1, 3, 2))  # (d0,d1,E,L)
    var = jnp.transpose(rnn_states @ W_v.T + b_v, (0, 1, 3, 2))
    z = mean + var * eps4
    return mean, var, z


def _init_params(key, in_dim, emb_dim):
    H = HIDDEN_SIZE
    k = 1.0 / jnp.sqrt(jnp.float32(H))
    ks = jax.random.split(key, 8)
    u = lambda kk, shape: jax.random.uniform(kk, shape, jnp.float32, -k, k)
    W_ih = u(ks[0], (H, in_dim))
    W_hh = u(ks[1], (H, H))
    b_ih = u(ks[2], (H,))
    b_hh = u(ks[3], (H,))
    W_m = u(ks[4], (emb_dim, H))
    b_m = u(ks[5], (emb_dim,))
    W_v = u(ks[6], (emb_dim, H))
    b_v = u(ks[7], (emb_dim,))
    return (W_ih, W_hh, b_ih, b_hh, W_m, b_m, W_v, b_v)


if __name__ == "__main__":
    d0, d1, in_dim, L = 2, 3, 4, 8
    emb_dim = 1

    root = jax.random.PRNGKey(0)
    k_data, k_eps, k_par = jax.random.split(root, 3)

    data = jax.random.normal(k_data, (d0, d1, in_dim, L), jnp.float32)
    # Deterministic stand-in for the torch.rand(...) epsilon of the reparam trick.
    eps4 = jax.random.uniform(k_eps, (d0, d1, emb_dim, L), jnp.float32)
    params = _init_params(k_par, in_dim, emb_dim)

    fwd = jax.jit(functools.partial(rnn_emb_kin_forward, emb_dim=emb_dim))
    mean, var, z = fwd(data, params, eps4)
    jax.block_until_ready((mean, var, z))

    mean_r, var_r, z_r = _ref_forward(data, params, eps4, emb_dim=emb_dim)
    assert mean.shape == (d0, d1, emb_dim, L)
    assert var.shape == (d0, d1, emb_dim, L)
    assert z.shape == (d0, d1, emb_dim, L)
    assert jnp.allclose(mean, mean_r, atol=2e-5), "mean mismatch"
    assert jnp.allclose(var, var_r, atol=2e-5), "var mismatch"
    assert jnp.allclose(z, z_r, atol=2e-5), "reparam mismatch"

    print("KERNEL_OK")
</pallas_src>

<mosaic_0001>
module attributes {stable_mosaic.version = 11 : i64} {
  func.func @_fused_rnn_kernel(%arg0: i32, %arg1: i32, %arg2: memref<8x4x128xf32, #tpu.memory_space<vmem>>, %arg3: memref<8x1x128xf32, #tpu.memory_space<vmem>>, %arg4: memref<10x4xf32, #tpu.memory_space<vmem>>, %arg5: memref<10x10xf32, #tpu.memory_space<vmem>>, %arg6: memref<10x1xf32, #tpu.memory_space<vmem>>, %arg7: memref<2x10xf32, #tpu.memory_space<vmem>>, %arg8: memref<2x1xf32, #tpu.memory_space<vmem>>, %arg9: memref<8x3x128xf32, #tpu.memory_space<vmem>>, %arg10: memref<10x128xf32, #tpu.memory_space<vmem>>) attributes {dimension_semantics = [#tpu.dimension_semantics<parallel>, #tpu.dimension_semantics<arbitrary>], iteration_bounds = array<i64: 1, 1>, scalar_prefetch = 0 : i64, scratch_operands = 1 : i64, tpu.core_type = #tpu.core_type<tc>, window_params = [{transform_indices = @transform_0, window_bounds = array<i64: 8, 4, 128>}, {transform_indices = @transform_1, window_bounds = array<i64: 8, 1, 128>}, {pipeline_mode = #tpu.pipeline_mode<synchronous>, transform_indices = @transform_2, window_bounds = array<i64: 10, 4>}, {pipeline_mode = #tpu.pipeline_mode<synchronous>, transform_indices = @transform_3, window_bounds = array<i64: 10, 10>}, {pipeline_mode = #tpu.pipeline_mode<synchronous>, transform_indices = @transform_4, window_bounds = array<i64: 10, 1>}, {pipeline_mode = #tpu.pipeline_mode<synchronous>, transform_indices = @transform_5, window_bounds = array<i64: 2, 10>}, {pipeline_mode = #tpu.pipeline_mode<synchronous>, transform_indices = @transform_6, window_bounds = array<i64: 2, 1>}, {transform_indices = @transform_7, window_bounds = array<i64: 8, 3, 128>}]} {
    %c0_i32 = arith.constant 0 : i32
    %0 = arith.cmpi eq, %arg1, %c0_i32 : i32
    %1 = arith.extui %0 : i1 to i32
    %c0_i32_0 = arith.constant 0 : i32
    %2 = arith.cmpi ne, %1, %c0_i32_0 : i32
    scf.if %2 {
      %cst = arith.constant 0.000000e+00 : f32
      %1038 = vector.broadcast %cst : f32 to vector<10x128xf32>
      %c0_93 = arith.constant 0 : index
      %c0_94 = arith.constant 0 : index
      %1039 = vector.load %arg10[%c0_93, %c0_94] : memref<10x128xf32, #tpu.memory_space<vmem>>, vector<10x128xf32>
      tpu.vector_store %arg10[%c0_93, %c0_94], %1038 {strides = array<i32>} : memref<10x128xf32, #tpu.memory_space<vmem>>, vector<10x128xf32>,
    } else {
    }
    %c0 = arith.constant 0 : index
    %c0_1 = arith.constant 0 : index
    %3 = vector.load %arg4[%c0, %c0_1] : memref<10x4xf32, #tpu.memory_space<vmem>>, vector<10x4xf32>
    %c0_2 = arith.constant 0 : index
    %c0_3 = arith.constant 0 : index
    %4 = vector.load %arg5[%c0_2, %c0_3] : memref<10x10xf32, #tpu.memory_space<vmem>>, vector<10x10xf32>
    %c0_4 = arith.constant 0 : index
    %c0_5 = arith.constant 0 : index
    %5 = vector.load %arg7[%c0_4, %c0_5] : memref<2x10xf32, #tpu.memory_space<vmem>>, vector<2x10xf32>
    %c0_6 = arith.constant 0 : index
    %c0_7 = arith.constant 0 : index
    %6 = vector.load %arg6[%c0_6, %c0_7] : memref<10x1xf32, #tpu.memory_space<vmem>>, vector<10x1xf32>
    %7 = vector.shape_cast %6 : vector<10x1xf32> to vector<10x1xf32>
    %8 = vector.broadcast %7 : vector<10x1xf32> to vector<10x128xf32>
    %c0_8 = arith.constant 0 : index
    %c0_9 = arith.constant 0 : index
    %9 = vector.load %arg8[%c0_8, %c0_9] : memref<2x1xf32, #tpu.memory_space<vmem>>, vector<2x1xf32>
    %10 = vector.shape_cast %9 : vector<2x1xf32> to vector<2x1xf32>
    %11 = vector.broadcast %10 : vector<2x1xf32> to vector<2x128xf32>
    %12 = vector.extract_strided_slice %3 {offsets = [0, 0], sizes = [10, 1], strides = [1, 1]} : vector<10x4xf32> to vector<10x1xf32>
    %13 = vector.shape_cast %12 : vector<10x1xf32> to vector<10x1xf32>
    %14 = vector.broadcast %13 : vector<10x1xf32> to vector<10x128xf32>
    %15 = vector.extract_strided_slice %3 {offsets = [0, 1], sizes = [10, 1], strides = [1, 1]} : vector<10x4xf32> to vector<10x1xf32>
    %16 = vector.shape_cast %15 : vector<10x1xf32> to vector<10x1xf32>
    %17 = vector.broadcast %16 : vector<10x1xf32> to vector<10x128xf32>
    %18 = vector.extract_strided_slice %3 {offsets = [0, 2], sizes = [10, 1], strides = [1, 1]} : vector<10x4xf32> to vector<10x1xf32>
    %19 = vector.shape_cast %18 : vector<10x1xf32> to vector<10x1xf32>
    %20 = vector.broadcast %19 : vector<10x1xf32> to vector<10x128xf32>
    %21 = vector.extract_strided_slice %3 {offsets = [0, 3], sizes = [10, 1], strides = [1, 1]} : vector<10x4xf32> to vector<10x1xf32>
    %22 = vector.shape_cast %21 : vector<10x1xf32> to vector<10x1xf32>
    %23 = vector.broadcast %22 : vector<10x1xf32> to vector<10x128xf32>
    %24 = vector.extract_strided_slice %4 {offsets = [0, 0], sizes = [10, 1], strides = [1, 1]} : vector<10x10xf32> to vector<10x1xf32>
    %25 = vector.shape_cast %24 : vector<10x1xf32> to vector<10x1xf32>
    %26 = vector.broadcast %25 : vector<10x1xf32> to vector<10x128xf32>
    %27 = vector.extract_strided_slice %4 {offsets = [0, 1], sizes = [10, 1], strides = [1, 1]} : vector<10x10xf32> to vector<10x1xf32>
    %28 = vector.shape_cast %27 : vector<10x1xf32> to vector<10x1xf32>
    %29 = vector.broadcast %28 : vector<10x1xf32> to vector<10x128xf32>
    %30 = vector.extract_strided_slice %4 {offsets = [0, 2], sizes = [10, 1], strides = [1, 1]} : vector<10x10xf32> to vector<10x1xf32>
    %31 = vector.shape_cast %30 : vector<10x1xf32> to vector<10x1xf32>
    %32 = vector.broadcast %31 : vector<10x1xf32> to vector<10x128xf32>
    %33 = vector.extract_strided_slice %4 {offsets = [0, 3], sizes = [10, 1], strides = [1, 1]} : vector<10x10xf32> to vector<10x1xf32>
    %34 = vector.shape_cast %33 : vector<10x1xf32> to vector<10x1xf32>
    %35 = vector.broadcast %34 : vector<10x1xf32> to vector<10x128xf32>
    %36 = vector.extract_strided_slice %4 {offsets = [0, 4], sizes = [10, 1], strides = [1, 1]} : vector<10x10xf32> to vector<10x1xf32>
    %37 = vector.shape_cast %36 : vector<10x1xf32> to vector<10x1xf32>
    %38 = vector.broadcast %37 : vector<10x1xf32> to vector<10x128xf32>
    %39 = vector.extract_strided_slice %4 {offsets = [0, 5], sizes = [10, 1], strides = [1, 1]} : vector<10x10xf32> to vector<10x1xf32>
    %40 = vector.shape_cast %39 : vector<10x1xf32> to vector<10x1xf32>
    %41 = vector.broadcast %40 : vector<10x1xf32> to vector<10x128xf32>
    %42 = vector.extract_strided_slice %4 {offsets = [0, 6], sizes = [10, 1], strides = [1, 1]} : vector<10x10xf32> to vector<10x1xf32>
    %43 = vector.shape_cast %42 : vector<10x1xf32> to vector<10x1xf32>
    %44 = vector.broadcast %43 : vector<10x1xf32> to vector<10x128xf32>
    %45 = vector.extract_strided_slice %4 {offsets = [0, 7], sizes = [10, 1], strides = [1, 1]} : vector<10x10xf32> to vector<10x1xf32>
    %46 = vector.shape_cast %45 : vector<10x1xf32> to vector<10x1xf32>
    %47 = vector.broadcast %46 : vector<10x1xf32> to vector<10x128xf32>
    %48 = vector.extract_strided_slice %4 {offsets = [0, 8], sizes = [10, 1], strides = [1, 1]} : vector<10x10xf32> to vector<10x1xf32>
    %49 = vector.shape_cast %48 : vector<10x1xf32> to vector<10x1xf32>
    %50 = vector.broadcast %49 : vector<10x1xf32> to vector<10x128xf32>
    %51 = vector.extract_strided_slice %4 {offsets = [0, 9], sizes = [10, 1], strides = [1, 1]} : vector<10x10xf32> to vector<10x1xf32>
    %52 = vector.shape_cast %51 : vector<10x1xf32> to vector<10x1xf32>
    %53 = vector.broadcast %52 : vector<10x1xf32> to vector<10x128xf32>
    %54 = vector.extract_strided_slice %5 {offsets = [0, 0], sizes = [2, 1], strides = [1, 1]} : vector<2x10xf32> to vector<2x1xf32>
    %55 = vector.shape_cast %54 : vector<2x1xf32> to vector<2x1xf32>
    %56 = vector.broadcast %55 : vector<2x1xf32> to vector<2x128xf32>
    %57 = vector.extract_strided_slice %5 {offsets = [0, 1], sizes = [2, 1], strides = [1, 1]} : vector<2x10xf32> to vector<2x1xf32>
    %58 = vector.shape_cast %57 : vector<2x1xf32> to vector<2x1xf32>
    %59 = vector.broadcast %58 : vector<2x1xf32> to vector<2x128xf32>
    %60 = vector.extract_strided_slice %5 {offsets = [0, 2], sizes = [2, 1], strides = [1, 1]} : vector<2x10xf32> to vector<2x1xf32>
    %61 = vector.shape_cast %60 : vector<2x1xf32> to vector<2x1xf32>
    %62 = vector.broadcast %61 : vector<2x1xf32> to vector<2x128xf32>
    %63 = vector.extract_strided_slice %5 {offsets = [0, 3], sizes = [2, 1], strides = [1, 1]} : vector<2x10xf32> to vector<2x1xf32>
    %64 = vector.shape_cast %63 : vector<2x1xf32> to vector<2x1xf32>
    %65 = vector.broadcast %64 : vector<2x1xf32> to vector<2x128xf32>
    %66 = vector.extract_strided_slice %5 {offsets = [0, 4], sizes = [2, 1], strides = [1, 1]} : vector<2x10xf32> to vector<2x1xf32>
    %67 = vector.shape_cast %66 : vector<2x1xf32> to vector<2x1xf32>
    %68 = vector.broadcast %67 : vector<2x1xf32> to vector<2x128xf32>
    %69 = vector.extract_strided_slice %5 {offsets = [0, 5], sizes = [2, 1], strides = [1, 1]} : vector<2x10xf32> to vector<2x1xf32>
    %70 = vector.shape_cast %69 : vector<2x1xf32> to vector<2x1xf32>
    %71 = vector.broadcast %70 : vector<2x1xf32> to vector<2x128xf32>
    %72 = vector.extract_strided_slice %5 {offsets = [0, 6], sizes = [2, 1], strides = [1, 1]} : vector<2x10xf32> to vector<2x1xf32>
    %73 = vector.shape_cast %72 : vector<2x1xf32> to vector<2x1xf32>
    %74 = vector.broadcast %73 : vector<2x1xf32> to vector<2x128xf32>
    %75 = vector.extract_strided_slice %5 {offsets = [0, 7], sizes = [2, 1], strides = [1, 1]} : vector<2x10xf32> to vector<2x1xf32>
    %76 = vector.shape_cast %75 : vector<2x1xf32> to vector<2x1xf32>
    %77 = vector.broadcast %76 : vector<2x1xf32> to vector<2x128xf32>
    %78 = vector.extract_strided_slice %5 {offsets = [0, 8], sizes = [2, 1], strides = [1, 1]} : vector<2x10xf32> to vector<2x1xf32>
    %79 = vector.shape_cast %78 : vector<2x1xf32> to vector<2x1xf32>
    %80 = vector.broadcast %79 : vector<2x1xf32> to vector<2x128xf32>
    %81 = vector.extract_strided_slice %5 {offsets = [0, 9], sizes = [2, 1], strides = [1, 1]} : vector<2x10xf32> to vector<2x1xf32>
    %82 = vector.shape_cast %81 : vector<2x1xf32> to vector<2x1xf32>
    %83 = vector.broadcast %82 : vector<2x1xf32> to vector<2x128xf32>
    %c0_10 = arith.constant 0 : index
    %c0_11 = arith.constant 0 : index
    %84 = vector.load %arg10[%c0_10, %c0_11] : memref<10x128xf32, #tpu.memory_space<vmem>>, vector<10x128xf32>
    %c0_i32_12 = arith.constant 0 : i32
    %85 = arith.index_cast %c0_i32_12 : i32 to index
    %c0_13 = arith.constant 0 : index
    %c0_14 = arith.constant 0 : index
    %86 = vector.load %arg2[%85, %c0_13, %c0_14] : memref<8x4x128xf32, #tpu.memory_space<vmem>>, vector<1x4x128xf32>
    %87 = vector.shape_cast %86 : vector<1x4x128xf32> to vector<4x128xf32>
    %88 = vector.extract_strided_slice %87 {offsets = [0, 0], sizes = [1, 128], strides = [1, 1]} : vector<4x128xf32> to vector<1x128xf32>
    %89 = vector.broadcast %88 : vector<1x128xf32> to vector<10x128xf32>
    %90 = arith.mulf %14, %89 : vector<10x128xf32>
    %91 = arith.addf %8, %90 : vector<10x128xf32>
    %92 = vector.extract_strided_slice %87 {offsets = [1, 0], sizes = [1, 128], strides = [1, 1]} : vector<4x128xf32> to vector<1x128xf32>
    %93 = vector.broadcast %92 : vector<1x128xf32> to vector<10x128xf32>
    %94 = arith.mulf %17, %93 : vector<10x128xf32>
    %95 = arith.addf %91, %94 : vector<10x128xf32>
    %96 = vector.extract_strided_slice %87 {offsets = [2, 0], sizes = [1, 128], strides = [1, 1]} : vector<4x128xf32> to vector<1x128xf32>
    %97 = vector.broadcast %96 : vector<1x128xf32> to vector<10x128xf32>
    %98 = arith.mulf %20, %97 : vector<10x128xf32>
    %99 = arith.addf %95, %98 : vector<10x128xf32>
    %100 = vector.extract_strided_slice %87 {offsets = [3, 0], sizes = [1, 128], strides = [1, 1]} : vector<4x128xf32> to vector<1x128xf32>
    %101 = vector.broadcast %100 : vector<1x128xf32> to vector<10x128xf32>
    %102 = arith.mulf %23, %101 : vector<10x128xf32>
    %103 = arith.addf %99, %102 : vector<10x128xf32>
    %104 = vector.extract_strided_slice %84 {offsets = [0, 0], sizes = [1, 128], strides = [1, 1]} : vector<10x128xf32> to vector<1x128xf32>
    %105 = vector.broadcast %104 : vector<1x128xf32> to vector<10x128xf32>
    %106 = arith.mulf %26, %105 : vector<10x128xf32>
    %107 = vector.extract_strided_slice %84 {offsets = [1, 0], sizes = [1, 128], strides = [1, 1]} : vector<10x128xf32> to vector<1x128xf32>
    %108 = vector.broadcast %107 : vector<1x128xf32> to vector<10x128xf32>
    %109 = arith.mulf %29, %108 : vector<10x128xf32>
    %110 = vector.extract_strided_slice %84 {offsets = [2, 0], sizes = [1, 128], strides = [1, 1]} : vector<10x128xf32> to vector<1x128xf32>
    %111 = vector.broadcast %110 : vector<1x128xf32> to vector<10x128xf32>
    %112 = arith.mulf %32, %111 : vector<10x128xf32>
    %113 = vector.extract_strided_slice %84 {offsets = [3, 0], sizes = [1, 128], strides = [1, 1]} : vector<10x128xf32> to vector<1x128xf32>
    %114 = vector.broadcast %113 : vector<1x128xf32> to vector<10x128xf32>
    %115 = arith.mulf %35, %114 : vector<10x128xf32>
    %116 = vector.extract_strided_slice %84 {offsets = [4, 0], sizes = [1, 128], strides = [1, 1]} : vector<10x128xf32> to vector<1x128xf32>
    %117 = vector.broadcast %116 : vector<1x128xf32> to vector<10x128xf32>
    %118 = arith.mulf %38, %117 : vector<10x128xf32>
    %119 = arith.addf %106, %118 : vector<10x128xf32>
    %120 = vector.extract_strided_slice %84 {offsets = [5, 0], sizes = [1, 128], strides = [1, 1]} : vector<10x128xf32> to vector<1x128xf32>
    %121 = vector.broadcast %120 : vector<1x128xf32> to vector<10x128xf32>
    %122 = arith.mulf %41, %121 : vector<10x128xf32>
    %123 = arith.addf %109, %122 : vector<10x128xf32>
    %124 = vector.extract_strided_slice %84 {offsets = [6, 0], sizes = [1, 128], strides = [1, 1]} : vector<10x128xf32> to vector<1x128xf32>
    %125 = vector.broadcast %124 : vector<1x128xf32> to vector<10x128xf32>
    %126 = arith.mulf %44, %125 : vector<10x128xf32>
    %127 = arith.addf %112, %126 : vector<10x128xf32>
    %128 = vector.extract_strided_slice %84 {offsets = [7, 0], sizes = [1, 128], strides = [1, 1]} : vector<10x128xf32> to vector<1x128xf32>
    %129 = vector.broadcast %128 : vector<1x128xf32> to vector<10x128xf32>
    %130 = arith.mulf %47, %129 : vector<10x128xf32>
    %131 = arith.addf %115, %130 : vector<10x128xf32>
    %132 = vector.extract_strided_slice %84 {offsets = [8, 0], sizes = [1, 128], strides = [1, 1]} : vector<10x128xf32> to vector<1x128xf32>
    %133 = vector.broadcast %132 : vector<1x128xf32> to vector<10x128xf32>
    %134 = arith.mulf %50, %133 : vector<10x128xf32>
    %135 = arith.addf %119, %134 : vector<10x128xf32>
    %136 = vector.extract_strided_slice %84 {offsets = [9, 0], sizes = [1, 128], strides = [1, 1]} : vector<10x128xf32> to vector<1x128xf32>
    %137 = vector.broadcast %136 : vector<1x128xf32> to vector<10x128xf32>
    %138 = arith.mulf %53, %137 : vector<10x128xf32>
    %139 = arith.addf %123, %138 : vector<10x128xf32>
    %140 = arith.addf %103, %135 : vector<10x128xf32>
    %141 = arith.addf %140, %139 : vector<10x128xf32>
    %142 = arith.addf %141, %127 : vector<10x128xf32>
    %143 = arith.addf %142, %131 : vector<10x128xf32>
    %144 = math.tanh %143 : vector<10x128xf32>
    %145 = vector.extract_strided_slice %144 {offsets = [0, 0], sizes = [1, 128], strides = [1, 1]} : vector<10x128xf32> to vector<1x128xf32>
    %146 = vector.broadcast %145 : vector<1x128xf32> to vector<2x128xf32>
    %147 = arith.mulf %56, %146 : vector<2x128xf32>
    %148 = arith.addf %11, %147 : vector<2x128xf32>
    %149 = vector.extract_strided_slice %144 {offsets = [1, 0], sizes = [1, 128], strides = [1, 1]} : vector<10x128xf32> to vector<1x128xf32>
    %150 = vector.broadcast %149 : vector<1x128xf32> to vector<2x128xf32>
    %151 = arith.mulf %59, %150 : vector<2x128xf32>
    %152 = arith.addf %148, %151 : vector<2x128xf32>
    %153 = vector.extract_strided_slice %144 {offsets = [2, 0], sizes = [1, 128], strides = [1, 1]} : vector<10x128xf32> to vector<1x128xf32>
    %154 = vector.broadcast %153 : vector<1x128xf32> to vector<2x128xf32>
    %155 = arith.mulf %62, %154 : vector<2x128xf32>
    %156 = arith.addf %152, %155 : vector<2x128xf32>
    %157 = vector.extract_strided_slice %144 {offsets = [3, 0], sizes = [1, 128], strides = [1, 1]} : vector<10x128xf32> to vector<1x128xf32>
    %158 = vector.broadcast %157 : vector<1x128xf32> to vector<2x128xf32>
    %159 = arith.mulf %65, %158 : vector<2x128xf32>
    %160 = arith.addf %156, %159 : vector<2x128xf32>
    %161 = vector.extract_strided_slice %144 {offsets = [4, 0], sizes = [1, 128], strides = [1, 1]} : vector<10x128xf32> to vector<1x128xf32>
    %162 = vector.broadcast %161 : vector<1x128xf32> to vector<2x128xf32>
    %163 = arith.mulf %68, %162 : vector<2x128xf32>
    %164 = arith.addf %160, %163 : vector<2x128xf32>
    %165 = vector.extract_strided_slice %144 {offsets = [5, 0], sizes = [1, 128], strides = [1, 1]} : vector<10x128xf32> to vector<1x128xf32>
    %166 = vector.broadcast %165 : vector<1x128xf32> to vector<2x128xf32>
    %167 = arith.mulf %71, %166 : vector<2x128xf32>
    %168 = arith.addf %164, %167 : vector<2x128xf32>
    %169 = vector.extract_strided_slice %144 {offsets = [6, 0], sizes = [1, 128], strides = [1, 1]} : vector<10x128xf32> to vector<1x128xf32>
    %170 = vector.broadcast %169 : vector<1x128xf32> to vector<2x128xf32>
    %171 = arith.mulf %74, %170 : vector<2x128xf32>
    %172 = arith.addf %168, %171 : vector<2x128xf32>
    %173 = vector.extract_strided_slice %144 {offsets = [7, 0], sizes = [1, 128], strides = [1, 1]} : vector<10x128xf32> to vector<1x128xf32>
    %174 = vector.broadcast %173 : vector<1x128xf32> to vector<2x128xf32>
    %175 = arith.mulf %77, %174 : vector<2x128xf32>
    %176 = arith.addf %172, %175 : vector<2x128xf32>
    %177 = vector.extract_strided_slice %144 {offsets = [8, 0], sizes = [1, 128], strides = [1, 1]} : vector<10x128xf32> to vector<1x128xf32>
    %178 = vector.broadcast %177 : vector<1x128xf32> to vector<2x128xf32>
    %179 = arith.mulf %80, %178 : vector<2x128xf32>
    %180 = arith.addf %176, %179 : vector<2x128xf32>
    %181 = vector.extract_strided_slice %144 {offsets = [9, 0], sizes = [1, 128], strides = [1, 1]} : vector<10x128xf32> to vector<1x128xf32>
    %182 = vector.broadcast %181 : vector<1x128xf32> to vector<2x128xf32>
    %183 = arith.mulf %83, %182 : vector<2x128xf32>
    %184 = arith.addf %180, %183 : vector<2x128xf32>
    %185 = vector.extract_strided_slice %184 {offsets = [0, 0], sizes = [1, 128], strides = [1, 1]} : vector<2x128xf32> to vector<1x128xf32>
    %186 = vector.extract_strided_slice %184 {offsets = [1, 0], sizes = [1, 128], strides = [1, 1]} : vector<2x128xf32> to vector<1x128xf32>
    %187 = arith.index_cast %c0_i32_12 : i32 to index
    %c0_15 = arith.constant 0 : index
    %c0_16 = arith.constant 0 : index
    %188 = vector.load %arg3[%187, %c0_15, %c0_16] : memref<8x1x128xf32, #tpu.memory_space<vmem>>, vector<1x1x128xf32>
    %189 = vector.shape_cast %188 : vector<1x1x128xf32> to vector<1x128xf32>
    %190 = arith.mulf %186, %189 : vector<1x128xf32>
    %191 = arith.addf %185, %190 : vector<1x128xf32>
    %192 = arith.index_cast %c0_i32_12 : i32 to index
    %c0_17 = arith.constant 0 : index
    %c0_18 = arith.constant 0 : index
    %193 = vector.load %arg9[%192, %c0_17, %c0_18] : memref<8x3x128xf32, #tpu.memory_space<vmem>>, vector<1x1x128xf32>
    %194 = vector.shape_cast %193 : vector<1x1x128xf32> to vector<1x128xf32>
    %195 = vector.shape_cast %185 : vector<1x128xf32> to vector<1x1x128xf32>
    tpu.vector_store %arg9[%192, %c0_17, %c0_18], %195 {strides = array<i32>} : memref<8x3x128xf32, #tpu.memory_space<vmem>>, vector<1x1x128xf32>,
    %196 = arith.index_cast %c0_i32_12 : i32 to index
    %c1 = arith.constant 1 : index
    %c0_19 = arith.constant 0 : index
    %197 = vector.load %arg9[%196, %c1, %c0_19] : memref<8x3x128xf32, #tpu.memory_space<vmem>>, vector<1x1x128xf32>
    %198 = vector.shape_cast %197 : vector<1x1x128xf32> to vector<1x128xf32>
    %199 = vector.shape_cast %186 : vector<1x128xf32> to vector<1x1x128xf32>
    tpu.vector_store %arg9[%196, %c1, %c0_19], %199 {strides = array<i32>} : memref<8x3x128xf32, #tpu.memory_space<vmem>>, vector<1x1x128xf32>,
    %200 = arith.index_cast %c0_i32_12 : i32 to index
    %c2 = arith.constant 2 : index
    %c0_20 = arith.constant 0 : index
    %201 = vector.load %arg9[%200, %c2, %c0_20] : memref<8x3x128xf32, #tpu.memory_space<vmem>>, vector<1x1x128xf32>
    %202 = vector.shape_cast %201 : vector<1x1x128xf32> to vector<1x128xf32>
    %203 = vector.shape_cast %191 : vector<1x128xf32> to vector<1x1x128xf32>
    tpu.vector_store %arg9[%200, %c2, %c0_20], %203 {strides = array<i32>} : memref<8x3x128xf32, #tpu.memory_space<vmem>>, vector<1x1x128xf32>,
    %c1_i32 = arith.constant 1 : i32
    %204 = arith.index_cast %c1_i32 : i32 to index
    %c0_21 = arith.constant 0 : index
    %c0_22 = arith.constant 0 : index
    %205 = vector.load %arg2[%204, %c0_21, %c0_22] : memref<8x4x128xf32, #tpu.memory_space<vmem>>, vector<1x4x128xf32>
    %206 = vector.shape_cast %205 : vector<1x4x128xf32> to vector<4x128xf32>
    %207 = vector.extract_strided_slice %206 {offsets = [0, 0], sizes = [1, 128], strides = [1, 1]} : vector<4x128xf32> to vector<1x128xf32>
    %208 = vector.broadcast %207 : vector<1x128xf32> to vector<10x128xf32>
    %209 = arith.mulf %14, %208 : vector<10x128xf32>
    %210 = arith.addf %8, %209 : vector<10x128xf32>
    %211 = vector.extract_strided_slice %206 {offsets = [1, 0], sizes = [1, 128], strides = [1, 1]} : vector<4x128xf32> to vector<1x128xf32>
    %212 = vector.broadcast %211 : vector<1x128xf32> to vector<10x128xf32>
    %213 = arith.mulf %17, %212 : vector<10x128xf32>
    %214 = arith.addf %210, %213 : vector<10x128xf32>
    %215 = vector.extract_strided_slice %206 {offsets = [2, 0], sizes = [1, 128], strides = [1, 1]} : vector<4x128xf32> to vector<1x128xf32>
    %216 = vector.broadcast %215 : vector<1x128xf32> to vector<10x128xf32>
    %217 = arith.mulf %20, %216 : vector<10x128xf32>
    %218 = arith.addf %214, %217 : vector<10x128xf32>
    %219 = vector.extract_strided_slice %206 {offsets = [3, 0], sizes = [1, 128], strides = [1, 1]} : vector<4x128xf32> to vector<1x128xf32>
    %220 = vector.broadcast %219 : vector<1x128xf32> to vector<10x128xf32>
    %221 = arith.mulf %23, %220 : vector<10x128xf32>
    %222 = arith.addf %218, %221 : vector<10x128xf32>
    %223 = vector.extract_strided_slice %144 {offsets = [0, 0], sizes = [1, 128], strides = [1, 1]} : vector<10x128xf32> to vector<1x128xf32>
    %224 = vector.broadcast %223 : vector<1x128xf32> to vector<10x128xf32>
    %225 = arith.mulf %26, %224 : vector<10x128xf32>
    %226 = vector.extract_strided_slice %144 {offsets = [1, 0], sizes = [1, 128], strides = [1, 1]} : vector<10x128xf32> to vector<1x128xf32>
    %227 = vector.broadcast %226 : vector<1x128xf32> to vector<10x128xf32>
    %228 = arith.mulf %29, %227 : vector<10x128xf32>
    %229 = vector.extract_strided_slice %144 {offsets = [2, 0], sizes = [1, 128], strides = [1, 1]} : vector<10x128xf32> to vector<1x128xf32>
    %230 = vector.broadcast %229 : vector<1x128xf32> to vector<10x128xf32>
    %231 = arith.mulf %32, %230 : vector<10x128xf32>
    %232 = vector.extract_strided_slice %144 {offsets = [3, 0], sizes = [1, 128], strides = [1, 1]} : vector<10x128xf32> to vector<1x128xf32>
    %233 = vector.broadcast %232 : vector<1x128xf32> to vector<10x128xf32>
    %234 = arith.mulf %35, %233 : vector<10x128xf32>
    %235 = vector.extract_strided_slice %144 {offsets = [4, 0], sizes = [1, 128], strides = [1, 1]} : vector<10x128xf32> to vector<1x128xf32>
    %236 = vector.broadcast %235 : vector<1x128xf32> to vector<10x128xf32>
    %237 = arith.mulf %38, %236 : vector<10x128xf32>
    %238 = arith.addf %225, %237 : vector<10x128xf32>
    %239 = vector.extract_strided_slice %144 {offsets = [5, 0], sizes = [1, 128], strides = [1, 1]} : vector<10x128xf32> to vector<1x128xf32>
    %240 = vector.broadcast %239 : vector<1x128xf32> to vector<10x128xf32>
    %241 = arith.mulf %41, %240 : vector<10x128xf32>
    %242 = arith.addf %228, %241 : vector<10x128xf32>
    %243 = vector.extract_strided_slice %144 {offsets = [6, 0], sizes = [1, 128], strides = [1, 1]} : vector<10x128xf32> to vector<1x128xf32>
    %244 = vector.broadcast %243 : vector<1x128xf32> to vector<10x128xf32>
    %245 = arith.mulf %44, %244 : vector<10x128xf32>
    %246 = arith.addf %231, %245 : vector<10x128xf32>
    %247 = vector.extract_strided_slice %144 {offsets = [7, 0], sizes = [1, 128], strides = [1, 1]} : vector<10x128xf32> to vector<1x128xf32>
    %248 = vector.broadcast %247 : vector<1x128xf32> to vector<10x128xf32>
    %249 = arith.mulf %47, %248 : vector<10x128xf32>
    %250 = arith.addf %234, %249 : vector<10x128xf32>
    %251 = vector.extract_strided_slice %144 {offsets = [8, 0], sizes = [1, 128], strides = [1, 1]} : vector<10x128xf32> to vector<1x128xf32>
    %252 = vector.broadcast %251 : vector<1x128xf32> to vector<10x128xf32>
    %253 = arith.mulf %50, %252 : vector<10x128xf32>
    %254 = arith.addf %238, %253 : vector<10x128xf32>
    %255 = vector.extract_strided_slice %144 {offsets = [9, 0], sizes = [1, 128], strides = [1, 1]} : vector<10x128xf32> to vector<1x128xf32>
    %256 = vector.broadcast %255 : vector<1x128xf32> to vector<10x128xf32>
    %257 = arith.mulf %53, %256 : vector<10x128xf32>
    %258 = arith.addf %242, %257 : vector<10x128xf32>
    %259 = arith.addf %222, %254 : vector<10x128xf32>
    %260 = arith.addf %259, %258 : vector<10x128xf32>
    %261 = arith.addf %260, %246 : vector<10x128xf32>
    %262 = arith.addf %261, %250 : vector<10x128xf32>
    %263 = math.tanh %262 : vector<10x128xf32>
    %264 = vector.extract_strided_slice %263 {offsets = [0, 0], sizes = [1, 128], strides = [1, 1]} : vector<10x128xf32> to vector<1x128xf32>
    %265 = vector.broadcast %264 : vector<1x128xf32> to vector<2x128xf32>
    %266 = arith.mulf %56, %265 : vector<2x128xf32>
    %267 = arith.addf %11, %266 : vector<2x128xf32>
    %268 = vector.extract_strided_slice %263 {offsets = [1, 0], sizes = [1, 128], strides = [1, 1]} : vector<10x128xf32> to vector<1x128xf32>
    %269 = vector.broadcast %268 : vector<1x128xf32> to vector<2x128xf32>
    %270 = arith.mulf %59, %269 : vector<2x128xf32>
    %271 = arith.addf %267, %270 : vector<2x128xf32>
    %272 = vector.extract_strided_slice %263 {offsets = [2, 0], sizes = [1, 128], strides = [1, 1]} : vector<10x128xf32> to vector<1x128xf32>
    %273 = vector.broadcast %272 : vector<1x128xf32> to vector<2x128xf32>
    %274 = arith.mulf %62, %273 : vector<2x128xf32>
    %275 = arith.addf %271, %274 : vector<2x128xf32>
    %276 = vector.extract_strided_slice %263 {offsets = [3, 0], sizes = [1, 128], strides = [1, 1]} : vector<10x128xf32> to vector<1x128xf32>
    %277 = vector.broadcast %276 : vector<1x128xf32> to vector<2x128xf32>
    %278 = arith.mulf %65, %277 : vector<2x128xf32>
    %279 = arith.addf %275, %278 : vector<2x128xf32>
    %280 = vector.extract_strided_slice %263 {offsets = [4, 0], sizes = [1, 128], strides = [1, 1]} : vector<10x128xf32> to vector<1x128xf32>
    %281 = vector.broadcast %280 : vector<1x128xf32> to vector<2x128xf32>
    %282 = arith.mulf %68, %281 : vector<2x128xf32>
    %283 = arith.addf %279, %282 : vector<2x128xf32>
    %284 = vector.extract_strided_slice %263 {offsets = [5, 0], sizes = [1, 128], strides = [1, 1]} : vector<10x128xf32> to vector<1x128xf32>
    %285 = vector.broadcast %284 : vector<1x128xf32> to vector<2x128xf32>
    %286 = arith.mulf %71, %285 : vector<2x128xf32>
    %287 = arith.addf %283, %286 : vector<2x128xf32>
    %288 = vector.extract_strided_slice %263 {offsets = [6, 0], sizes = [1, 128], strides = [1, 1]} : vector<10x128xf32> to vector<1x128xf32>
    %289 = vector.broadcast %288 : vector<1x128xf32> to vector<2x128xf32>
    %290 = arith.mulf %74, %289 : vector<2x128xf32>
    %291 = arith.addf %287, %290 : vector<2x128xf32>
    %292 = vector.extract_strided_slice %263 {offsets = [7, 0], sizes = [1, 128], strides = [1, 1]} : vector<10x128xf32> to vector<1x128xf32>
    %293 = vector.broadcast %292 : vector<1x128xf32> to vector<2x128xf32>
    %294 = arith.mulf %77, %293 : vector<2x128xf32>
    %295 = arith.addf %291, %294 : vector<2x128xf32>
    %296 = vector.extract_strided_slice %263 {offsets = [8, 0], sizes = [1, 128], strides = [1, 1]} : vector<10x128xf32> to vector<1x128xf32>
    %297 = vector.broadcast %296 : vector<1x128xf32> to vector<2x128xf32>
    %298 = arith.mulf %80, %297 : vector<2x128xf32>
    %299 = arith.addf %295, %298 : vector<2x128xf32>
    %300 = vector.extract_strided_slice %263 {offsets = [9, 0], sizes = [1, 128], strides = [1, 1]} : vector<10x128xf32> to vector<1x128xf32>
    %301 = vector.broadcast %300 : vector<1x128xf32> to vector<2x128xf32>
    %302 = arith.mulf %83, %301 : vector<2x128xf32>
    %303 = arith.addf %299, %302 : vector<2x128xf32>
    %304 = vector.extract_strided_slice %303 {offsets = [0, 0], sizes = [1, 128], strides = [1, 1]} : vector<2x128xf32> to vector<1x128xf32>
    %305 = vector.extract_strided_slice %303 {offsets = [1, 0], sizes = [1, 128], strides = [1, 1]} : vector<2x128xf32> to vector<1x128xf32>
    %306 = arith.index_cast %c1_i32 : i32 to index
    %c0_23 = arith.constant 0 : index
    %c0_24 = arith.constant 0 : index
    %307 = vector.load %arg3[%306, %c0_23, %c0_24] : memref<8x1x128xf32, #tpu.memory_space<vmem>>, vector<1x1x128xf32>
    %308 = vector.shape_cast %307 : vector<1x1x128xf32> to vector<1x128xf32>
    %309 = arith.mulf %305, %308 : vector<1x128xf32>
    %310 = arith.addf %304, %309 : vector<1x128xf32>
    %311 = arith.index_cast %c1_i32 : i32 to index
    %c0_25 = arith.constant 0 : index
    %c0_26 = arith.constant 0 : index
    %312 = vector.load %arg9[%311, %c0_25, %c0_26] : memref<8x3x128xf32, #tpu.memory_space<vmem>>, vector<1x1x128xf32>
    %313 = vector.shape_cast %312 : vector<1x1x128xf32> to vector<1x128xf32>
    %314 = vector.shape_cast %304 : vector<1x128xf32> to vector<1x1x128xf32>
    tpu.vector_store %arg9[%311, %c0_25, %c0_26], %314 {strides = array<i32>} : memref<8x3x128xf32, #tpu.memory_space<vmem>>, vector<1x1x128xf32>,
    %315 = arith.index_cast %c1_i32 : i32 to index
    %c1_27 = arith.constant 1 : index
    %c0_28 = arith.constant 0 : index
    %316 = vector.load %arg9[%315, %c1_27, %c0_28] : memref<8x3x128xf32, #tpu.memory_space<vmem>>, vector<1x1x128xf32>
    %317 = vector.shape_cast %316 : vector<1x1x128xf32> to vector<1x128xf32>
    %318 = vector.shape_cast %305 : vector<1x128xf32> to vector<1x1x128xf32>
    tpu.vector_store %arg9[%315, %c1_27, %c0_28], %318 {strides = array<i32>} : memref<8x3x128xf32, #tpu.memory_space<vmem>>, vector<1x1x128xf32>,
    %319 = arith.index_cast %c1_i32 : i32 to index
    %c2_29 = arith.constant 2 : index
    %c0_30 = arith.constant 0 : index
    %320 = vector.load %arg9[%319, %c2_29, %c0_30] : memref<8x3x128xf32, #tpu.memory_space<vmem>>, vector<1x1x128xf32>
    %321 = vector.shape_cast %320 : vector<1x1x128xf32> to vector<1x128xf32>
    %322 = vector.shape_cast %310 : vector<1x128xf32> to vector<1x1x128xf32>
    tpu.vector_store %arg9[%319, %c2_29, %c0_30], %322 {strides = array<i32>} : memref<8x3x128xf32, #tpu.memory_space<vmem>>, vector<1x1x128xf32>,
    %c2_i32 = arith.constant 2 : i32
    %323 = arith.index_cast %c2_i32 : i32 to index
    %c0_31 = arith.constant 0 : index
    %c0_32 = arith.constant 0 : index
    %324 = vector.load %arg2[%323, %c0_31, %c0_32] : memref<8x4x128xf32, #tpu.memory_space<vmem>>, vector<1x4x128xf32>
    %325 = vector.shape_cast %324 : vector<1x4x128xf32> to vector<4x128xf32>
    %326 = vector.extract_strided_slice %325 {offsets = [0, 0], sizes = [1, 128], strides = [1, 1]} : vector<4x128xf32> to vector<1x128xf32>
    %327 = vector.broadcast %326 : vector<1x128xf32> to vector<10x128xf32>
    %328 = arith.mulf %14, %327 : vector<10x128xf32>
    %329 = arith.addf %8, %328 : vector<10x128xf32>
    %330 = vector.extract_strided_slice %325 {offsets = [1, 0], sizes = [1, 128], strides = [1, 1]} : vector<4x128xf32> to vector<1x128xf32>
    %331 = vector.broadcast %330 : vector<1x128xf32> to vector<10x128xf32>
    %332 = arith.mulf %17, %331 : vector<10x128xf32>
    %333 = arith.addf %329, %332 : vector<10x128xf32>
    %334 = vector.extract_strided_slice %325 {offsets = [2, 0], sizes = [1, 128], strides = [1, 1]} : vector<4x128xf32> to vector<1x128xf32>
    %335 = vector.broadcast %334 : vector<1x128xf32> to vector<10x128xf32>
    %336 = arith.mulf %20, %335 : vector<10x128xf32>
    %337 = arith.addf %333, %336 : vector<10x128xf32>
    %338 = vector.extract_strided_slice %325 {offsets = [3, 0], sizes = [1, 128], strides = [1, 1]} : vector<4x128xf32> to vector<1x128xf32>
    %339 = vector.broadcast %338 : vector<1x128xf32> to vector<10x128xf32>
    %340 = arith.mulf %23, %339 : vector<10x128xf32>
    %341 = arith.addf %337, %340 : vector<10x128xf32>
    %342 = vector.extract_strided_slice %263 {offsets = [0, 0], sizes = [1, 128], strides = [1, 1]} : vector<10x128xf32> to vector<1x128xf32>
    %343 = vector.broadcast %342 : vector<1x128xf32> to vector<10x128xf32>
    %344 = arith.mulf %26, %343 : vector<10x128xf32>
    %345 = vector.extract_strided_slice %263 {offsets = [1, 0], sizes = [1, 128], strides = [1, 1]} : vector<10x128xf32> to vector<1x128xf32>
    %346 = vector.broadcast %345 : vector<1x128xf32> to vector<10x128xf32>
    %347 = arith.mulf %29, %346 : vector<10x128xf32>
    %348 = vector.extract_strided_slice %263 {offsets = [2, 0], sizes = [1, 128], strides = [1, 1]} : vector<10x128xf32> to vector<1x128xf32>
    %349 = vector.broadcast %348 : vector<1x128xf32> to vector<10x128xf32>
    %350 = arith.mulf %32, %349 : vector<10x128xf32>
    %351 = vector.extract_strided_slice %263 {offsets = [3, 0], sizes = [1, 128], strides = [1, 1]} : vector<10x128xf32> to vector<1x128xf32>
    %352 = vector.broadcast %351 : vector<1x128xf32> to vector<10x128xf32>
    %353 = arith.mulf %35, %352 : vector<10x128xf32>
    %354 = vector.extract_strided_slice %263 {offsets = [4, 0], sizes = [1, 128], strides = [1, 1]} : vector<10x128xf32> to vector<1x128xf32>
    %355 = vector.broadcast %354 : vector<1x128xf32> to vector<10x128xf32>
    %356 = arith.mulf %38, %355 : vector<10x128xf32>
    %357 = arith.addf %344, %356 : vector<10x128xf32>
    %358 = vector.extract_strided_slice %263 {offsets = [5, 0], sizes = [1, 128], strides = [1, 1]} : vector<10x128xf32> to vector<1x128xf32>
    %359 = vector.broadcast %358 : vector<1x128xf32> to vector<10x128xf32>
    %360 = arith.mulf %41, %359 : vector<10x128xf32>
    %361 = arith.addf %347, %360 : vector<10x128xf32>
    %362 = vector.extract_strided_slice %263 {offsets = [6, 0], sizes = [1, 128], strides = [1, 1]} : vector<10x128xf32> to vector<1x128xf32>
    %363 = vector.broadcast %362 : vector<1x128xf32> to vector<10x128xf32>
    %364 = arith.mulf %44, %363 : vector<10x128xf32>
    %365 = arith.addf %350, %364 : vector<10x128xf32>
    %366 = vector.extract_strided_slice %263 {offsets = [7, 0], sizes = [1, 128], strides = [1, 1]} : vector<10x128xf32> to vector<1x128xf32>
    %367 = vector.broadcast %366 : vector<1x128xf32> to vector<10x128xf32>
    %368 = arith.mulf %47, %367 : vector<10x128xf32>
    %369 = arith.addf %353, %368 : vector<10x128xf32>
    %370 = vector.extract_strided_slice %263 {offsets = [8, 0], sizes = [1, 128], strides = [1, 1]} : vector<10x128xf32> to vector<1x128xf32>
    %371 = vector.broadcast %370 : vector<1x128xf32> to vector<10x128xf32>
    %372 = arith.mulf %50, %371 : vector<10x128xf32>
    %373 = arith.addf %357, %372 : vector<10x128xf32>
    %374 = vector.extract_strided_slice %263 {offsets = [9, 0], sizes = [1, 128], strides = [1, 1]} : vector<10x128xf32> to vector<1x128xf32>
    %375 = vector.broadcast %374 : vector<1x128xf32> to vector<10x128xf32>
    %376 = arith.mulf %53, %375 : vector<10x128xf32>
    %377 = arith.addf %361, %376 : vector<10x128xf32>
    %378 = arith.addf %341, %373 : vector<10x128xf32>
    %379 = arith.addf %378, %377 : vector<10x128xf32>
    %380 = arith.addf %379, %365 : vector<10x128xf32>
    %381 = arith.addf %380, %369 : vector<10x128xf32>
    %382 = math.tanh %381 : vector<10x128xf32>
    %383 = vector.extract_strided_slice %382 {offsets = [0, 0], sizes = [1, 128], strides = [1, 1]} : vector<10x128xf32> to vector<1x128xf32>
    %384 = vector.broadcast %383 : vector<1x128xf32> to vector<2x128xf32>
    %385 = arith.mulf %56, %384 : vector<2x128xf32>
    %386 = arith.addf %11, %385 : vector<2x128xf32>
    %387 = vector.extract_strided_slice %382 {offsets = [1, 0], sizes = [1, 128], strides = [1, 1]} : vector<10x128xf32> to vector<1x128xf32>
    %388 = vector.broadcast %387 : vector<1x128xf32> to vector<2x128xf32>
    %389 = arith.mulf %59, %388 : vector<2x128xf32>
    %390 = arith.addf %386, %389 : vector<2x128xf32>
    %391 = vector.extract_strided_slice %382 {offsets = [2, 0], sizes = [1, 128], strides = [1, 1]} : vector<10x128xf32> to vector<1x128xf32>
    %392 = vector.broadcast %391 : vector<1x128xf32> to vector<2x128xf32>
    %393 = arith.mulf %62, %392 : vector<2x128xf32>
    %394 = arith.addf %390, %393 : vector<2x128xf32>
    %395 = vector.extract_strided_slice %382 {offsets = [3, 0], sizes = [1, 128], strides = [1, 1]} : vector<10x128xf32> to vector<1x128xf32>
    %396 = vector.broadcast %395 : vector<1x128xf32> to vector<2x128xf32>
    %397 = arith.mulf %65, %396 : vector<2x128xf32>
    %398 = arith.addf %394, %397 : vector<2x128xf32>
    %399 = vector.extract_strided_slice %382 {offsets = [4, 0], sizes = [1, 128], strides = [1, 1]} : vector<10x128xf32> to vector<1x128xf32>
    %400 = vector.broadcast %399 : vector<1x128xf32> to vector<2x128xf32>
    %401 = arith.mulf %68, %400 : vector<2x128xf32>
    %402 = arith.addf %398, %401 : vector<2x128xf32>
    %403 = vector.extract_strided_slice %382 {offsets = [5, 0], sizes = [1, 128], strides = [1, 1]} : vector<10x128xf32> to vector<1x128xf32>
    %404 = vector.broadcast %403 : vector<1x128xf32> to vector<2x128xf32>
    %405 = arith.mulf %71, %404 : vector<2x128xf32>
    %406 = arith.addf %402, %405 : vector<2x128xf32>
    %407 = vector.extract_strided_slice %382 {offsets = [6, 0], sizes = [1, 128], strides = [1, 1]} : vector<10x128xf32> to vector<1x128xf32>
    %408 = vector.broadcast %407 : vector<1x128xf32> to vector<2x128xf32>
    %409 = arith.mulf %74, %408 : vector<2x128xf32>
    %410 = arith.addf %406, %409 : vector<2x128xf32>
    %411 = vector.extract_strided_slice %382 {offsets = [7, 0], sizes = [1, 128], strides = [1, 1]} : vector<10x128xf32> to vector<1x128xf32>
    %412 = vector.broadcast %411 : vector<1x128xf32> to vector<2x128xf32>
    %413 = arith.mulf %77, %412 : vector<2x128xf32>
    %414 = arith.addf %410, %413 : vector<2x128xf32>
    %415 = vector.extract_strided_slice %382 {offsets = [8, 0], sizes = [1, 128], strides = [1, 1]} : vector<10x128xf32> to vector<1x128xf32>
    %416 = vector.broadcast %415 : vector<1x128xf32> to vector<2x128xf32>
    %417 = arith.mulf %80, %416 : vector<2x128xf32>
    %418 = arith.addf %414, %417 : vector<2x128xf32>
    %419 = vector.extract_strided_slice %382 {offsets = [9, 0], sizes = [1, 128], strides = [1, 1]} : vector<10x128xf32> to vector<1x128xf32>
    %420 = vector.broadcast %419 : vector<1x128xf32> to vector<2x128xf32>
    %421 = arith.mulf %83, %420 : vector<2x128xf32>
    %422 = arith.addf %418, %421 : vector<2x128xf32>
    %423 = vector.extract_strided_slice %422 {offsets = [0, 0], sizes = [1, 128], strides = [1, 1]} : vector<2x128xf32> to vector<1x128xf32>
    %424 = vector.extract_strided_slice %422 {offsets = [1, 0], sizes = [1, 128], strides = [1, 1]} : vector<2x128xf32> to vector<1x128xf32>
    %425 = arith.index_cast %c2_i32 : i32 to index
    %c0_33 = arith.constant 0 : index
    %c0_34 = arith.constant 0 : index
    %426 = vector.load %arg3[%425, %c0_33, %c0_34] : memref<8x1x128xf32, #tpu.memory_space<vmem>>, vector<1x1x128xf32>
    %427 = vector.shape_cast %426 : vector<1x1x128xf32> to vector<1x128xf32>
    %428 = arith.mulf %424, %427 : vector<1x128xf32>
    %429 = arith.addf %423, %428 : vector<1x128xf32>
    %430 = arith.index_cast %c2_i32 : i32 to index
    %c0_35 = arith.constant 0 : index
    %c0_36 = arith.constant 0 : index
    %431 = vector.load %arg9[%430, %c0_35, %c0_36] : memref<8x3x128xf32, #tpu.memory_space<vmem>>, vector<1x1x128xf32>
    %432 = vector.shape_cast %431 : vector<1x1x128xf32> to vector<1x128xf32>
    %433 = vector.shape_cast %423 : vector<1x128xf32> to vector<1x1x128xf32>
    tpu.vector_store %arg9[%430, %c0_35, %c0_36], %433 {strides = array<i32>} : memref<8x3x128xf32, #tpu.memory_space<vmem>>, vector<1x1x128xf32>,
    %434 = arith.index_cast %c2_i32 : i32 to index
    %c1_37 = arith.constant 1 : index
    %c0_38 = arith.constant 0 : index
    %435 = vector.load %arg9[%434, %c1_37, %c0_38] : memref<8x3x128xf32, #tpu.memory_space<vmem>>, vector<1x1x128xf32>
    %436 = vector.shape_cast %435 : vector<1x1x128xf32> to vector<1x128xf32>
    %437 = vector.shape_cast %424 : vector<1x128xf32> to vector<1x1x128xf32>
    tpu.vector_store %arg9[%434, %c1_37, %c0_38], %437 {strides = array<i32>} : memref<8x3x128xf32, #tpu.memory_space<vmem>>, vector<1x1x128xf32>,
    %438 = arith.index_cast %c2_i32 : i32 to index
    %c2_39 = arith.constant 2 : index
    %c0_40 = arith.constant 0 : index
    %439 = vector.load %arg9[%438, %c2_39, %c0_40] : memref<8x3x128xf32, #tpu.memory_space<vmem>>, vector<1x1x128xf32>
    %440 = vector.shape_cast %439 : vector<1x1x128xf32> to vector<1x128xf32>
    %441 = vector.shape_cast %429 : vector<1x128xf32> to vector<1x1x128xf32>
    tpu.vector_store %arg9[%438, %c2_39, %c0_40], %441 {strides = array<i32>} : memref<8x3x128xf32, #tpu.memory_space<vmem>>, vector<1x1x128xf32>,
    %c3_i32 = arith.constant 3 : i32
    %442 = arith.index_cast %c3_i32 : i32 to index
    %c0_41 = arith.constant 0 : index
    %c0_42 = arith.constant 0 : index
    %443 = vector.load %arg2[%442, %c0_41, %c0_42] : memref<8x4x128xf32, #tpu.memory_space<vmem>>, vector<1x4x128xf32>
    %444 = vector.shape_cast %443 : vector<1x4x128xf32> to vector<4x128xf32>
    %445 = vector.extract_strided_slice %444 {offsets = [0, 0], sizes = [1, 128], strides = [1, 1]} : vector<4x128xf32> to vector<1x128xf32>
    %446 = vector.broadcast %445 : vector<1x128xf32> to vector<10x128xf32>
    %447 = arith.mulf %14, %446 : vector<10x128xf32>
    %448 = arith.addf %8, %447 : vector<10x128xf32>
    %449 = vector.extract_strided_slice %444 {offsets = [1, 0], sizes = [1, 128], strides = [1, 1]} : vector<4x128xf32> to vector<1x128xf32>
    %450 = vector.broadcast %449 : vector<1x128xf32> to vector<10x128xf32>
    %451 = arith.mulf %17, %450 : vector<10x128xf32>
    %452 = arith.addf %448, %451 : vector<10x128xf32>
    %453 = vector.extract_strided_slice %444 {offsets = [2, 0], sizes = [1, 128], strides = [1, 1]} : vector<4x128xf32> to vector<1x128xf32>
    %454 = vector.broadcast %453 : vector<1x128xf32> to vector<10x128xf32>
    %455 = arith.mulf %20, %454 : vector<10x128xf32>
    %456 = arith.addf %452, %455 : vector<10x128xf32>
    %457 = vector.extract_strided_slice %444 {offsets = [3, 0], sizes = [1, 128], strides = [1, 1]} : vector<4x128xf32> to vector<1x128xf32>
    %458 = vector.broadcast %457 : vector<1x128xf32> to vector<10x128xf32>
    %459 = arith.mulf %23, %458 : vector<10x128xf32>
    %460 = arith.addf %456, %459 : vector<10x128xf32>
    %461 = vector.extract_strided_slice %382 {offsets = [0, 0], sizes = [1, 128], strides = [1, 1]} : vector<10x128xf32> to vector<1x128xf32>
    %462 = vector.broadcast %461 : vector<1x128xf32> to vector<10x128xf32>
    %463 = arith.mulf %26, %462 : vector<10x128xf32>
    %464 = vector.extract_strided_slice %382 {offsets = [1, 0], sizes = [1, 128], strides = [1, 1]} : vector<10x128xf32> to vector<1x128xf32>
    %465 = vector.broadcast %464 : vector<1x128xf32> to vector<10x128xf32>
    %466 = arith.mulf %29, %465 : vector<10x128xf32>
    %467 = vector.extract_strided_slice %382 {offsets = [2, 0], sizes = [1, 128], strides = [1, 1]} : vector<10x128xf32> to vector<1x128xf32>
    %468 = vector.broadcast %467 : vector<1x128xf32> to vector<10x128xf32>
    %469 = arith.mulf %32, %468 : vector<10x128xf32>
    %470 = vector.extract_strided_slice %382 {offsets = [3, 0], sizes = [1, 128], strides = [1, 1]} : vector<10x128xf32> to vector<1x128xf32>
    %471 = vector.broadcast %470 : vector<1x128xf32> to vector<10x128xf32>
    %472 = arith.mulf %35, %471 : vector<10x128xf32>
    %473 = vector.extract_strided_slice %382 {offsets = [4, 0], sizes = [1, 128], strides = [1, 1]} : vector<10x128xf32> to vector<1x128xf32>
    %474 = vector.broadcast %473 : vector<1x128xf32> to vector<10x128xf32>
    %475 = arith.mulf %38, %474 : vector<10x128xf32>
    %476 = arith.addf %463, %475 : vector<10x128xf32>
    %477 = vector.extract_strided_slice %382 {offsets = [5, 0], sizes = [1, 128], strides = [1, 1]} : vector<10x128xf32> to vector<1x128xf32>
    %478 = vector.broadcast %477 : vector<1x128xf32> to vector<10x128xf32>
    %479 = arith.mulf %41, %478 : vector<10x128xf32>
    %480 = arith.addf %466, %479 : vector<10x128xf32>
    %481 = vector.extract_strided_slice %382 {offsets = [6, 0], sizes = [1, 128], strides = [1, 1]} : vector<10x128xf32> to vector<1x128xf32>
    %482 = vector.broadcast %481 : vector<1x128xf32> to vector<10x128xf32>
    %483 = arith.mulf %44, %482 : vector<10x128xf32>
    %484 = arith.addf %469, %483 : vector<10x128xf32>
    %485 = vector.extract_strided_slice %382 {offsets = [7, 0], sizes = [1, 128], strides = [1, 1]} : vector<10x128xf32> to vector<1x128xf32>
    %486 = vector.broadcast %485 : vector<1x128xf32> to vector<10x128xf32>
    %487 = arith.mulf %47, %486 : vector<10x128xf32>
    %488 = arith.addf %472, %487 : vector<10x128xf32>
    %489 = vector.extract_strided_slice %382 {offsets = [8, 0], sizes = [1, 128], strides = [1, 1]} : vector<10x128xf32> to vector<1x128xf32>
    %490 = vector.broadcast %489 : vector<1x128xf32> to vector<10x128xf32>
    %491 = arith.mulf %50, %490 : vector<10x128xf32>
    %492 = arith.addf %476, %491 : vector<10x128xf32>
    %493 = vector.extract_strided_slice %382 {offsets = [9, 0], sizes = [1, 128], strides = [1, 1]} : vector<10x128xf32> to vector<1x128xf32>
    %494 = vector.broadcast %493 : vector<1x128xf32> to vector<10x128xf32>
    %495 = arith.mulf %53, %494 : vector<10x128xf32>
    %496 = arith.addf %480, %495 : vector<10x128xf32>
    %497 = arith.addf %460, %492 : vector<10x128xf32>
    %498 = arith.addf %497, %496 : vector<10x128xf32>
    %499 = arith.addf %498, %484 : vector<10x128xf32>
    %500 = arith.addf %499, %488 : vector<10x128xf32>
    %501 = math.tanh %500 : vector<10x128xf32>
    %502 = vector.extract_strided_slice %501 {offsets = [0, 0], sizes = [1, 128], strides = [1, 1]} : vector<10x128xf32> to vector<1x128xf32>
    %503 = vector.broadcast %502 : vector<1x128xf32> to vector<2x128xf32>
    %504 = arith.mulf %56, %503 : vector<2x128xf32>
    %505 = arith.addf %11, %504 : vector<2x128xf32>
    %506 = vector.extract_strided_slice %501 {offsets = [1, 0], sizes = [1, 128], strides = [1, 1]} : vector<10x128xf32> to vector<1x128xf32>
    %507 = vector.broadcast %506 : vector<1x128xf32> to vector<2x128xf32>
    %508 = arith.mulf %59, %507 : vector<2x128xf32>
    %509 = arith.addf %505, %508 : vector<2x128xf32>
    %510 = vector.extract_strided_slice %501 {offsets = [2, 0], sizes = [1, 128], strides = [1, 1]} : vector<10x128xf32> to vector<1x128xf32>
    %511 = vector.broadcast %510 : vector<1x128xf32> to vector<2x128xf32>
    %512 = arith.mulf %62, %511 : vector<2x128xf32>
    %513 = arith.addf %509, %512 : vector<2x128xf32>
    %514 = vector.extract_strided_slice %501 {offsets = [3, 0], sizes = [1, 128], strides = [1, 1]} : vector<10x128xf32> to vector<1x128xf32>
    %515 = vector.broadcast %514 : vector<1x128xf32> to vector<2x128xf32>
    %516 = arith.mulf %65, %515 : vector<2x128xf32>
    %517 = arith.addf %513, %516 : vector<2x128xf32>
    %518 = vector.extract_strided_slice %501 {offsets = [4, 0], sizes = [1, 128], strides = [1, 1]} : vector<10x128xf32> to vector<1x128xf32>
    %519 = vector.broadcast %518 : vector<1x128xf32> to vector<2x128xf32>
    %520 = arith.mulf %68, %519 : vector<2x128xf32>
    %521 = arith.addf %517, %520 : vector<2x128xf32>
    %522 = vector.extract_strided_slice %501 {offsets = [5, 0], sizes = [1, 128], strides = [1, 1]} : vector<10x128xf32> to vector<1x128xf32>
    %523 = vector.broadcast %522 : vector<1x128xf32> to vector<2x128xf32>
    %524 = arith.mulf %71, %523 : vector<2x128xf32>
    %525 = arith.addf %521, %524 : vector<2x128xf32>
    %526 = vector.extract_strided_slice %501 {offsets = [6, 0], sizes = [1, 128], strides = [1, 1]} : vector<10x128xf32> to vector<1x128xf32>
    %527 = vector.broadcast %526 : vector<1x128xf32> to vector<2x128xf32>
    %528 = arith.mulf %74, %527 : vector<2x128xf32>
    %529 = arith.addf %525, %528 : vector<2x128xf32>
    %530 = vector.extract_strided_slice %501 {offsets = [7, 0], sizes = [1, 128], strides = [1, 1]} : vector<10x128xf32> to vector<1x128xf32>
    %531 = vector.broadcast %530 : vector<1x128xf32> to vector<2x128xf32>
    %532 = arith.mulf %77, %531 : vector<2x128xf32>
    %533 = arith.addf %529, %532 : vector<2x128xf32>
    %534 = vector.extract_strided_slice %501 {offsets = [8, 0], sizes = [1, 128], strides = [1, 1]} : vector<10x128xf32> to vector<1x128xf32>
    %535 = vector.broadcast %534 : vector<1x128xf32> to vector<2x128xf32>
    %536 = arith.mulf %80, %535 : vector<2x128xf32>
    %537 = arith.addf %533, %536 : vector<2x128xf32>
    %538 = vector.extract_strided_slice %501 {offsets = [9, 0], sizes = [1, 128], strides = [1, 1]} : vector<10x128xf32> to vector<1x128xf32>
    %539 = vector.broadcast %538 : vector<1x128xf32> to vector<2x128xf32>
    %540 = arith.mulf %83, %539 : vector<2x128xf32>
    %541 = arith.addf %537, %540 : vector<2x128xf32>
    %542 = vector.extract_strided_slice %541 {offsets = [0, 0], sizes = [1, 128], strides = [1, 1]} : vector<2x128xf32> to vector<1x128xf32>
    %543 = vector.extract_strided_slice %541 {offsets = [1, 0], sizes = [1, 128], strides = [1, 1]} : vector<2x128xf32> to vector<1x128xf32>
    %544 = arith.index_cast %c3_i32 : i32 to index
    %c0_43 = arith.constant 0 : index
    %c0_44 = arith.constant 0 : index
    %545 = vector.load %arg3[%544, %c0_43, %c0_44] : memref<8x1x128xf32, #tpu.memory_space<vmem>>, vector<1x1x128xf32>
    %546 = vector.shape_cast %545 : vector<1x1x128xf32> to vector<1x128xf32>
    %547 = arith.mulf %543, %546 : vector<1x128xf32>
    %548 = arith.addf %542, %547 : vector<1x128xf32>
    %549 = arith.index_cast %c3_i32 : i32 to index
    %c0_45 = arith.constant 0 : index
    %c0_46 = arith.constant 0 : index
    %550 = vector.load %arg9[%549, %c0_45, %c0_46] : memref<8x3x128xf32, #tpu.memory_space<vmem>>, vector<1x1x128xf32>
    %551 = vector.shape_cast %550 : vector<1x1x128xf32> to vector<1x128xf32>
    %552 = vector.shape_cast %542 : vector<1x128xf32> to vector<1x1x128xf32>
    tpu.vector_store %arg9[%549, %c0_45, %c0_46], %552 {strides = array<i32>} : memref<8x3x128xf32, #tpu.memory_space<vmem>>, vector<1x1x128xf32>,
    %553 = arith.index_cast %c3_i32 : i32 to index
    %c1_47 = arith.constant 1 : index
    %c0_48 = arith.constant 0 : index
    %554 = vector.load %arg9[%553, %c1_47, %c0_48] : memref<8x3x128xf32, #tpu.memory_space<vmem>>, vector<1x1x128xf32>
    %555 = vector.shape_cast %554 : vector<1x1x128xf32> to vector<1x128xf32>
    %556 = vector.shape_cast %543 : vector<1x128xf32> to vector<1x1x128xf32>
    tpu.vector_store %arg9[%553, %c1_47, %c0_48], %556 {strides = array<i32>} : memref<8x3x128xf32, #tpu.memory_space<vmem>>, vector<1x1x128xf32>,
    %557 = arith.index_cast %c3_i32 : i32 to index
    %c2_49 = arith.constant 2 : index
    %c0_50 = arith.constant 0 : index
    %558 = vector.load %arg9[%557, %c2_49, %c0_50] : memref<8x3x128xf32, #tpu.memory_space<vmem>>, vector<1x1x128xf32>
    %559 = vector.shape_cast %558 : vector<1x1x128xf32> to vector<1x128xf32>
    %560 = vector.shape_cast %548 : vector<1x128xf32> to vector<1x1x128xf32>
    tpu.vector_store %arg9[%557, %c2_49, %c0_50], %560 {strides = array<i32>} : memref<8x3x128xf32, #tpu.memory_space<vmem>>, vector<1x1x128xf32>,
    %c4_i32 = arith.constant 4 : i32
    %561 = arith.index_cast %c4_i32 : i32 to index
    %c0_51 = arith.constant 0 : index
    %c0_52 = arith.constant 0 : index
    %562 = vector.load %arg2[%561, %c0_51, %c0_52] : memref<8x4x128xf32, #tpu.memory_space<vmem>>, vector<1x4x128xf32>
    %563 = vector.shape_cast %562 : vector<1x4x128xf32> to vector<4x128xf32>
    %564 = vector.extract_strided_slice %563 {offsets = [0, 0], sizes = [1, 128], strides = [1, 1]} : vector<4x128xf32> to vector<1x128xf32>
    %565 = vector.broadcast %564 : vector<1x128xf32> to vector<10x128xf32>
    %566 = arith.mulf %14, %565 : vector<10x128xf32>
    %567 = arith.addf %8, %566 : vector<10x128xf32>
    %568 = vector.extract_strided_slice %563 {offsets = [1, 0], sizes = [1, 128], strides = [1, 1]} : vector<4x128xf32> to vector<1x128xf32>
    %569 = vector.broadcast %568 : vector<1x128xf32> to vector<10x128xf32>
    %570 = arith.mulf %17, %569 : vector<10x128xf32>
    %571 = arith.addf %567, %570 : vector<10x128xf32>
    %572 = vector.extract_strided_slice %563 {offsets = [2, 0], sizes = [1, 128], strides = [1, 1]} : vector<4x128xf32> to vector<1x128xf32>
    %573 = vector.broadcast %572 : vector<1x128xf32> to vector<10x128xf32>
    %574 = arith.mulf %20, %573 : vector<10x128xf32>
    %575 = arith.addf %571, %574 : vector<10x128xf32>
    %576 = vector.extract_strided_slice %563 {offsets = [3, 0], sizes = [1, 128], strides = [1, 1]} : vector<4x128xf32> to vector<1x128xf32>
    %577 = vector.broadcast %576 : vector<1x128xf32> to vector<10x128xf32>
    %578 = arith.mulf %23, %577 : vector<10x128xf32>
    %579 = arith.addf %575, %578 : vector<10x128xf32>
    %580 = vector.extract_strided_slice %501 {offsets = [0, 0], sizes = [1, 128], strides = [1, 1]} : vector<10x128xf32> to vector<1x128xf32>
    %581 = vector.broadcast %580 : vector<1x128xf32> to vector<10x128xf32>
    %582 = arith.mulf %26, %581 : vector<10x128xf32>
    %583 = vector.extract_strided_slice %501 {offsets = [1, 0], sizes = [1, 128], strides = [1, 1]} : vector<10x128xf32> to vector<1x128xf32>
    %584 = vector.broadcast %583 : vector<1x128xf32> to vector<10x128xf32>
    %585 = arith.mulf %29, %584 : vector<10x128xf32>
    %586 = vector.extract_strided_slice %501 {offsets = [2, 0], sizes = [1, 128], strides = [1, 1]} : vector<10x128xf32> to vector<1x128xf32>
    %587 = vector.broadcast %586 : vector<1x128xf32> to vector<10x128xf32>
    %588 = arith.mulf %32, %587 : vector<10x128xf32>
    %589 = vector.extract_strided_slice %501 {offsets = [3, 0], sizes = [1, 128], strides = [1, 1]} : vector<10x128xf32> to vector<1x128xf32>
    %590 = vector.broadcast %589 : vector<1x128xf32> to vector<10x128xf32>
    %591 = arith.mulf %35, %590 : vector<10x128xf32>
    %592 = vector.extract_strided_slice %501 {offsets = [4, 0], sizes = [1, 128], strides = [1, 1]} : vector<10x128xf32> to vector<1x128xf32>
    %593 = vector.broadcast %592 : vector<1x128xf32> to vector<10x128xf32>
    %594 = arith.mulf %38, %593 : vector<10x128xf32>
    %595 = arith.addf %582, %594 : vector<10x128xf32>
    %596 = vector.extract_strided_slice %501 {offsets = [5, 0], sizes = [1, 128], strides = [1, 1]} : vector<10x128xf32> to vector<1x128xf32>
    %597 = vector.broadcast %596 : vector<1x128xf32> to vector<10x128xf32>
    %598 = arith.mulf %41, %597 : vector<10x128xf32>
    %599 = arith.addf %585, %598 : vector<10x128xf32>
    %600 = vector.extract_strided_slice %501 {offsets = [6, 0], sizes = [1, 128], strides = [1, 1]} : vector<10x128xf32> to vector<1x128xf32>
    %601 = vector.broadcast %600 : vector<1x128xf32> to vector<10x128xf32>
    %602 = arith.mulf %44, %601 : vector<10x128xf32>
    %603 = arith.addf %588, %602 : vector<10x128xf32>
    %604 = vector.extract_strided_slice %501 {offsets = [7, 0], sizes = [1, 128], strides = [1, 1]} : vector<10x128xf32> to vector<1x128xf32>
    %605 = vector.broadcast %604 : vector<1x128xf32> to vector<10x128xf32>
    %606 = arith.mulf %47, %605 : vector<10x128xf32>
    %607 = arith.addf %591, %606 : vector<10x128xf32>
    %608 = vector.extract_strided_slice %501 {offsets = [8, 0], sizes = [1, 128], strides = [1, 1]} : vector<10x128xf32> to vector<1x128xf32>
    %609 = vector.broadcast %608 : vector<1x128xf32> to vector<10x128xf32>
    %610 = arith.mulf %50, %609 : vector<10x128xf32>
    %611 = arith.addf %595, %610 : vector<10x128xf32>
    %612 = vector.extract_strided_slice %501 {offsets = [9, 0], sizes = [1, 128], strides = [1, 1]} : vector<10x128xf32> to vector<1x128xf32>
    %613 = vector.broadcast %612 : vector<1x128xf32> to vector<10x128xf32>
    %614 = arith.mulf %53, %613 : vector<10x128xf32>
    %615 = arith.addf %599, %614 : vector<10x128xf32>
    %616 = arith.addf %579, %611 : vector<10x128xf32>
    %617 = arith.addf %616, %615 : vector<10x128xf32>
    %618 = arith.addf %617, %603 : vector<10x128xf32>
    %619 = arith.addf %618, %607 : vector<10x128xf32>
    %620 = math.tanh %619 : vector<10x128xf32>
    %621 = vector.extract_strided_slice %620 {offsets = [0, 0], sizes = [1, 128], strides = [1, 1]} : vector<10x128xf32> to vector<1x128xf32>
    %622 = vector.broadcast %621 : vector<1x128xf32> to vector<2x128xf32>
    %623 = arith.mulf %56, %622 : vector<2x128xf32>
    %624 = arith.addf %11, %623 : vector<2x128xf32>
    %625 = vector.extract_strided_slice %620 {offsets = [1, 0], sizes = [1, 128], strides = [1, 1]} : vector<10x128xf32> to vector<1x128xf32>
    %626 = vector.broadcast %625 : vector<1x128xf32> to vector<2x128xf32>
    %627 = arith.mulf %59, %626 : vector<2x128xf32>
    %628 = arith.addf %624, %627 : vector<2x128xf32>
    %629 = vector.extract_strided_slice %620 {offsets = [2, 0], sizes = [1, 128], strides = [1, 1]} : vector<10x128xf32> to vector<1x128xf32>
    %630 = vector.broadcast %629 : vector<1x128xf32> to vector<2x128xf32>
    %631 = arith.mulf %62, %630 : vector<2x128xf32>
    %632 = arith.addf %628, %631 : vector<2x128xf32>
    %633 = vector.extract_strided_slice %620 {offsets = [3, 0], sizes = [1, 128], strides = [1, 1]} : vector<10x128xf32> to vector<1x128xf32>
    %634 = vector.broadcast %633 : vector<1x128xf32> to vector<2x128xf32>
    %635 = arith.mulf %65, %634 : vector<2x128xf32>
    %636 = arith.addf %632, %635 : vector<2x128xf32>
    %637 = vector.extract_strided_slice %620 {offsets = [4, 0], sizes = [1, 128], strides = [1, 1]} : vector<10x128xf32> to vector<1x128xf32>
    %638 = vector.broadcast %637 : vector<1x128xf32> to vector<2x128xf32>
    %639 = arith.mulf %68, %638 : vector<2x128xf32>
    %640 = arith.addf %636, %639 : vector<2x128xf32>
    %641 = vector.extract_strided_slice %620 {offsets = [5, 0], sizes = [1, 128], strides = [1, 1]} : vector<10x128xf32> to vector<1x128xf32>
    %642 = vector.broadcast %641 : vector<1x128xf32> to vector<2x128xf32>
    %643 = arith.mulf %71, %642 : vector<2x128xf32>
    %644 = arith.addf %640, %643 : vector<2x128xf32>
    %645 = vector.extract_strided_slice %620 {offsets = [6, 0], sizes = [1, 128], strides = [1, 1]} : vector<10x128xf32> to vector<1x128xf32>
    %646 = vector.broadcast %645 : vector<1x128xf32> to vector<2x128xf32>
    %647 = arith.mulf %74, %646 : vector<2x128xf32>
    %648 = arith.addf %644, %647 : vector<2x128xf32>
    %649 = vector.extract_strided_slice %620 {offsets = [7, 0], sizes = [1, 128], strides = [1, 1]} : vector<10x128xf32> to vector<1x128xf32>
    %650 = vector.broadcast %649 : vector<1x128xf32> to vector<2x128xf32>
    %651 = arith.mulf %77, %650 : vector<2x128xf32>
    %652 = arith.addf %648, %651 : vector<2x128xf32>
    %653 = vector.extract_strided_slice %620 {offsets = [8, 0], sizes = [1, 128], strides = [1, 1]} : vector<10x128xf32> to vector<1x128xf32>
    %654 = vector.broadcast %653 : vector<1x128xf32> to vector<2x128xf32>
    %655 = arith.mulf %80, %654 : vector<2x128xf32>
    %656 = arith.addf %652, %655 : vector<2x128xf32>
    %657 = vector.extract_strided_slice %620 {offsets = [9, 0], sizes = [1, 128], strides = [1, 1]} : vector<10x128xf32> to vector<1x128xf32>
    %658 = vector.broadcast %657 : vector<1x128xf32> to vector<2x128xf32>
    %659 = arith.mulf %83, %658 : vector<2x128xf32>
    %660 = arith.addf %656, %659 : vector<2x128xf32>
    %661 = vector.extract_strided_slice %660 {offsets = [0, 0], sizes = [1, 128], strides = [1, 1]} : vector<2x128xf32> to vector<1x128xf32>
    %662 = vector.extract_strided_slice %660 {offsets = [1, 0], sizes = [1, 128], strides = [1, 1]} : vector<2x128xf32> to vector<1x128xf32>
    %663 = arith.index_cast %c4_i32 : i32 to index
    %c0_53 = arith.constant 0 : index
    %c0_54 = arith.constant 0 : index
    %664 = vector.load %arg3[%663, %c0_53, %c0_54] : memref<8x1x128xf32, #tpu.memory_space<vmem>>, vector<1x1x128xf32>
    %665 = vector.shape_cast %664 : vector<1x1x128xf32> to vector<1x128xf32>
    %666 = arith.mulf %662, %665 : vector<1x128xf32>
    %667 = arith.addf %661, %666 : vector<1x128xf32>
    %668 = arith.index_cast %c4_i32 : i32 to index
    %c0_55 = arith.constant 0 : index
    %c0_56 = arith.constant 0 : index
    %669 = vector.load %arg9[%668, %c0_55, %c0_56] : memref<8x3x128xf32, #tpu.memory_space<vmem>>, vector<1x1x128xf32>
    %670 = vector.shape_cast %669 : vector<1x1x128xf32> to vector<1x128xf32>
    %671 = vector.shape_cast %661 : vector<1x128xf32> to vector<1x1x128xf32>
    tpu.vector_store %arg9[%668, %c0_55, %c0_56], %671 {strides = array<i32>} : memref<8x3x128xf32, #tpu.memory_space<vmem>>, vector<1x1x128xf32>,
    %672 = arith.index_cast %c4_i32 : i32 to index
    %c1_57 = arith.constant 1 : index
    %c0_58 = arith.constant 0 : index
    %673 = vector.load %arg9[%672, %c1_57, %c0_58] : memref<8x3x128xf32, #tpu.memory_space<vmem>>, vector<1x1x128xf32>
    %674 = vector.shape_cast %673 : vector<1x1x128xf32> to vector<1x128xf32>
    %675 = vector.shape_cast %662 : vector<1x128xf32> to vector<1x1x128xf32>
    tpu.vector_store %arg9[%672, %c1_57, %c0_58], %675 {strides = array<i32>} : memref<8x3x128xf32, #tpu.memory_space<vmem>>, vector<1x1x128xf32>,
    %676 = arith.index_cast %c4_i32 : i32 to index
    %c2_59 = arith.constant 2 : index
    %c0_60 = arith.constant 0 : index
    %677 = vector.load %arg9[%676, %c2_59, %c0_60] : memref<8x3x128xf32, #tpu.memory_space<vmem>>, vector<1x1x128xf32>
    %678 = vector.shape_cast %677 : vector<1x1x128xf32> to vector<1x128xf32>
    %679 = vector.shape_cast %667 : vector<1x128xf32> to vector<1x1x128xf32>
    tpu.vector_store %arg9[%676, %c2_59, %c0_60], %679 {strides = array<i32>} : memref<8x3x128xf32, #tpu.memory_space<vmem>>, vector<1x1x128xf32>,
    %c5_i32 = arith.constant 5 : i32
    %680 = arith.index_cast %c5_i32 : i32 to index
    %c0_61 = arith.constant 0 : index
    %c0_62 = arith.constant 0 : index
    %681 = vector.load %arg2[%680, %c0_61, %c0_62] : memref<8x4x128xf32, #tpu.memory_space<vmem>>, vector<1x4x128xf32>
    %682 = vector.shape_cast %681 : vector<1x4x128xf32> to vector<4x128xf32>
    %683 = vector.extract_strided_slice %682 {offsets = [0, 0], sizes = [1, 128], strides = [1, 1]} : vector<4x128xf32> to vector<1x128xf32>
    %684 = vector.broadcast %683 : vector<1x128xf32> to vector<10x128xf32>
    %685 = arith.mulf %14, %684 : vector<10x128xf32>
    %686 = arith.addf %8, %685 : vector<10x128xf32>
    %687 = vector.extract_strided_slice %682 {offsets = [1, 0], sizes = [1, 128], strides = [1, 1]} : vector<4x128xf32> to vector<1x128xf32>
    %688 = vector.broadcast %687 : vector<1x128xf32> to vector<10x128xf32>
    %689 = arith.mulf %17, %688 : vector<10x128xf32>
    %690 = arith.addf %686, %689 : vector<10x128xf32>
    %691 = vector.extract_strided_slice %682 {offsets = [2, 0], sizes = [1, 128], strides = [1, 1]} : vector<4x128xf32> to vector<1x128xf32>
    %692 = vector.broadcast %691 : vector<1x128xf32> to vector<10x128xf32>
    %693 = arith.mulf %20, %692 : vector<10x128xf32>
    %694 = arith.addf %690, %693 : vector<10x128xf32>
    %695 = vector.extract_strided_slice %682 {offsets = [3, 0], sizes = [1, 128], strides = [1, 1]} : vector<4x128xf32> to vector<1x128xf32>
    %696 = vector.broadcast %695 : vector<1x128xf32> to vector<10x128xf32>
    %697 = arith.mulf %23, %696 : vector<10x128xf32>
    %698 = arith.addf %694, %697 : vector<10x128xf32>
    %699 = vector.extract_strided_slice %620 {offsets = [0, 0], sizes = [1, 128], strides = [1, 1]} : vector<10x128xf32> to vector<1x128xf32>
    %700 = vector.broadcast %699 : vector<1x128xf32> to vector<10x128xf32>
    %701 = arith.mulf %26, %700 : vector<10x128xf32>
    %702 = vector.extract_strided_slice %620 {offsets = [1, 0], sizes = [1, 128], strides = [1, 1]} : vector<10x128xf32> to vector<1x128xf32>
    %703 = vector.broadcast %702 : vector<1x128xf32> to vector<10x128xf32>
    %704 = arith.mulf %29, %703 : vector<10x128xf32>
    %705 = vector.extract_strided_slice %620 {offsets = [2, 0], sizes = [1, 128], strides = [1, 1]} : vector<10x128xf32> to vector<1x128xf32>
    %706 = vector.broadcast %705 : vector<1x128xf32> to vector<10x128xf32>
    %707 = arith.mulf %32, %706 : vector<10x128xf32>
    %708 = vector.extract_strided_slice %620 {offsets = [3, 0], sizes = [1, 128], strides = [1, 1]} : vector<10x128xf32> to vector<1x128xf32>
    %709 = vector.broadcast %708 : vector<1x128xf32> to vector<10x128xf32>
    %710 = arith.mulf %35, %709 : vector<10x128xf32>
    %711 = vector.extract_strided_slice %620 {offsets = [4, 0], sizes = [1, 128], strides = [1, 1]} : vector<10x128xf32> to vector<1x128xf32>
    %712 = vector.broadcast %711 : vector<1x128xf32> to vector<10x128xf32>
    %713 = arith.mulf %38, %712 : vector<10x128xf32>
    %714 = arith.addf %701, %713 : vector<10x128xf32>
    %715 = vector.extract_strided_slice %620 {offsets = [5, 0], sizes = [1, 128], strides = [1, 1]} : vector<10x128xf32> to vector<1x128xf32>
    %716 = vector.broadcast %715 : vector<1x128xf32> to vector<10x128xf32>
    %717 = arith.mulf %41, %716 : vector<10x128xf32>
    %718 = arith.addf %704, %717 : vector<10x128xf32>
    %719 = vector.extract_strided_slice %620 {offsets = [6, 0], sizes = [1, 128], strides = [1, 1]} : vector<10x128xf32> to vector<1x128xf32>
    %720 = vector.broadcast %719 : vector<1x128xf32> to vector<10x128xf32>
    %721 = arith.mulf %44, %720 : vector<10x128xf32>
    %722 = arith.addf %707, %721 : vector<10x128xf32>
    %723 = vector.extract_strided_slice %620 {offsets = [7, 0], sizes = [1, 128], strides = [1, 1]} : vector<10x128xf32> to vector<1x128xf32>
    %724 = vector.broadcast %723 : vector<1x128xf32> to vector<10x128xf32>
    %725 = arith.mulf %47, %724 : vector<10x128xf32>
    %726 = arith.addf %710, %725 : vector<10x128xf32>
    %727 = vector.extract_strided_slice %620 {offsets = [8, 0], sizes = [1, 128], strides = [1, 1]} : vector<10x128xf32> to vector<1x128xf32>
    %728 = vector.broadcast %727 : vector<1x128xf32> to vector<10x128xf32>
    %729 = arith.mulf %50, %728 : vector<10x128xf32>
    %730 = arith.addf %714, %729 : vector<10x128xf32>
    %731 = vector.extract_strided_slice %620 {offsets = [9, 0], sizes = [1, 128], strides = [1, 1]} : vector<10x128xf32> to vector<1x128xf32>
    %732 = vector.broadcast %731 : vector<1x128xf32> to vector<10x128xf32>
    %733 = arith.mulf %53, %732 : vector<10x128xf32>
    %734 = arith.addf %718, %733 : vector<10x128xf32>
    %735 = arith.addf %698, %730 : vector<10x128xf32>
    %736 = arith.addf %735, %734 : vector<10x128xf32>
    %737 = arith.addf %736, %722 : vector<10x128xf32>
    %738 = arith.addf %737, %726 : vector<10x128xf32>
    %739 = math.tanh %738 : vector<10x128xf32>
    %740 = vector.extract_strided_slice %739 {offsets = [0, 0], sizes = [1, 128], strides = [1, 1]} : vector<10x128xf32> to vector<1x128xf32>
    %741 = vector.broadcast %740 : vector<1x128xf32> to vector<2x128xf32>
    %742 = arith.mulf %56, %741 : vector<2x128xf32>
    %743 = arith.addf %11, %742 : vector<2x128xf32>
    %744 = vector.extract_strided_slice %739 {offsets = [1, 0], sizes = [1, 128], strides = [1, 1]} : vector<10x128xf32> to vector<1x128xf32>
    %745 = vector.broadcast %744 : vector<1x128xf32> to vector<2x128xf32>
    %746 = arith.mulf %59, %745 : vector<2x128xf32>
    %747 = arith.addf %743, %746 : vector<2x128xf32>
    %748 = vector.extract_strided_slice %739 {offsets = [2, 0], sizes = [1, 128], strides = [1, 1]} : vector<10x128xf32> to vector<1x128xf32>
    %749 = vector.broadcast %748 : vector<1x128xf32> to vector<2x128xf32>
    %750 = arith.mulf %62, %749 : vector<2x128xf32>
    %751 = arith.addf %747, %750 : vector<2x128xf32>
    %752 = vector.extract_strided_slice %739 {offsets = [3, 0], sizes = [1, 128], strides = [1, 1]} : vector<10x128xf32> to vector<1x128xf32>
    %753 = vector.broadcast %752 : vector<1x128xf32> to vector<2x128xf32>
    %754 = arith.mulf %65, %753 : vector<2x128xf32>
    %755 = arith.addf %751, %754 : vector<2x128xf32>
    %756 = vector.extract_strided_slice %739 {offsets = [4, 0], sizes = [1, 128], strides = [1, 1]} : vector<10x128xf32> to vector<1x128xf32>
    %757 = vector.broadcast %756 : vector<1x128xf32> to vector<2x128xf32>
    %758 = arith.mulf %68, %757 : vector<2x128xf32>
    %759 = arith.addf %755, %758 : vector<2x128xf32>
    %760 = vector.extract_strided_slice %739 {offsets = [5, 0], sizes = [1, 128], strides = [1, 1]} : vector<10x128xf32> to vector<1x128xf32>
    %761 = vector.broadcast %760 : vector<1x128xf32> to vector<2x128xf32>
    %762 = arith.mulf %71, %761 : vector<2x128xf32>
    %763 = arith.addf %759, %762 : vector<2x128xf32>
    %764 = vector.extract_strided_slice %739 {offsets = [6, 0], sizes = [1, 128], strides = [1, 1]} : vector<10x128xf32> to vector<1x128xf32>
    %765 = vector.broadcast %764 : vector<1x128xf32> to vector<2x128xf32>
    %766 = arith.mulf %74, %765 : vector<2x128xf32>
    %767 = arith.addf %763, %766 : vector<2x128xf32>
    %768 = vector.extract_strided_slice %739 {offsets = [7, 0], sizes = [1, 128], strides = [1, 1]} : vector<10x128xf32> to vector<1x128xf32>
    %769 = vector.broadcast %768 : vector<1x128xf32> to vector<2x128xf32>
    %770 = arith.mulf %77, %769 : vector<2x128xf32>
    %771 = arith.addf %767, %770 : vector<2x128xf32>
    %772 = vector.extract_strided_slice %739 {offsets = [8, 0], sizes = [1, 128], strides = [1, 1]} : vector<10x128xf32> to vector<1x128xf32>
    %773 = vector.broadcast %772 : vector<1x128xf32> to vector<2x128xf32>
    %774 = arith.mulf %80, %773 : vector<2x128xf32>
    %775 = arith.addf %771, %774 : vector<2x128xf32>
    %776 = vector.extract_strided_slice %739 {offsets = [9, 0], sizes = [1, 128], strides = [1, 1]} : vector<10x128xf32> to vector<1x128xf32>
    %777 = vector.broadcast %776 : vector<1x128xf32> to vector<2x128xf32>
    %778 = arith.mulf %83, %777 : vector<2x128xf32>
    %779 = arith.addf %775, %778 : vector<2x128xf32>
    %780 = vector.extract_strided_slice %779 {offsets = [0, 0], sizes = [1, 128], strides = [1, 1]} : vector<2x128xf32> to vector<1x128xf32>
    %781 = vector.extract_strided_slice %779 {offsets = [1, 0], sizes = [1, 128], strides = [1, 1]} : vector<2x128xf32> to vector<1x128xf32>
    %782 = arith.index_cast %c5_i32 : i32 to index
    %c0_63 = arith.constant 0 : index
    %c0_64 = arith.constant 0 : index
    %783 = vector.load %arg3[%782, %c0_63, %c0_64] : memref<8x1x128xf32, #tpu.memory_space<vmem>>, vector<1x1x128xf32>
    %784 = vector.shape_cast %783 : vector<1x1x128xf32> to vector<1x128xf32>
    %785 = arith.mulf %781, %784 : vector<1x128xf32>
    %786 = arith.addf %780, %785 : vector<1x128xf32>
    %787 = arith.index_cast %c5_i32 : i32 to index
    %c0_65 = arith.constant 0 : index
    %c0_66 = arith.constant 0 : index
    %788 = vector.load %arg9[%787, %c0_65, %c0_66] : memref<8x3x128xf32, #tpu.memory_space<vmem>>, vector<1x1x128xf32>
    %789 = vector.shape_cast %788 : vector<1x1x128xf32> to vector<1x128xf32>
    %790 = vector.shape_cast %780 : vector<1x128xf32> to vector<1x1x128xf32>
    tpu.vector_store %arg9[%787, %c0_65, %c0_66], %790 {strides = array<i32>} : memref<8x3x128xf32, #tpu.memory_space<vmem>>, vector<1x1x128xf32>,
    %791 = arith.index_cast %c5_i32 : i32 to index
    %c1_67 = arith.constant 1 : index
    %c0_68 = arith.constant 0 : index
    %792 = vector.load %arg9[%791, %c1_67, %c0_68] : memref<8x3x128xf32, #tpu.memory_space<vmem>>, vector<1x1x128xf32>
    %793 = vector.shape_cast %792 : vector<1x1x128xf32> to vector<1x128xf32>
    %794 = vector.shape_cast %781 : vector<1x128xf32> to vector<1x1x128xf32>
    tpu.vector_store %arg9[%791, %c1_67, %c0_68], %794 {strides = array<i32>} : memref<8x3x128xf32, #tpu.memory_space<vmem>>, vector<1x1x128xf32>,
    %795 = arith.index_cast %c5_i32 : i32 to index
    %c2_69 = arith.constant 2 : index
    %c0_70 = arith.constant 0 : index
    %796 = vector.load %arg9[%795, %c2_69, %c0_70] : memref<8x3x128xf32, #tpu.memory_space<vmem>>, vector<1x1x128xf32>
    %797 = vector.shape_cast %796 : vector<1x1x128xf32> to vector<1x128xf32>
    %798 = vector.shape_cast %786 : vector<1x128xf32> to vector<1x1x128xf32>
    tpu.vector_store %arg9[%795, %c2_69, %c0_70], %798 {strides = array<i32>} : memref<8x3x128xf32, #tpu.memory_space<vmem>>, vector<1x1x128xf32>,
    %c6_i32 = arith.constant 6 : i32
    %799 = arith.index_cast %c6_i32 : i32 to index
    %c0_71 = arith.constant 0 : index
    %c0_72 = arith.constant 0 : index
    %800 = vector.load %arg2[%799, %c0_71, %c0_72] : memref<8x4x128xf32, #tpu.memory_space<vmem>>, vector<1x4x128xf32>
    %801 = vector.shape_cast %800 : vector<1x4x128xf32> to vector<4x128xf32>
    %802 = vector.extract_strided_slice %801 {offsets = [0, 0], sizes = [1, 128], strides = [1, 1]} : vector<4x128xf32> to vector<1x128xf32>
    %803 = vector.broadcast %802 : vector<1x128xf32> to vector<10x128xf32>
    %804 = arith.mulf %14, %803 : vector<10x128xf32>
    %805 = arith.addf %8, %804 : vector<10x128xf32>
    %806 = vector.extract_strided_slice %801 {offsets = [1, 0], sizes = [1, 128], strides = [1, 1]} : vector<4x128xf32> to vector<1x128xf32>
    %807 = vector.broadcast %806 : vector<1x128xf32> to vector<10x128xf32>
    %808 = arith.mulf %17, %807 : vector<10x128xf32>
    %809 = arith.addf %805, %808 : vector<10x128xf32>
    %810 = vector.extract_strided_slice %801 {offsets = [2, 0], sizes = [1, 128], strides = [1, 1]} : vector<4x128xf32> to vector<1x128xf32>
    %811 = vector.broadcast %810 : vector<1x128xf32> to vector<10x128xf32>
    %812 = arith.mulf %20, %811 : vector<10x128xf32>
    %813 = arith.addf %809, %812 : vector<10x128xf32>
    %814 = vector.extract_strided_slice %801 {offsets = [3, 0], sizes = [1, 128], strides = [1, 1]} : vector<4x128xf32> to vector<1x128xf32>
    %815 = vector.broadcast %814 : vector<1x128xf32> to vector<10x128xf32>
    %816 = arith.mulf %23, %815 : vector<10x128xf32>
    %817 = arith.addf %813, %816 : vector<10x128xf32>
    %818 = vector.extract_strided_slice %739 {offsets = [0, 0], sizes = [1, 128], strides = [1, 1]} : vector<10x128xf32> to vector<1x128xf32>
    %819 = vector.broadcast %818 : vector<1x128xf32> to vector<10x128xf32>
    %820 = arith.mulf %26, %819 : vector<10x128xf32>
    %821 = vector.extract_strided_slice %739 {offsets = [1, 0], sizes = [1, 128], strides = [1, 1]} : vector<10x128xf32> to vector<1x128xf32>
    %822 = vector.broadcast %821 : vector<1x128xf32> to vector<10x128xf32>
    %823 = arith.mulf %29, %822 : vector<10x128xf32>
    %824 = vector.extract_strided_slice %739 {offsets = [2, 0], sizes = [1, 128], strides = [1, 1]} : vector<10x128xf32> to vector<1x128xf32>
    %825 = vector.broadcast %824 : vector<1x128xf32> to vector<10x128xf32>
    %826 = arith.mulf %32, %825 : vector<10x128xf32>
    %827 = vector.extract_strided_slice %739 {offsets = [3, 0], sizes = [1, 128], strides = [1, 1]} : vector<10x128xf32> to vector<1x128xf32>
    %828 = vector.broadcast %827 : vector<1x128xf32> to vector<10x128xf32>
    %829 = arith.mulf %35, %828 : vector<10x128xf32>
    %830 = vector.extract_strided_slice %739 {offsets = [4, 0], sizes = [1, 128], strides = [1, 1]} : vector<10x128xf32> to vector<1x128xf32>
    %831 = vector.broadcast %830 : vector<1x128xf32> to vector<10x128xf32>
    %832 = arith.mulf %38, %831 : vector<10x128xf32>
    %833 = arith.addf %820, %832 : vector<10x128xf32>
    %834 = vector.extract_strided_slice %739 {offsets = [5, 0], sizes = [1, 128], strides = [1, 1]} : vector<10x128xf32> to vector<1x128xf32>
    %835 = vector.broadcast %834 : vector<1x128xf32> to vector<10x128xf32>
    %836 = arith.mulf %41, %835 : vector<10x128xf32>
    %837 = arith.addf %823, %836 : vector<10x128xf32>
    %838 = vector.extract_strided_slice %739 {offsets = [6, 0], sizes = [1, 128], strides = [1, 1]} : vector<10x128xf32> to vector<1x128xf32>
    %839 = vector.broadcast %838 : vector<1x128xf32> to vector<10x128xf32>
    %840 = arith.mulf %44, %839 : vector<10x128xf32>
    %841 = arith.addf %826, %840 : vector<10x128xf32>
    %842 = vector.extract_strided_slice %739 {offsets = [7, 0], sizes = [1, 128], strides = [1, 1]} : vector<10x128xf32> to vector<1x128xf32>
    %843 = vector.broadcast %842 : vector<1x128xf32> to vector<10x128xf32>
    %844 = arith.mulf %47, %843 : vector<10x128xf32>
    %845 = arith.addf %829, %844 : vector<10x128xf32>
    %846 = vector.extract_strided_slice %739 {offsets = [8, 0], sizes = [1, 128], strides = [1, 1]} : vector<10x128xf32> to vector<1x128xf32>
    %847 = vector.broadcast %846 : vector<1x128xf32> to vector<10x128xf32>
    %848 = arith.mulf %50, %847 : vector<10x128xf32>
    %849 = arith.addf %833, %848 : vector<10x128xf32>
    %850 = vector.extract_strided_slice %739 {offsets = [9, 0], sizes = [1, 128], strides = [1, 1]} : vector<10x128xf32> to vector<1x128xf32>
    %851 = vector.broadcast %850 : vector<1x128xf32> to vector<10x128xf32>
    %852 = arith.mulf %53, %851 : vector<10x128xf32>
    %853 = arith.addf %837, %852 : vector<10x128xf32>
    %854 = arith.addf %817, %849 : vector<10x128xf32>
    %855 = arith.addf %854, %853 : vector<10x128xf32>
    %856 = arith.addf %855, %841 : vector<10x128xf32>
    %857 = arith.addf %856, %845 : vector<10x128xf32>
    %858 = math.tanh %857 : vector<10x128xf32>
    %859 = vector.extract_strided_slice %858 {offsets = [0, 0], sizes = [1, 128], strides = [1, 1]} : vector<10x128xf32> to vector<1x128xf32>
    %860 = vector.broadcast %859 : vector<1x128xf32> to vector<2x128xf32>
    %861 = arith.mulf %56, %860 : vector<2x128xf32>
    %862 = arith.addf %11, %861 : vector<2x128xf32>
    %863 = vector.extract_strided_slice %858 {offsets = [1, 0], sizes = [1, 128], strides = [1, 1]} : vector<10x128xf32> to vector<1x128xf32>
    %864 = vector.broadcast %863 : vector<1x128xf32> to vector<2x128xf32>
    %865 = arith.mulf %59, %864 : vector<2x128xf32>
    %866 = arith.addf %862, %865 : vector<2x128xf32>
    %867 = vector.extract_strided_slice %858 {offsets = [2, 0], sizes = [1, 128], strides = [1, 1]} : vector<10x128xf32> to vector<1x128xf32>
    %868 = vector.broadcast %867 : vector<1x128xf32> to vector<2x128xf32>
    %869 = arith.mulf %62, %868 : vector<2x128xf32>
    %870 = arith.addf %866, %869 : vector<2x128xf32>
    %871 = vector.extract_strided_slice %858 {offsets = [3, 0], sizes = [1, 128], strides = [1, 1]} : vector<10x128xf32> to vector<1x128xf32>
    %872 = vector.broadcast %871 : vector<1x128xf32> to vector<2x128xf32>
    %873 = arith.mulf %65, %872 : vector<2x128xf32>
    %874 = arith.addf %870, %873 : vector<2x128xf32>
    %875 = vector.extract_strided_slice %858 {offsets = [4, 0], sizes = [1, 128], strides = [1, 1]} : vector<10x128xf32> to vector<1x128xf32>
    %876 = vector.broadcast %875 : vector<1x128xf32> to vector<2x128xf32>
    %877 = arith.mulf %68, %876 : vector<2x128xf32>
    %878 = arith.addf %874, %877 : vector<2x128xf32>
    %879 = vector.extract_strided_slice %858 {offsets = [5, 0], sizes = [1, 128], strides = [1, 1]} : vector<10x128xf32> to vector<1x128xf32>
    %880 = vector.broadcast %879 : vector<1x128xf32> to vector<2x128xf32>
    %881 = arith.mulf %71, %880 : vector<2x128xf32>
    %882 = arith.addf %878, %881 : vector<2x128xf32>
    %883 = vector.extract_strided_slice %858 {offsets = [6, 0], sizes = [1, 128], strides = [1, 1]} : vector<10x128xf32> to vector<1x128xf32>
    %884 = vector.broadcast %883 : vector<1x128xf32> to vector<2x128xf32>
    %885 = arith.mulf %74, %884 : vector<2x128xf32>
    %886 = arith.addf %882, %885 : vector<2x128xf32>
    %887 = vector.extract_strided_slice %858 {offsets = [7, 0], sizes = [1, 128], strides = [1, 1]} : vector<10x128xf32> to vector<1x128xf32>
    %888 = vector.broadcast %887 : vector<1x128xf32> to vector<2x128xf32>
    %889 = arith.mulf %77, %888 : vector<2x128xf32>
    %890 = arith.addf %886, %889 : vector<2x128xf32>
    %891 = vector.extract_strided_slice %858 {offsets = [8, 0], sizes = [1, 128], strides = [1, 1]} : vector<10x128xf32> to vector<1x128xf32>
    %892 = vector.broadcast %891 : vector<1x128xf32> to vector<2x128xf32>
    %893 = arith.mulf %80, %892 : vector<2x128xf32>
    %894 = arith.addf %890, %893 : vector<2x128xf32>
    %895 = vector.extract_strided_slice %858 {offsets = [9, 0], sizes = [1, 128], strides = [1, 1]} : vector<10x128xf32> to vector<1x128xf32>
    %896 = vector.broadcast %895 : vector<1x128xf32> to vector<2x128xf32>
    %897 = arith.mulf %83, %896 : vector<2x128xf32>
    %898 = arith.addf %894, %897 : vector<2x128xf32>
    %899 = vector.extract_strided_slice %898 {offsets = [0, 0], sizes = [1, 128], strides = [1, 1]} : vector<2x128xf32> to vector<1x128xf32>
    %900 = vector.extract_strided_slice %898 {offsets = [1, 0], sizes = [1, 128], strides = [1, 1]} : vector<2x128xf32> to vector<1x128xf32>
    %901 = arith.index_cast %c6_i32 : i32 to index
    %c0_73 = arith.constant 0 : index
    %c0_74 = arith.constant 0 : index
    %902 = vector.load %arg3[%901, %c0_73, %c0_74] : memref<8x1x128xf32, #tpu.memory_space<vmem>>, vector<1x1x128xf32>
    %903 = vector.shape_cast %902 : vector<1x1x128xf32> to vector<1x128xf32>
    %904 = arith.mulf %900, %903 : vector<1x128xf32>
    %905 = arith.addf %899, %904 : vector<1x128xf32>
    %906 = arith.index_cast %c6_i32 : i32 to index
    %c0_75 = arith.constant 0 : index
    %c0_76 = arith.constant 0 : index
    %907 = vector.load %arg9[%906, %c0_75, %c0_76] : memref<8x3x128xf32, #tpu.memory_space<vmem>>, vector<1x1x128xf32>
    %908 = vector.shape_cast %907 : vector<1x1x128xf32> to vector<1x128xf32>
    %909 = vector.shape_cast %899 : vector<1x128xf32> to vector<1x1x128xf32>
    tpu.vector_store %arg9[%906, %c0_75, %c0_76], %909 {strides = array<i32>} : memref<8x3x128xf32, #tpu.memory_space<vmem>>, vector<1x1x128xf32>,
    %910 = arith.index_cast %c6_i32 : i32 to index
    %c1_77 = arith.constant 1 : index
    %c0_78 = arith.constant 0 : index
    %911 = vector.load %arg9[%910, %c1_77, %c0_78] : memref<8x3x128xf32, #tpu.memory_space<vmem>>, vector<1x1x128xf32>
    %912 = vector.shape_cast %911 : vector<1x1x128xf32> to vector<1x128xf32>
    %913 = vector.shape_cast %900 : vector<1x128xf32> to vector<1x1x128xf32>
    tpu.vector_store %arg9[%910, %c1_77, %c0_78], %913 {strides = array<i32>} : memref<8x3x128xf32, #tpu.memory_space<vmem>>, vector<1x1x128xf32>,
    %914 = arith.index_cast %c6_i32 : i32 to index
    %c2_79 = arith.constant 2 : index
    %c0_80 = arith.constant 0 : index
    %915 = vector.load %arg9[%914, %c2_79, %c0_80] : memref<8x3x128xf32, #tpu.memory_space<vmem>>, vector<1x1x128xf32>
    %916 = vector.shape_cast %915 : vector<1x1x128xf32> to vector<1x128xf32>
    %917 = vector.shape_cast %905 : vector<1x128xf32> to vector<1x1x128xf32>
    tpu.vector_store %arg9[%914, %c2_79, %c0_80], %917 {strides = array<i32>} : memref<8x3x128xf32, #tpu.memory_space<vmem>>, vector<1x1x128xf32>,
    %c7_i32 = arith.constant 7 : i32
    %918 = arith.index_cast %c7_i32 : i32 to index
    %c0_81 = arith.constant 0 : index
    %c0_82 = arith.constant 0 : index
    %919 = vector.load %arg2[%918, %c0_81, %c0_82] : memref<8x4x128xf32, #tpu.memory_space<vmem>>, vector<1x4x128xf32>
    %920 = vector.shape_cast %919 : vector<1x4x128xf32> to vector<4x128xf32>
    %921 = vector.extract_strided_slice %920 {offsets = [0, 0], sizes = [1, 128], strides = [1, 1]} : vector<4x128xf32> to vector<1x128xf32>
    %922 = vector.broadcast %921 : vector<1x128xf32> to vector<10x128xf32>
    %923 = arith.mulf %14, %922 : vector<10x128xf32>
    %924 = arith.addf %8, %923 : vector<10x128xf32>
    %925 = vector.extract_strided_slice %920 {offsets = [1, 0], sizes = [1, 128], strides = [1, 1]} : vector<4x128xf32> to vector<1x128xf32>
    %926 = vector.broadcast %925 : vector<1x128xf32> to vector<10x128xf32>
    %927 = arith.mulf %17, %926 : vector<10x128xf32>
    %928 = arith.addf %924, %927 : vector<10x128xf32>
    %929 = vector.extract_strided_slice %920 {offsets = [2, 0], sizes = [1, 128], strides = [1, 1]} : vector<4x128xf32> to vector<1x128xf32>
    %930 = vector.broadcast %929 : vector<1x128xf32> to vector<10x128xf32>
    %931 = arith.mulf %20, %930 : vector<10x128xf32>
    %932 = arith.addf %928, %931 : vector<10x128xf32>
    %933 = vector.extract_strided_slice %920 {offsets = [3, 0], sizes = [1, 128], strides = [1, 1]} : vector<4x128xf32> to vector<1x128xf32>
    %934 = vector.broadcast %933 : vector<1x128xf32> to vector<10x128xf32>
    %935 = arith.mulf %23, %934 : vector<10x128xf32>
    %936 = arith.addf %932, %935 : vector<10x128xf32>
    %937 = vector.extract_strided_slice %858 {offsets = [0, 0], sizes = [1, 128], strides = [1, 1]} : vector<10x128xf32> to vector<1x128xf32>
    %938 = vector.broadcast %937 : vector<1x128xf32> to vector<10x128xf32>
    %939 = arith.mulf %26, %938 : vector<10x128xf32>
    %940 = vector.extract_strided_slice %858 {offsets = [1, 0], sizes = [1, 128], strides = [1, 1]} : vector<10x128xf32> to vector<1x128xf32>
    %941 = vector.broadcast %940 : vector<1x128xf32> to vector<10x128xf32>
    %942 = arith.mulf %29, %941 : vector<10x128xf32>
    %943 = vector.extract_strided_slice %858 {offsets = [2, 0], sizes = [1, 128], strides = [1, 1]} : vector<10x128xf32> to vector<1x128xf32>
    %944 = vector.broadcast %943 : vector<1x128xf32> to vector<10x128xf32>
    %945 = arith.mulf %32, %944 : vector<10x128xf32>
    %946 = vector.extract_strided_slice %858 {offsets = [3, 0], sizes = [1, 128], strides = [1, 1]} : vector<10x128xf32> to vector<1x128xf32>
    %947 = vector.broadcast %946 : vector<1x128xf32> to vector<10x128xf32>
    %948 = arith.mulf %35, %947 : vector<10x128xf32>
    %949 = vector.extract_strided_slice %858 {offsets = [4, 0], sizes = [1, 128], strides = [1, 1]} : vector<10x128xf32> to vector<1x128xf32>
    %950 = vector.broadcast %949 : vector<1x128xf32> to vector<10x128xf32>
    %951 = arith.mulf %38, %950 : vector<10x128xf32>
    %952 = arith.addf %939, %951 : vector<10x128xf32>
    %953 = vector.extract_strided_slice %858 {offsets = [5, 0], sizes = [1, 128], strides = [1, 1]} : vector<10x128xf32> to vector<1x128xf32>
    %954 = vector.broadcast %953 : vector<1x128xf32> to vector<10x128xf32>
    %955 = arith.mulf %41, %954 : vector<10x128xf32>
    %956 = arith.addf %942, %955 : vector<10x128xf32>
    %957 = vector.extract_strided_slice %858 {offsets = [6, 0], sizes = [1, 128], strides = [1, 1]} : vector<10x128xf32> to vector<1x128xf32>
    %958 = vector.broadcast %957 : vector<1x128xf32> to vector<10x128xf32>
    %959 = arith.mulf %44, %958 : vector<10x128xf32>
    %960 = arith.addf %945, %959 : vector<10x128xf32>
    %961 = vector.extract_strided_slice %858 {offsets = [7, 0], sizes = [1, 128], strides = [1, 1]} : vector<10x128xf32> to vector<1x128xf32>
    %962 = vector.broadcast %961 : vector<1x128xf32> to vector<10x128xf32>
    %963 = arith.mulf %47, %962 : vector<10x128xf32>
    %964 = arith.addf %948, %963 : vector<10x128xf32>
    %965 = vector.extract_strided_slice %858 {offsets = [8, 0], sizes = [1, 128], strides = [1, 1]} : vector<10x128xf32> to vector<1x128xf32>
    %966 = vector.broadcast %965 : vector<1x128xf32> to vector<10x128xf32>
    %967 = arith.mulf %50, %966 : vector<10x128xf32>
    %968 = arith.addf %952, %967 : vector<10x128xf32>
    %969 = vector.extract_strided_slice %858 {offsets = [9, 0], sizes = [1, 128], strides = [1, 1]} : vector<10x128xf32> to vector<1x128xf32>
    %970 = vector.broadcast %969 : vector<1x128xf32> to vector<10x128xf32>
    %971 = arith.mulf %53, %970 : vector<10x128xf32>
    %972 = arith.addf %956, %971 : vector<10x128xf32>
    %973 = arith.addf %936, %968 : vector<10x128xf32>
    %974 = arith.addf %973, %972 : vector<10x128xf32>
    %975 = arith.addf %974, %960 : vector<10x128xf32>
    %976 = arith.addf %975, %964 : vector<10x128xf32>
    %977 = math.tanh %976 : vector<10x128xf32>
    %978 = vector.extract_strided_slice %977 {offsets = [0, 0], sizes = [1, 128], strides = [1, 1]} : vector<10x128xf32> to vector<1x128xf32>
    %979 = vector.broadcast %978 : vector<1x128xf32> to vector<2x128xf32>
    %980 = arith.mulf %56, %979 : vector<2x128xf32>
    %981 = arith.addf %11, %980 : vector<2x128xf32>
    %982 = vector.extract_strided_slice %977 {offsets = [1, 0], sizes = [1, 128], strides = [1, 1]} : vector<10x128xf32> to vector<1x128xf32>
    %983 = vector.broadcast %982 : vector<1x128xf32> to vector<2x128xf32>
    %984 = arith.mulf %59, %983 : vector<2x128xf32>
    %985 = arith.addf %981, %984 : vector<2x128xf32>
    %986 = vector.extract_strided_slice %977 {offsets = [2, 0], sizes = [1, 128], strides = [1, 1]} : vector<10x128xf32> to vector<1x128xf32>
    %987 = vector.broadcast %986 : vector<1x128xf32> to vector<2x128xf32>
    %988 = arith.mulf %62, %987 : vector<2x128xf32>
    %989 = arith.addf %985, %988 : vector<2x128xf32>
    %990 = vector.extract_strided_slice %977 {offsets = [3, 0], sizes = [1, 128], strides = [1, 1]} : vector<10x128xf32> to vector<1x128xf32>
    %991 = vector.broadcast %990 : vector<1x128xf32> to vector<2x128xf32>
    %992 = arith.mulf %65, %991 : vector<2x128xf32>
    %993 = arith.addf %989, %992 : vector<2x128xf32>
    %994 = vector.extract_strided_slice %977 {offsets = [4, 0], sizes = [1, 128], strides = [1, 1]} : vector<10x128xf32> to vector<1x128xf32>
    %995 = vector.broadcast %994 : vector<1x128xf32> to vector<2x128xf32>
    %996 = arith.mulf %68, %995 : vector<2x128xf32>
    %997 = arith.addf %993, %996 : vector<2x128xf32>
    %998 = vector.extract_strided_slice %977 {offsets = [5, 0], sizes = [1, 128], strides = [1, 1]} : vector<10x128xf32> to vector<1x128xf32>
    %999 = vector.broadcast %998 : vector<1x128xf32> to vector<2x128xf32>
    %1000 = arith.mulf %71, %999 : vector<2x128xf32>
    %1001 = arith.addf %997, %1000 : vector<2x128xf32>
    %1002 = vector.extract_strided_slice %977 {offsets = [6, 0], sizes = [1, 128], strides = [1, 1]} : vector<10x128xf32> to vector<1x128xf32>
    %1003 = vector.broadcast %1002 : vector<1x128xf32> to vector<2x128xf32>
    %1004 = arith.mulf %74, %1003 : vector<2x128xf32>
    %1005 = arith.addf %1001, %1004 : vector<2x128xf32>
    %1006 = vector.extract_strided_slice %977 {offsets = [7, 0], sizes = [1, 128], strides = [1, 1]} : vector<10x128xf32> to vector<1x128xf32>
    %1007 = vector.broadcast %1006 : vector<1x128xf32> to vector<2x128xf32>
    %1008 = arith.mulf %77, %1007 : vector<2x128xf32>
    %1009 = arith.addf %1005, %1008 : vector<2x128xf32>
    %1010 = vector.extract_strided_slice %977 {offsets = [8, 0], sizes = [1, 128], strides = [1, 1]} : vector<10x128xf32> to vector<1x128xf32>
    %1011 = vector.broadcast %1010 : vector<1x128xf32> to vector<2x128xf32>
    %1012 = arith.mulf %80, %1011 : vector<2x128xf32>
    %1013 = arith.addf %1009, %1012 : vector<2x128xf32>
    %1014 = vector.extract_strided_slice %977 {offsets = [9, 0], sizes = [1, 128], strides = [1, 1]} : vector<10x128xf32> to vector<1x128xf32>
    %1015 = vector.broadcast %1014 : vector<1x128xf32> to vector<2x128xf32>
    %1016 = arith.mulf %83, %1015 : vector<2x128xf32>
    %1017 = arith.addf %1013, %1016 : vector<2x128xf32>
    %1018 = vector.extract_strided_slice %1017 {offsets = [0, 0], sizes = [1, 128], strides = [1, 1]} : vector<2x128xf32> to vector<1x128xf32>
    %1019 = vector.extract_strided_slice %1017 {offsets = [1, 0], sizes = [1, 128], strides = [1, 1]} : vector<2x128xf32> to vector<1x128xf32>
    %1020 = arith.index_cast %c7_i32 : i32 to index
    %c0_83 = arith.constant 0 : index
    %c0_84 = arith.constant 0 : index
    %1021 = vector.load %arg3[%1020, %c0_83, %c0_84] : memref<8x1x128xf32, #tpu.memory_space<vmem>>, vector<1x1x128xf32>
    %1022 = vector.shape_cast %1021 : vector<1x1x128xf32> to vector<1x128xf32>
    %1023 = arith.mulf %1019, %1022 : vector<1x128xf32>
    %1024 = arith.addf %1018, %1023 : vector<1x128xf32>
    %1025 = arith.index_cast %c7_i32 : i32 to index
    %c0_85 = arith.constant 0 : index
    %c0_86 = arith.constant 0 : index
    %1026 = vector.load %arg9[%1025, %c0_85, %c0_86] : memref<8x3x128xf32, #tpu.memory_space<vmem>>, vector<1x1x128xf32>
    %1027 = vector.shape_cast %1026 : vector<1x1x128xf32> to vector<1x128xf32>
    %1028 = vector.shape_cast %1018 : vector<1x128xf32> to vector<1x1x128xf32>
    tpu.vector_store %arg9[%1025, %c0_85, %c0_86], %1028 {strides = array<i32>} : memref<8x3x128xf32, #tpu.memory_space<vmem>>, vector<1x1x128xf32>,
    %1029 = arith.index_cast %c7_i32 : i32 to index
    %c1_87 = arith.constant 1 : index
    %c0_88 = arith.constant 0 : index
    %1030 = vector.load %arg9[%1029, %c1_87, %c0_88] : memref<8x3x128xf32, #tpu.memory_space<vmem>>, vector<1x1x128xf32>
    %1031 = vector.shape_cast %1030 : vector<1x1x128xf32> to vector<1x128xf32>
    %1032 = vector.shape_cast %1019 : vector<1x128xf32> to vector<1x1x128xf32>
    tpu.vector_store %arg9[%1029, %c1_87, %c0_88], %1032 {strides = array<i32>} : memref<8x3x128xf32, #tpu.memory_space<vmem>>, vector<1x1x128xf32>,
    %1033 = arith.index_cast %c7_i32 : i32 to index
    %c2_89 = arith.constant 2 : index
    %c0_90 = arith.constant 0 : index
    %1034 = vector.load %arg9[%1033, %c2_89, %c0_90] : memref<8x3x128xf32, #tpu.memory_space<vmem>>, vector<1x1x128xf32>
    %1035 = vector.shape_cast %1034 : vector<1x1x128xf32> to vector<1x128xf32>
    %1036 = vector.shape_cast %1024 : vector<1x128xf32> to vector<1x1x128xf32>
    tpu.vector_store %arg9[%1033, %c2_89, %c0_90], %1036 {strides = array<i32>} : memref<8x3x128xf32, #tpu.memory_space<vmem>>, vector<1x1x128xf32>,
    %c8_i32 = arith.constant 8 : i32
    %c0_91 = arith.constant 0 : index
    %c0_92 = arith.constant 0 : index
    %1037 = vector.load %arg10[%c0_91, %c0_92] : memref<10x128xf32, #tpu.memory_space<vmem>>, vector<10x128xf32>
    tpu.vector_store %arg10[%c0_91, %c0_92], %977 {strides = array<i32>} : memref<10x128xf32, #tpu.memory_space<vmem>>, vector<10x128xf32>,
    return
  }
  func.func @transform_0(%arg0: i32, %arg1: i32) -> (i32, i32, i32) {
    %c0_i32 = arith.constant 0 : i32
    %c0_i32_0 = arith.constant 0 : i32
    return %arg1, %c0_i32, %arg0 : i32, i32, i32
  }
  func.func @transform_1(%arg0: i32, %arg1: i32) -> (i32, i32, i32) {
    %c0_i32 = arith.constant 0 : i32
    %c0_i32_0 = arith.constant 0 : i32
    return %arg1, %c0_i32, %arg0 : i32, i32, i32
  }
  func.func @transform_2(%arg0: i32, %arg1: i32) -> (i32, i32) {
    %c0_i32 = arith.constant 0 : i32
    %c0_i32_0 = arith.constant 0 : i32
    %c0_i32_1 = arith.constant 0 : i32
    return %c0_i32, %c0_i32_0 : i32, i32
  }
  func.func @transform_3(%arg0: i32, %arg1: i32) -> (i32, i32) {
    %c0_i32 = arith.constant 0 : i32
    %c0_i32_0 = arith.constant 0 : i32
    %c0_i32_1 = arith.constant 0 : i32
    return %c0_i32, %c0_i32_0 : i32, i32
  }
  func.func @transform_4(%arg0: i32, %arg1: i32) -> (i32, i32) {
    %c0_i32 = arith.constant 0 : i32
    %c0_i32_0 = arith.constant 0 : i32
    %c0_i32_1 = arith.constant 0 : i32
    return %c0_i32, %c0_i32_0 : i32, i32
  }
  func.func @transform_5(%arg0: i32, %arg1: i32) -> (i32, i32) {
    %c0_i32 = arith.constant 0 : i32
    %c0_i32_0 = arith.constant 0 : i32
    %c0_i32_1 = arith.constant 0 : i32
    return %c0_i32, %c0_i32_0 : i32, i32
  }
  func.func @transform_6(%arg0: i32, %arg1: i32) -> (i32, i32) {
    %c0_i32 = arith.constant 0 : i32
    %c0_i32_0 = arith.constant 0 : i32
    %c0_i32_1 = arith.constant 0 : i32
    return %c0_i32, %c0_i32_0 : i32, i32
  }
  func.func @transform_7(%arg0: i32, %arg1: i32) -> (i32, i32, i32) {
    %c0_i32 = arith.constant 0 : i32
    %c0_i32_0 = arith.constant 0 : i32
    return %arg1, %c0_i32, %arg0 : i32, i32, i32
  }
}

</mosaic_0001>

<bundles_post_ra>
// kernel: rnn_emb_kin_forward.1
= control target key start
LH: loop header
LB: loop body
LE: loop exit
PB: predicated region body
PF: predicated region fallthrough
CT: control target
= control target key end

     0   :  { %v1601_v0 = vmov 2   ;;  %v1602_v1 = vmov 0   ;;  %v1603_v4 = vmov 1   ;;  %v2562_v8 = vmov 0.0   ;;  %s2554_s2 = inlined_call_operand.vmem [shape: f32[10,4], index: 2, kind: input, shape index: {}]   ;;  %s2555_s4 = inlined_call_operand.vmem [shape: f32[10,1], index: 4, kind: input, shape index: {}]   ;;  %s2556_s3 = inlined_call_operand.vmem [shape: f32[10,10], index: 3, kind: input, shape index: {}]   ;;  %s2557_s5 = inlined_call_operand.vmem [shape: f32[2,10], index: 5, kind: input, shape index: {}]   ;;  %s2558_s6 = inlined_call_operand.vmem [shape: f32[2,1], index: 6, kind: input, shape index: {}]   ;;  %s2559_s0 = inlined_call_operand.vmem [shape: f32[8,4,128], index: 0, kind: input, shape index: {}]   ;;  %s2560_s7 = inlined_call_operand.vmem [shape: f32[8,3,128], index: 7, kind: output, shape index: {}]   ;;  %s2561_s1 = inlined_call_operand.vmem [shape: f32[8,1,128], index: 1, kind: input, shape index: {}]  }
   0x1   :  { %1537 = vset.pattern.permute.xlu0 %v1601_v0  ;;  %1535 = vset.pattern.permute.xlu1 %v1602_v1  ;;  %v33_v2 = vld [vmem:[%s2554_s2 + $0x8] sm:$0x3]  ;;  %v32_v3 = vld [vmem:[%s2554_s2] sm:$0xff]  ;;  %31 = vst [vmem:[#allocation2 + $0x8] sm:$0x3] %v2562_v8  ;;  %v1605_v9 = vmov 4   ;;  %v215_v19 = vlaneseq }
   0x2   :  { %62 = vperm.xlu1 %1535, %v33_v2   ;;  %74 = vperm.xlu0 %1537, %v32_v3   ;;  %v37_v5 = vld [vmem:[%s2555_s4] sm:$0xff]  ;;  %v38_v7 = vld [vmem:[%s2555_s4 + $0x8] sm:$0x3]  ;;  %v1606_v11 = vmov 3   ;;  %v1607_v12 = vmov 5   ;;  %v1608_v13 = vmov 9  }
   0x3   :  { %v34_v6 = vld [vmem:[%s2556_s3] sm:$0xff]  ;;  %v35_v10 = vld [vmem:[%s2556_s3 + $0x8] sm:$0x3]  ;;  %v1609_v14 = vmov 8   ;;  %v1610_v16 = vmov 6   ;;  %v1611_v17 = vmov 7  }
   0x4   :  { %v36_v15 = vld [vmem:[%s2557_s5] sm:$0x3]  ;;  %v1693_v20 = vshrl.u32 %v215_v19, 7  ;;  %v1494_v22 = vld [vmem:[%s2559_s0 + $0xc] sm:$0xf] }
   0x5   :  { %v49_v18 = vld [vmem:[%s2558_s6] sm:$0x3]  ;;  %v1500_v23 = vld [vmem:[%s2559_s0 + $0x10] sm:$0xf]  ;;  %v1710_v25 = vld [vmem:[%s2559_s0 + $0x14] sm:$0xf] }
   0x6   :  { %1536 = vset.pattern.permute.xlu1 %v1603_v4  ;;  %78 = vperm.xlu0 %1537, %v33_v2   ;;  %2610 = vst [vmem:[#allocation3_spill] sm:$0xff] %v1693_v20  ;;  %v1696_v21 = vsub.s32 0, %v1693_v20  ;;  %v1705_v24 = vsub.s32 2, %v1693_v20  ;;  %v1715_v26 = vld [vmem:[%s2559_s0 + $0x18] sm:$0xf]  ;;  %v1724_v29 = vsub.s32 1, %v1693_v20 }
   0x7   :  { %66 = vperm.xlu1 %1536, %v32_v3   ;;  %v1720_v27 = vld [vmem:[%s2559_s0 + $0x1c] sm:$0xf]  ;;  %v1482_v44 = vld [vmem:[%s2559_s0 + $0x4] sm:$0xf]  ;;  %v1488_v45 = vld [vmem:[%s2559_s0 + $0x8] sm:$0xf] }
   0x8   :  { %2611 = vst [vmem:[#allocation4_spill] sm:$0xff] %v1696_v21  ;;  %2612 = vst [vmem:[#allocation5_spill] sm:$0xff] %v1705_v24  ;;  %v715_v28 = vrot.slane %v1494_v22, %v1696_v21  ;;  %v868_v30 = vrot.slane %v1500_v23, %v1696_v21  ;;  %v1021_v31 = vrot.slane %v1710_v25, %v1696_v21  ;;  %v1799_v63 = vsub.s32 3, %v1693_v20 }
   0x9   :  { %2613 = vst [vmem:[#allocation6_spill] sm:$0xff] %v1724_v29  ;;  %v1174_v32 = vrot.slane %v1715_v26, %v1696_v21  ;;  %v1327_v33 = vrot.slane %v1720_v27, %v1696_v21  ;;  %v731_v34 = vrot.slane %v1494_v22, %v1705_v24  ;;  %v884_v37 = vrot.slane %v1500_v23, %v1705_v24 }
   0xa   :  { %1540 = vset.pattern.permute.xlu0 %v1602_v1  ;;  %v1037_v38 = vrot.slane %v1710_v25, %v1705_v24  ;;  %v1190_v39 = vrot.slane %v1715_v26, %v1705_v24  ;;  %v1343_v40 = vrot.slane %v1720_v27, %v1705_v24  ;;  %v723_v42 = vrot.slane %v1494_v22, %v1724_v29 }
   0xb   :  { %57 = vperm.xlu0 %1540, %v32_v3   ;;  %70 = vperm.xlu1 %1536, %v33_v2   ;;  %v876_v43 = vrot.slane %v1500_v23, %v1724_v29  ;;  %v1029_v51 = vrot.slane %v1710_v25, %v1724_v29  ;;  %v1182_v52 = vrot.slane %v1715_v26, %v1724_v29 }
   0xc   :  { %v1335_v53 = vrot.slane %v1720_v27, %v1724_v29  ;;  %v409_v59 = vrot.slane %v1482_v44, %v1696_v21  ;;  %v562_v60 = vrot.slane %v1488_v45, %v1696_v21 }
   0xf   :  { %41 = vperm.xlu0 %1540, %v37_v5   ;;  %1538 = vset.pattern.permute.xlu1 %v1602_v1  ;;  %v1817_v5 = vrot.slane %v1488_v45, %v1705_v24 }
  0x10   :  { %91 = vperm.xlu1 %1538, %v34_v6  }
  0x13   :  { %46 = vperm.xlu0 %1540, %v38_v7  }
  0x14   :  { %1539 = vset.pattern.permute.xlu1 %v1605_v9 }
  0x15   :  { %124 = vperm.xlu1 %1539, %v34_v6  }
  0x17   :  { %96 = vperm.xlu0 %1540, %v35_v10  }
  0x19   :  { %1541 = vset.pattern.permute.xlu1 %v1606_v11 }
  0x1a   :  { %82 = vperm.xlu1 %1541, %v32_v3  }
  0x1b   :  { %1544 = vset.pattern.permute.xlu0 %v1607_v12 }
  0x1c   :  { %132 = vperm.xlu0 %1544, %v34_v6  }
  0x1e   :  { %1542 = vset.pattern.permute.xlu1 %v1603_v4 }
  0x1f   :  { %100 = vperm.xlu1 %1542, %v34_v6  }
  0x20   :  { %1547 = vset.pattern.permute.xlu0 %v1603_v4 }
  0x21   :  { %104 = vperm.xlu0 %1547, %v35_v10  }
  0x23   :  { %1543 = vset.pattern.permute.xlu1 %v1605_v9 }
  0x24   :  { %128 = vperm.xlu1 %1543, %v35_v10  }
  0x25   :  { %1550 = vset.pattern.permute.xlu0 %v1608_v13 }
  0x26   :  { %164 = vperm.xlu0 %1550, %v34_v6  }
  0x28   :  { %1545 = vset.pattern.permute.xlu1 %v1609_v14 }
  0x29   :  { %156 = vperm.xlu1 %1545, %v34_v6  }
  0x2a   :  { %168 = vperm.xlu0 %1550, %v35_v10  }
  0x2d   :  { %1546 = vset.pattern.permute.xlu1 %v1606_v11 }
  0x2e   :  { %86 = vperm.xlu1 %1546, %v33_v2   ;;  %1554 = vset.pattern.permute.xlu0 %v1606_v11 }
  0x2f   :  { %116 = vperm.xlu0 %1554, %v34_v6  }
  0x32   :  { %1548 = vset.pattern.permute.xlu1 %v1607_v12 }
  0x33   :  { %136 = vperm.xlu1 %1548, %v35_v10   ;;  %120 = vperm.xlu0 %1554, %v35_v10  }
  0x37   :  { %1549 = vset.pattern.permute.xlu1 %v1609_v14  ;;  %1557 = vset.pattern.permute.xlu0 %v1602_v1 }
  0x38   :  { %160 = vperm.xlu1 %1549, %v35_v10   ;;  %173 = vperm.xlu0 %1557, %v36_v15  }
  0x3c   :  { %1551 = vset.pattern.permute.xlu1 %v1601_v0  ;;  %1560 = vset.pattern.permute.xlu0 %v1601_v0 }
  0x3d   :  { %108 = vperm.xlu1 %1551, %v34_v6   ;;  %181 = vperm.xlu0 %1560, %v36_v15  }
  0x41   :  { %1552 = vset.pattern.permute.xlu1 %v1610_v16  ;;  %1563 = vset.pattern.permute.xlu0 %v1607_v12 }
  0x42   :  { %140 = vperm.xlu1 %1552, %v34_v6   ;;  %193 = vperm.xlu0 %1563, %v36_v15  }
  0x46   :  { %1553 = vset.pattern.permute.xlu1 %v1601_v0  ;;  %1566 = vset.pattern.permute.xlu0 %v1609_v14 }
  0x47   :  { %112 = vperm.xlu1 %1553, %v35_v10   ;;  %205 = vperm.xlu0 %1566, %v36_v15  }
  0x4b   :  { %1555 = vset.pattern.permute.xlu1 %v1610_v16  ;;  %1568 = vset.pattern.permute.xlu0 %v1608_v13 }
  0x4c   :  { %144 = vperm.xlu1 %1555, %v35_v10  }
  0x50   :  { %1556 = vset.pattern.permute.xlu1 %v1611_v17 }
  0x51   :  { %148 = vperm.xlu1 %1556, %v34_v6   ;;  %v417_v6 = vrot.slane %v1482_v44, %v1724_v29 }
  0x55   :  { %152 = vperm.xlu1 %1556, %v35_v10  }
  0x59   :  { %1558 = vset.pattern.permute.xlu1 %v1602_v1 }
  0x5a   :  { %52 = vperm.xlu1 %1558, %v49_v18   ;;  %v1837_v18 = vrot.slane %v1494_v22, %v1799_v63 }
  0x5e   :  { %1559 = vset.pattern.permute.xlu1 %v1603_v4  ;;  %v1814_v4 = vrot.slane %v1482_v44, %v1705_v24 }
  0x5f   :  { %177 = vperm.xlu1 %1559, %v36_v15  }
  0x63   :  { %1561 = vset.pattern.permute.xlu1 %v1606_v11 }
  0x64   :  { %185 = vperm.xlu1 %1561, %v36_v15  }
  0x68   :  { %1562 = vset.pattern.permute.xlu1 %v1605_v9 }
  0x69   :  { %189 = vperm.xlu1 %1562, %v36_v15  }
  0x6d   :  { %1564 = vset.pattern.permute.xlu1 %v1610_v16  ;;  %v1831_v16 = vrot.slane %v1482_v44, %v1799_v63 }
  0x6e   :  { %197 = vperm.xlu1 %1564, %v36_v15  }
  0x72   :  { %1565 = vset.pattern.permute.xlu1 %v1611_v17  ;;  %v1834_v17 = vrot.slane %v1488_v45, %v1799_v63 }
  0x73   :  { %201 = vperm.xlu1 %1565, %v36_v15  }
  0x77   :  { %1567 = vset.pattern.permute.xlu1 %v1608_v13  ;;  %v570_v13 = vrot.slane %v1488_v45, %v1724_v29 }
  0x78   :  { %209 = vperm.xlu1 %1567, %v36_v15  }
  0x81   :  { %v1734_v35 = vpop.permute.xlu1 %62  ;;  %v1736_v36 = vpop.permute.xlu0 %74 }
  0x82   :  { %2614 = vst [vmem:[#allocation7_spill] sm:$0xff] %v1734_v35  ;;  %2615 = vst [vmem:[#allocation8_spill] sm:$0xff] %v1736_v36  ;;  %v1746_v41 = vmul.f32 %v715_v28, %v1734_v35  ;;  %v1757_v46 = vmul.f32 %v868_v30, %v1734_v35  ;;  %v1760_v47 = vmul.f32 %v1021_v31, %v1734_v35 }
  0x83   :  { %v1763_v48 = vmul.f32 %v1174_v32, %v1734_v35  ;;  %v1766_v49 = vmul.f32 %v1327_v33, %v1734_v35  ;;  %v1769_v50 = vmul.f32 %v731_v34, %v1736_v36  ;;  %v1778_v54 = vmul.f32 %v884_v37, %v1736_v36 }
  0x84   :  { %v1781_v55 = vmul.f32 %v1037_v38, %v1736_v36  ;;  %v1784_v56 = vmul.f32 %v1190_v39, %v1736_v36  ;;  %v1787_v57 = vmul.f32 %v1343_v40, %v1736_v36  ;;  %v411_v19 = vmul.f32 %v409_v59, %v1734_v35 }
  0x85   :  { %v1789_v58 = vpop.permute.xlu0 %78  ;;  %v564_v22 = vmul.f32 %v562_v60, %v1734_v35  ;;  %v426_v8 = vmul.f32 %v1814_v4, %v1736_v36 }
  0x86   :  { %v1794_v61 = vmul.f32 %v731_v34, %v1789_v58  ;;  %v1796_v62 = vpop.permute.xlu1 %66  ;;  %v1802_v0 = vmul.f32 %v884_v37, %v1789_v58  ;;  %v1805_v1 = vmul.f32 %v1037_v38, %v1789_v58  ;;  %v1808_v2 = vmul.f32 %v1190_v39, %v1789_v58 }
  0x87   :  { %v1811_v3 = vmul.f32 %v1343_v40, %v1789_v58  ;;  %v724_v7 = vmul.f32 %v723_v42, %v1796_v62  ;;  %v877_v9 = vmul.f32 %v876_v43, %v1796_v62  ;;  %v1030_v10 = vmul.f32 %v1029_v51, %v1796_v62 }
  0x88   :  { %2616 = vst [vmem:[#allocation9_spill] sm:$0xff] %v1805_v1  ;;  %2617 = vst [vmem:[#allocation10_spill] sm:$0xff] %v1808_v2  ;;  %v1183_v11 = vmul.f32 %v1182_v52, %v1796_v62  ;;  %v1336_v12 = vmul.f32 %v1335_v53, %v1796_v62  ;;  %v1843_v38 = vrot.slane %v1500_v23, %v1799_v63 }
  0x89   :  { %2618 = vst [vmem:[#allocation11_spill] sm:$0xff] %v1811_v3 }
  0x8a   :  { %v1826_v14 = vpop.permute.xlu0 %57  ;;  %v1828_v15 = vpop.permute.xlu1 %70 }
  0x8b   :  { %2619 = vst [vmem:[#allocation12_spill] sm:$0xff] %v1826_v14  ;;  %v563_v34 = vmul.f32 %v562_v60, %v1826_v14  ;;  %v716_v37 = vmul.f32 %v715_v28, %v1826_v14  ;;  %v869_v39 = vmul.f32 %v868_v30, %v1826_v14  ;;  %v1022_v40 = vmul.f32 %v1021_v31, %v1826_v14 }
  0x8c   :  { %v1175_v44 = vmul.f32 %v1174_v32, %v1826_v14  ;;  %v1328_v45 = vmul.f32 %v1327_v33, %v1826_v14  ;;  %v410_v24 = vmul.f32 %v409_v59, %v1826_v14  ;;  %v725_v28 = vmul.f32 %v723_v42, %v1828_v15 }
  0x8d   :  { %v878_v23 = vmul.f32 %v876_v43, %v1828_v15  ;;  %v1031_v29 = vmul.f32 %v1029_v51, %v1828_v15  ;;  %v1184_v30 = vmul.f32 %v1182_v52, %v1828_v15  ;;  %v1337_v31 = vmul.f32 %v1335_v53, %v1828_v15 }
  0x8e   :  { %v1858_v32 = vpop.permute.xlu0 %41  ;;  %v579_v33 = vmul.f32 %v1817_v5, %v1736_v36  ;;  %v571_v60 = vmul.f32 %v570_v13, %v1796_v62  ;;  %v418_v14 = vmul.f32 %v417_v6, %v1796_v62 }
  0x8f   :  { %v565_v35 = vadd.f32 %v563_v34, %v1858_v32  ;;  %v718_v59 = vadd.f32 %v716_v37, %v1858_v32  ;;  %v1865_v42 = vpop.permute.xlu1 %91  ;;  %v871_v43 = vadd.f32 %v869_v39, %v1858_v32  ;;  %v1024_v51 = vadd.f32 %v1022_v40, %v1858_v32 }
  0x90   :  { %2620 = vst [vmem:[#allocation13_spill] sm:$0xff] %v1865_v42  ;;  %v1177_v52 = vadd.f32 %v1175_v44, %v1858_v32  ;;  %v1330_v53 = vadd.f32 %v1328_v45, %v1858_v32  ;;  %v412_v36 = vadd.f32 %v410_v24, %v1858_v32  ;;  %v419_v39 = vmul.f32 %v417_v6, %v1828_v15 }
  0x91   :  { %v573_v20 = vadd.f32 %v571_v60, %v565_v35  ;;  %v726_v21 = vadd.f32 %v724_v7, %v718_v59  ;;  %v879_v3 = vadd.f32 %v877_v9, %v871_v43  ;;  %v1032_v34 = vadd.f32 %v1030_v10, %v1024_v51 }
  0x92   :  { %v1185_v2 = vadd.f32 %v1183_v11, %v1177_v52  ;;  %v1338_v37 = vadd.f32 %v1336_v12, %v1330_v53  ;;  %v1873_v1 = vpop.permute.xlu0 %46  ;;  %v572_v40 = vmul.f32 %v570_v13, %v1828_v15  ;;  %v420_v6 = vadd.f32 %v418_v14, %v412_v36  ;;  %v2627_v53 = vld [vmem:[#allocation9_spill] sm:$0xff] }
  0x93   :  { %v413_v44 = vadd.f32 %v411_v19, %v1873_v1  ;;  %v566_v45 = vadd.f32 %v564_v22, %v1873_v1  ;;  %v719_v42 = vadd.f32 %v1746_v41, %v1873_v1  ;;  %v872_v24 = vadd.f32 %v1757_v46, %v1873_v1 }
  0x94   :  { %v1025_v35 = vadd.f32 %v1760_v47, %v1873_v1  ;;  %v1178_v7 = vadd.f32 %v1763_v48, %v1873_v1  ;;  %v1887_v9 = vpop.permute.xlu1 %124  ;;  %v1331_v12 = vadd.f32 %v1766_v49, %v1873_v1  ;;  %v1045_v46 = vrot.slane %v1710_v25, %v1799_v63 }
  0x95   :  { %v421_v10 = vadd.f32 %v419_v39, %v413_v44  ;;  %v574_v11 = vadd.f32 %v572_v40, %v566_v45  ;;  %v727_v13 = vadd.f32 %v725_v28, %v719_v42  ;;  %v880_v19 = vadd.f32 %v878_v23, %v872_v24  ;;  %v2629_v40 = vld [vmem:[#allocation11_spill] sm:$0xff] }
  0x96   :  { %v1033_v41 = vadd.f32 %v1031_v29, %v1025_v35  ;;  %v1186_v22 = vadd.f32 %v1184_v30, %v1178_v7  ;;  %v1339_v60 = vadd.f32 %v1337_v31, %v1331_v12  ;;  %v1198_v47 = vrot.slane %v1715_v26, %v1799_v63 }
  0x97   :  { %v1351_v48 = vrot.slane %v1720_v27, %v1799_v63  ;;  %v427_v36 = vmul.f32 %v1814_v4, %v1789_v58  ;;  %v581_v14 = vadd.f32 %v579_v33, %v573_v20  ;;  %v734_v49 = vadd.f32 %v1769_v50, %v726_v21 }
  0x98   :  { %v887_v28 = vadd.f32 %v1778_v54, %v879_v3  ;;  %v580_v29 = vmul.f32 %v1817_v5, %v1789_v58  ;;  %v1040_v25 = vadd.f32 %v1781_v55, %v1032_v34  ;;  %v1193_v26 = vadd.f32 %v1784_v56, %v1185_v2 }
  0x99   :  { %v1903_v23 = vpop.permute.xlu1 %82  ;;  %v1346_v30 = vadd.f32 %v1787_v57, %v1338_v37  ;;  %v428_v27 = vadd.f32 %v426_v8, %v420_v6  ;;  %v1935_v42 = vadd.f32 %v427_v36, %v421_v10  ;;  %v735_v51 = vadd.f32 %v1794_v61, %v727_v13  ;;  %v2628_v37 = vld [vmem:[#allocation10_spill] sm:$0xff] }
  0x9a   :  { %v434_v4 = vmul.f32 %v1831_v16, %v1903_v23  ;;  %v587_v20 = vmul.f32 %v1834_v17, %v1903_v23  ;;  %v740_v21 = vmul.f32 %v1837_v18, %v1903_v23  ;;  %v893_v50 = vmul.f32 %v1843_v38, %v1903_v23 }
  0x9b   :  { %v1046_v54 = vmul.f32 %v1045_v46, %v1903_v23  ;;  %v1199_v55 = vmul.f32 %v1198_v47, %v1903_v23  ;;  %v1352_v56 = vmul.f32 %v1351_v48, %v1903_v23  ;;  %v582_v43 = vadd.f32 %v580_v29, %v574_v11 }
  0x9c   :  { %v1919_v57 = vadd.f32 %v434_v4, %v428_v27  ;;  %v1921_v8 = vadd.f32 %v587_v20, %v581_v14  ;;  %v1923_v2 = vadd.f32 %v740_v21, %v734_v49  ;;  %v1925_v3 = vadd.f32 %v893_v50, %v887_v28  ;;  %v2639_v14 = vld [vmem:[#allocation3_spill] sm:$0xff]  ;;  %v2640_v28 = vld [vmem:[#allocation12_spill] sm:$0xff]  ;;  %v2644_v21 = vld [vmem:[#allocation5_spill] sm:$0xff] }
  0x9d   :  { %v1927_v5 = vadd.f32 %v1046_v54, %v1040_v25  ;;  %v1929_v31 = vadd.f32 %v1199_v55, %v1193_v26  ;;  %v1931_v33 = vadd.f32 %v1352_v56, %v1346_v30  ;;  %v888_v52 = vadd.f32 %v1802_v0, %v880_v19  ;;  %v2642_v26 = vld [vmem:[#allocation6_spill] sm:$0xff] }
  0x9e   :  { %2621 = vst [vmem:[#allocation14_spill] sm:$0xff] %v1921_v8  ;;  %2622 = vst [vmem:[#allocation15_spill] sm:$0xff] %v1923_v2  ;;  %v1933_v59 = vpop.permute.xlu1 %100  ;;  %v1041_v34 = vadd.f32 %v2627_v53, %v1033_v41  ;;  %v1194_v39 = vadd.f32 %v2628_v37, %v1186_v22  ;;  %v1347_v44 = vadd.f32 %v2629_v40, %v1339_v60  ;;  %v1969_v22 = vpop.permute.xlu0 %96  ;;  %v214_v60 = vld [vmem:[%s2559_s0] sm:$0xf]  ;;  %v1982_v49 = vsub.s32 4, %v2639_v14  ;;  %v2646_v53 = vld [vmem:[#allocation7_spill] sm:$0xff] }
  0x9f   :  { %2623 = vst [vmem:[#allocation16_spill] sm:$0xff] %v1925_v3  ;;  %2624 = vst [vmem:[#allocation17_spill] sm:$0xff] %v1927_v5  ;;  %v226_v30 = vrot.slane %v214_v60, %v2642_v26  ;;  %v2643_v4 = vmov 0.0   ;;  %v234_v50 = vrot.slane %v214_v60, %v2644_v21  ;;  %v1995_v55 = vsub.s32 5, %v2639_v14  ;;  %v213_v56 = vld [vmem:[#allocation2 + $0x8] sm:$0x3] }
  0xa0   :  { %2625 = vst [vmem:[#allocation18_spill] sm:$0xff] %v1929_v31  ;;  %2626 = vst [vmem:[#allocation19_spill] sm:$0xff] %v1931_v33  ;;  %v274_v20 = vrot.slane %v2643_v4, %v1982_v49  ;;  %v2006_v40 = vsub.s32 6, %v2639_v14 }
  0xa1   :  { %v227_v37 = vmul.f32 %v226_v30, %v1796_v62  ;;  %v2650_v62 = vld [vmem:[#allocation13_spill] sm:$0xff] }
  0xa2   :  { %2647 = vst [vmem:[#allocation12_spill] sm:$0xff] %v2006_v40 }
  0xa3   :  { %v1942_v45 = vpop.permute.xlu1 %128 }
  0xa8   :  { %v1944_v24 = vpop.permute.xlu1 %156 }
  0xa9   :  { %2630 = vst [vmem:[#allocation9_spill] sm:$0xff] %v1944_v24 }
  0xad   :  { %v1946_v35 = vpop.permute.xlu1 %86 }
  0xae   :  { %v588_v7 = vmul.f32 %v1834_v17, %v1946_v35  ;;  %v741_v61 = vmul.f32 %v1837_v18, %v1946_v35  ;;  %v894_v0 = vmul.f32 %v1843_v38, %v1946_v35  ;;  %v1047_v6 = vmul.f32 %v1045_v46, %v1946_v35 }
  0xaf   :  { %v1200_v10 = vmul.f32 %v1198_v47, %v1946_v35  ;;  %v1353_v11 = vmul.f32 %v1351_v48, %v1946_v35  ;;  %v1978_v47 = vpop.permute.xlu0 %132  ;;  %v2638_v48 = vld [vmem:[#allocation4_spill] sm:$0xff] }
  0xb0   :  { %v1957_v12 = vadd.f32 %v588_v7, %v582_v43  ;;  %v1959_v13 = vadd.f32 %v741_v61, %v735_v51  ;;  %v1961_v19 = vadd.f32 %v894_v0, %v888_v52  ;;  %v1963_v41 = vadd.f32 %v1047_v6, %v1041_v34  ;;  %v2648_v7 = vld [vmem:[#allocation8_spill] sm:$0xff] }
  0xb1   :  { %v1965_v17 = vadd.f32 %v1200_v10, %v1194_v39  ;;  %v1967_v18 = vadd.f32 %v1353_v11, %v1347_v44  ;;  %v218_v36 = vrot.slane %v214_v60, %v2638_v48  ;;  %v250_v43 = vrot.slane %v2643_v4, %v2638_v48 }
  0xb2   :  { %2631 = vst [vmem:[#allocation10_spill] sm:$0xff] %v1957_v12  ;;  %2632 = vst [vmem:[#allocation11_spill] sm:$0xff] %v1959_v13  ;;  %v1971_v38 = vpop.permute.xlu1 %136  ;;  %v306_v51 = vrot.slane %v213_v56, %v2638_v48  ;;  %v242_v39 = vrot.slane %v214_v60, %v1799_v63  ;;  %v256_v44 = vrot.slane %v2643_v4, %v2642_v26 }
  0xb3   :  { %2633 = vst [vmem:[#allocation20_spill] sm:$0xff] %v1961_v19  ;;  %2634 = vst [vmem:[#allocation21_spill] sm:$0xff] %v1963_v41  ;;  %v219_v29 = vmul.f32 %v218_v36, %v2640_v28  ;;  %v1988_v27 = vpop.permute.xlu0 %104  ;;  %v220_v34 = vmul.f32 %v218_v36, %v2646_v53  ;;  %v235_v61 = vmul.f32 %v234_v50, %v2648_v7 }
  0xb4   :  { %2635 = vst [vmem:[#allocation22_spill] sm:$0xff] %v1965_v17  ;;  %2636 = vst [vmem:[#allocation23_spill] sm:$0xff] %v1967_v18  ;;  %v282_v10 = vrot.slane %v2643_v4, %v1995_v55  ;;  %v251_v60 = vmul.f32 %v250_v43, %v2650_v62  ;;  %v307_v36 = vmul.f32 %v306_v51, %v1944_v24 }
  0xb5   :  { %v221_v54 = vadd.f32 %v219_v29, %v1858_v32  ;;  %v275_v32 = vmul.f32 %v274_v20, %v1887_v9  ;;  %v222_v6 = vadd.f32 %v220_v34, %v1873_v1  ;;  %v228_v28 = vmul.f32 %v226_v30, %v1828_v15 }
  0xb6   :  { %v243_v29 = vmul.f32 %v242_v39, %v1903_v23  ;;  %v314_v53 = vrot.slane %v213_v56, %v2642_v26  ;;  %v236_v1 = vmul.f32 %v234_v50, %v1789_v58  ;;  %v252_v7 = vmul.f32 %v250_v43, %v1969_v22 }
  0xb7   :  { %v1976_v46 = vpop.permute.xlu1 %160  ;;  %v229_v0 = vadd.f32 %v227_v37, %v221_v54  ;;  %v2015_v11 = vpop.permute.xlu0 %164  ;;  %v290_v54 = vrot.slane %v2643_v4, %v2006_v40  ;;  %v277_v34 = vadd.f32 %v275_v32, %v251_v60  ;;  %v276_v18 = vmul.f32 %v274_v20, %v1942_v45 }
  0xb8   :  { %2637 = vst [vmem:[#allocation24_spill] sm:$0xff] %v1976_v46  ;;  %2649 = vst [vmem:[#allocation6_spill] sm:$0xff] %v2015_v11  ;;  %v230_v33 = vadd.f32 %v228_v28, %v222_v6  ;;  %v283_v15 = vmul.f32 %v282_v10, %v1978_v47  ;;  %v257_v23 = vmul.f32 %v256_v44, %v1933_v59  ;;  %v2037_v58 = vsub.s32 7, %v2639_v14 }
  0xb9   :  { %v237_v17 = vadd.f32 %v235_v61, %v229_v0  ;;  %v309_v56 = vadd.f32 %v307_v36, %v277_v34  ;;  %v308_v31 = vmul.f32 %v306_v51, %v1976_v46  ;;  %v262_v41 = vrot.slane %v2643_v4, %v2644_v21 }
  0xba   :  { %2653 = vst [vmem:[#allocation8_spill] sm:$0xff] %v2037_v58  ;;  %v315_v20 = vmul.f32 %v314_v53, %v2015_v11  ;;  %v244_v43 = vmul.f32 %v242_v39, %v1946_v35  ;;  %v268_v32 = vrot.slane %v2643_v4, %v1799_v63  ;;  %v258_v61 = vmul.f32 %v256_v44, %v1988_v27 }
  0xbb   :  { %v2031_v30 = vpop.permute.xlu0 %168  ;;  %v245_v50 = vadd.f32 %v243_v29, %v237_v17  ;;  %v278_v0 = vadd.f32 %v276_v18, %v252_v7  ;;  %v284_v6 = vmul.f32 %v282_v10, %v1971_v38  ;;  %v285_v36 = vadd.f32 %v283_v15, %v257_v23 }
  0xbc   :  { %v1985_v25 = vpop.permute.xlu1 %108  ;;  %2652 = vst [vmem:[#allocation7_spill] sm:$0xff] %v2031_v30  ;;  %v238_v14 = vadd.f32 %v236_v1, %v230_v33  ;;  %v298_v34 = vrot.slane %v2643_v4, %v2037_v58  ;;  %v316_v18 = vmul.f32 %v314_v53, %v2031_v30 }
  0xbd   :  { %2641 = vst [vmem:[#allocation4_spill] sm:$0xff] %v1985_v25  ;;  %v319_v17 = vadd.f32 %v309_v56, %v245_v50  ;;  %v310_v29 = vadd.f32 %v308_v31, %v278_v0  ;;  %v263_v39 = vmul.f32 %v262_v41, %v1985_v25  ;;  %v317_v5 = vadd.f32 %v315_v20, %v285_v36 }
  0xbe   :  { %v246_v44 = vadd.f32 %v244_v43, %v238_v14  ;;  %v286_v10 = vadd.f32 %v284_v6, %v258_v61 }
  0xbf   :  { %v2048_v28 = vpop.permute.xlu0 %116  ;;  %v321_v23 = vadd.f32 %v319_v17, %v317_v5 }
  0xc0   :  { %2655 = vst [vmem:[#allocation25_spill] sm:$0xff] %v2048_v28  ;;  %v269_v15 = vmul.f32 %v268_v32, %v2048_v28  ;;  %v320_v1 = vadd.f32 %v310_v29, %v246_v44  ;;  %v318_v4 = vadd.f32 %v316_v18, %v286_v10  ;;  %v435_v18 = vmul.f32 %v1831_v16, %v1946_v35 }
  0xc1   :  { %v2000_v52 = vpop.permute.xlu1 %140 }
  0xc2   :  { %2645 = vst [vmem:[#allocation3_spill] sm:$0xff] %v2000_v52  ;;  %v291_v51 = vmul.f32 %v290_v54, %v2000_v52  ;;  %v322_v0 = vadd.f32 %v320_v1, %v318_v4 }
  0xc3   :  { %v2060_v50 = vpop.permute.xlu0 %120 }
  0xc4   :  { %v293_v7 = vadd.f32 %v291_v51, %v263_v39  ;;  %2657 = vst [vmem:[#allocation27_spill] sm:$0xff] %v2060_v50 }
  0xc6   :  { %v2024_v37 = vpop.permute.xlu1 %112  ;;  %v323_v20 = vadd.f32 %v321_v23, %v293_v7 }
  0xc7   :  { %2651 = vst [vmem:[#allocation5_spill] sm:$0xff] %v2024_v37  ;;  %v264_v31 = vmul.f32 %v262_v41, %v2024_v37  ;;  %v2096_v35 = vpop.permute.xlu0 %173 }
  0xc8   :  { %2661 = vst [vmem:[#allocation31_spill] sm:$0xff] %v2096_v35 }
  0xcb   :  { %v2046_v60 = vpop.permute.xlu1 %144 }
  0xcc   :  { %2654 = vst [vmem:[#allocation13_spill] sm:$0xff] %v2046_v60  ;;  %v292_v19 = vmul.f32 %v290_v54, %v2046_v60  ;;  %v270_v54 = vmul.f32 %v268_v32, %v2060_v50 }
  0xce   :  { %v294_v43 = vadd.f32 %v292_v19, %v264_v31 }
  0xd0   :  { %v2056_v33 = vpop.permute.xlu1 %148  ;;  %v324_v36 = vadd.f32 %v322_v0, %v294_v43 }
  0xd1   :  { %2656 = vst [vmem:[#allocation26_spill] sm:$0xff] %v2056_v33  ;;  %v299_v56 = vmul.f32 %v298_v34, %v2056_v33 }
  0xd3   :  { %v301_v53 = vadd.f32 %v299_v56, %v269_v15 }
  0xd4   :  { %v2062_v61 = vpop.permute.xlu1 %152 }
  0xd5   :  { %2658 = vst [vmem:[#allocation28_spill] sm:$0xff] %v2062_v61  ;;  %v325_v6 = vadd.f32 %v323_v20, %v301_v53  ;;  %v300_v51 = vmul.f32 %v298_v34, %v2062_v61 }
  0xd7   :  { %1569 = vtanh.f32 %v325_v6  ;;  %v302_v5 = vadd.f32 %v300_v51, %v270_v54  ;;  %v437_v54 = vadd.f32 %v435_v18, %v1935_v42 }
  0xd9   :  { %v326_v41 = vadd.f32 %v324_v36, %v302_v5  ;;  %v2066_v14 = vpop.permute.xlu1 %52 }
  0xda   :  { %2659 = vst [vmem:[#allocation29_spill] sm:$0xff] %v2066_v14 }
  0xdb   :  { %1571 = vtanh.f32 %v326_v41 }
  0xde   :  { %v2068_v17 = vpop.permute.xlu1 %177 }
  0xdf   :  { %2660 = vst [vmem:[#allocation30_spill] sm:$0xff] %v2068_v17 }
  0xe1   :  { %v1570_v29 = vpop.eup %1569 }
  0xe2   :  { %v332_v19 = vrot.slane %v1570_v29, %v2638_v48  ;;  %v338_v39 = vrot.slane %v1570_v29, %v2642_v26  ;;  %v2073_v44 = vrot.slane %v1570_v29, %v1982_v49  ;;  %v2076_v32 = vrot.slane %v1570_v29, %v1995_v55 }
  0xe3   :  { %v2078_v34 = vpop.permute.xlu1 %185  ;;  %v350_v7 = vrot.slane %v1570_v29, %v1799_v63  ;;  %v2084_v15 = vrot.slane %v1570_v29, %v2037_v58  ;;  %v344_v1 = vrot.slane %v1570_v29, %v2644_v21  ;;  %v2089_v31 = vrot.slane %v1570_v29, %v2006_v40 }
  0xe4   :  { %v438_v23 = vmul.f32 %v332_v19, %v2650_v62  ;;  %v439_v4 = vmul.f32 %v332_v19, %v1969_v22  ;;  %v440_v16 = vmul.f32 %v338_v39, %v1933_v59  ;;  %v446_v43 = vmul.f32 %v2073_v44, %v1887_v9 }
  0xe5   :  { %v1572_v10 = vpop.eup %1571  ;;  %v447_v53 = vmul.f32 %v2073_v44, %v1942_v45  ;;  %v450_v0 = vmul.f32 %v2076_v32, %v1978_v47  ;;  %v441_v6 = vmul.f32 %v338_v39, %v1988_v27  ;;  %v451_v51 = vmul.f32 %v2076_v32, %v1971_v38 }
  0xe6   :  { %v2092_v56 = vrot.slane %v1572_v10, %v2638_v48  ;;  %v2099_v20 = vrot.slane %v1572_v10, %v2642_v26  ;;  %v444_v41 = vmul.f32 %v350_v7, %v2048_v28  ;;  %v458_v29 = vmul.f32 %v2084_v15, %v2056_v33 }
  0xe7   :  { %v442_v10 = vmul.f32 %v344_v1, %v1985_v25  ;;  %v448_v3 = vadd.f32 %v446_v43, %v438_v23  ;;  %v449_v13 = vadd.f32 %v447_v53, %v439_v4  ;;  %v452_v42 = vadd.f32 %v450_v0, %v440_v16  ;;  %v2131_v43 = vpop.permute.xlu0 %181 }
  0xe8   :  { %v462_v36 = vmul.f32 %v2092_v56, %v1944_v24  ;;  %v2113_v5 = vpop.permute.xlu1 %189  ;;  %v454_v18 = vmul.f32 %v2089_v31, %v2000_v52  ;;  %v463_v2 = vmul.f32 %v2092_v56, %v1976_v46  ;;  %v466_v8 = vmul.f32 %v2099_v20, %v2015_v11 }
  0xe9   :  { %v467_v24 = vmul.f32 %v2099_v20, %v2031_v30  ;;  %v333_v33 = vmul.f32 %v332_v19, %v2096_v35  ;;  %v443_v28 = vmul.f32 %v344_v1, %v2024_v37  ;;  %v453_v23 = vadd.f32 %v451_v51, %v441_v6 }
  0xea   :  { %v464_v12 = vadd.f32 %v462_v36, %v448_v3  ;;  %v455_v4 = vmul.f32 %v2089_v31, %v2046_v60  ;;  %v465_v16 = vadd.f32 %v463_v2, %v449_v13  ;;  %v468_v53 = vadd.f32 %v466_v8, %v452_v42 }
  0xeb   :  { %v334_v0 = vadd.f32 %v333_v33, %v2066_v14  ;;  %v339_v36 = vmul.f32 %v338_v39, %v2068_v17  ;;  %v445_v19 = vmul.f32 %v350_v7, %v2060_v50  ;;  %v459_v6 = vmul.f32 %v2084_v15, %v2062_v61  ;;  %v2143_v11 = vpop.permute.xlu0 %193 }
  0xec   :  { %v470_v3 = vadd.f32 %v464_v12, %v1919_v57  ;;  %v469_v51 = vadd.f32 %v467_v24, %v453_v23  ;;  %v471_v35 = vadd.f32 %v465_v16, %v437_v54  ;;  %v456_v60 = vadd.f32 %v454_v18, %v442_v10 }
  0xed   :  { %v2136_v52 = vpop.permute.xlu1 %197  ;;  %v345_v13 = vmul.f32 %v344_v1, %v2131_v43  ;;  %v340_v8 = vadd.f32 %v339_v36, %v334_v0  ;;  %v457_v42 = vadd.f32 %v455_v4, %v443_v28  ;;  %v460_v12 = vadd.f32 %v458_v29, %v444_v41 }
  0xee   :  { %v472_v2 = vadd.f32 %v470_v3, %v468_v53  ;;  %v473_v57 = vadd.f32 %v471_v35, %v469_v51  ;;  %v351_v39 = vmul.f32 %v350_v7, %v2078_v34  ;;  %v461_v17 = vadd.f32 %v459_v6, %v445_v19 }
  0xef   :  { %v346_v14 = vadd.f32 %v345_v13, %v340_v8  ;;  %v357_v10 = vmul.f32 %v2073_v44, %v2113_v5  ;;  %v363_v28 = vmul.f32 %v2076_v32, %v2143_v11  ;;  %v369_v7 = vmul.f32 %v2089_v31, %v2136_v52  ;;  %v2155_v29 = vpop.permute.xlu0 %205 }
  0xf0   :  { %v474_v33 = vadd.f32 %v472_v2, %v456_v60  ;;  %v475_v30 = vadd.f32 %v473_v57, %v457_v42 }
  0xf1   :  { %v352_v54 = vadd.f32 %v351_v39, %v346_v14 }
  0xf2   :  { %v2145_v50 = vpop.permute.xlu1 %201  ;;  %v476_v24 = vadd.f32 %v474_v33, %v460_v12  ;;  %v477_v1 = vadd.f32 %v475_v30, %v461_v17  ;;  %v381_v30 = vmul.f32 %v2092_v56, %v2155_v29 }
  0xf3   :  { %v358_v60 = vadd.f32 %v357_v10, %v352_v54  ;;  %v375_v41 = vmul.f32 %v2084_v15, %v2145_v50 }
  0xf4   :  { %1573 = vtanh.f32 %v476_v24 }
  0xf5   :  { %1575 = vtanh.f32 %v477_v1  ;;  %v364_v35 = vadd.f32 %v363_v28, %v358_v60  ;;  %v2662_v60 = vld [vmem:[#allocation25_spill] sm:$0xff] }
  0xf7   :  { %v2157_v14 = vpop.permute.xlu1 %209  ;;  %v370_v18 = vadd.f32 %v369_v7, %v364_v35  ;;  %v2663_v7 = vld [vmem:[#allocation9_spill] sm:$0xff] }
  0xf8   :  { %v387_v44 = vmul.f32 %v2099_v20, %v2157_v14 }
  0xf9   :  { %v376_v17 = vadd.f32 %v375_v41, %v370_v18 }
  0xfb   :  { %v382_v32 = vadd.f32 %v381_v30, %v376_v17  ;;  %v2664_v30 = vld [vmem:[#allocation27_spill] sm:$0xff] }
  0xfd   :  { %v2163_v4 = vadd.f32 %v387_v44, %v382_v32  ;;  %v2665_v44 = vld [vmem:[#allocation6_spill] sm:$0xff] }
  0xfe   :  { %v1574_v23 = vpop.eup %1573 }
  0xff   :  { %v483_v31 = vrot.slane %v1574_v23, %v2638_v48  ;;  %v489_v15 = vrot.slane %v1574_v23, %v2642_v26  ;;  %v1576_v16 = vpop.eup %1575  ;;  %v507_v53 = vrot.slane %v1574_v23, %v1982_v49  ;;  %v513_v3 = vrot.slane %v1574_v23, %v1995_v55  ;;  %401 = vst [vmem:[%s2560_s7] sm:$0x3] %v2163_v4  }
 0x100   :  { %v495_v0 = vrot.slane %v1574_v23, %v2644_v21  ;;  %v501_v6 = vrot.slane %v1574_v23, %v1799_v63  ;;  %v2180_v51 = vrot.slane %v1576_v16, %v2638_v48  ;;  %v2185_v8 = vrot.slane %v1576_v16, %v2642_v26 }
 0x101   :  { %v591_v56 = vmul.f32 %v483_v31, %v2650_v62  ;;  %v592_v20 = vmul.f32 %v483_v31, %v1969_v22  ;;  %v593_v36 = vmul.f32 %v489_v15, %v1933_v59  ;;  %v594_v19 = vmul.f32 %v489_v15, %v1988_v27 }
 0x102   :  { %v599_v2 = vmul.f32 %v507_v53, %v1887_v9  ;;  %v600_v13 = vmul.f32 %v507_v53, %v1942_v45  ;;  %v603_v42 = vmul.f32 %v513_v3, %v1978_v47  ;;  %v604_v57 = vmul.f32 %v513_v3, %v1971_v38 }
 0x103   :  { %v519_v12 = vrot.slane %v1574_v23, %v2006_v40  ;;  %v525_v24 = vrot.slane %v1574_v23, %v2037_v58  ;;  %v595_v54 = vmul.f32 %v495_v0, %v1985_v25  ;;  %v596_v28 = vmul.f32 %v495_v0, %v2024_v37  ;;  %v2666_v23 = vld [vmem:[#allocation7_spill] sm:$0xff]  ;;  %v2672_v58 = vld [vmem:[#allocation26_spill] sm:$0xff] }
 0x104   :  { %v601_v33 = vadd.f32 %v599_v2, %v591_v56  ;;  %v602_v39 = vadd.f32 %v600_v13, %v592_v20  ;;  %v605_v10 = vadd.f32 %v603_v42, %v593_v36  ;;  %v606_v1 = vadd.f32 %v604_v57, %v594_v19  ;;  %v2667_v56 = vld [vmem:[#allocation31_spill] sm:$0xff]  ;;  %v2669_v2 = vld [vmem:[#allocation13_spill] sm:$0xff]  ;;  %v2674_v40 = vld [vmem:[#allocation10_spill] sm:$0xff] }
 0x105   :  { %v597_v35 = vmul.f32 %v501_v6, %v2662_v60  ;;  %v615_v41 = vmul.f32 %v2180_v51, %v2663_v7  ;;  %v616_v18 = vmul.f32 %v2180_v51, %v1976_v46  ;;  %v598_v17 = vmul.f32 %v501_v6, %v2664_v30  ;;  %v2668_v36 = vld [vmem:[#allocation3_spill] sm:$0xff]  ;;  %v1481_v46 = vld [vmem:[%s2561_s1] ss:$0 sm:$0xff] }
 0x106   :  { %v619_v32 = vmul.f32 %v2185_v8, %v2665_v44  ;;  %v620_v16 = vmul.f32 %v2185_v8, %v2666_v23  ;;  %v484_v20 = vmul.f32 %v483_v31, %v2667_v56  ;;  %v607_v19 = vmul.f32 %v519_v12, %v2668_v36  ;;  %v2670_v60 = vld [vmem:[#allocation29_spill] sm:$0xff]  ;;  %v2671_v44 = vld [vmem:[#allocation30_spill] sm:$0xff] }
 0x107   :  { %v608_v13 = vmul.f32 %v519_v12, %v2669_v2  ;;  %v617_v42 = vadd.f32 %v615_v41, %v601_v33  ;;  %v618_v57 = vadd.f32 %v616_v18, %v602_v39  ;;  %v490_v25 = vmul.f32 %v489_v15, %v2671_v44  ;;  %v2673_v56 = vld [vmem:[#allocation14_spill] sm:$0xff] }
 0x108   :  { %v621_v7 = vadd.f32 %v619_v32, %v605_v10  ;;  %v622_v30 = vadd.f32 %v620_v16, %v606_v1  ;;  %v485_v37 = vadd.f32 %v484_v20, %v2670_v60  ;;  %v611_v23 = vmul.f32 %v525_v24, %v2672_v58 }
 0x109   :  { %v612_v31 = vmul.f32 %v525_v24, %v2062_v61  ;;  %v623_v36 = vadd.f32 %v617_v42, %v2673_v56  ;;  %v624_v2 = vadd.f32 %v618_v57, %v2674_v40  ;;  %v496_v33 = vmul.f32 %v495_v0, %v2131_v43 }
 0x10a   :  { %v491_v39 = vadd.f32 %v490_v25, %v485_v37  ;;  %v396_v41 = vmul.f32 %v1481_v46, %v2163_v4  ;;  %v609_v18 = vadd.f32 %v607_v19, %v595_v54  ;;  %v610_v10 = vadd.f32 %v608_v13, %v596_v28 }
 0x10b   :  { %v625_v1 = vadd.f32 %v623_v36, %v621_v7  ;;  %v626_v32 = vadd.f32 %v624_v2, %v622_v30  ;;  %v502_v15 = vmul.f32 %v501_v6, %v2078_v34  ;;  %v613_v58 = vadd.f32 %v611_v23, %v597_v35 }
 0x10c   :  { %v497_v16 = vadd.f32 %v496_v33, %v491_v39  ;;  %v398_v20 = vrot.slane %v396_v41, 1  ;;  %v614_v44 = vadd.f32 %v612_v31, %v598_v17  ;;  %v508_v40 = vmul.f32 %v507_v53, %v2113_v5  ;;  %v2675_v41 = vld [vmem:[#allocation12_spill] sm:$0xff] }
 0x10d   :  { %v627_v61 = vadd.f32 %v625_v1, %v609_v18  ;;  %v628_v60 = vadd.f32 %v626_v32, %v610_v10  ;;  %v514_v46 = vmul.f32 %v513_v3, %v2143_v11  ;;  %v520_v28 = vmul.f32 %v519_v12, %v2136_v52  ;;  %v2676_v32 = vld [vmem:[#allocation8_spill] sm:$0xff] }
 0x10e   :  { %v503_v56 = vadd.f32 %v502_v15, %v497_v16  ;;  %v400_v0 = vadd.f32 %v398_v20, %v2163_v4  ;;  %v526_v7 = vmul.f32 %v525_v24, %v2145_v50  ;;  %v532_v4 = vmul.f32 %v2180_v51, %v2155_v29  ;;  %v2677_v15 = vld [vmem:[#allocation4_spill] sm:$0xff] }
 0x10f   :  { %v629_v25 = vadd.f32 %v627_v61, %v613_v58  ;;  %v630_v37 = vadd.f32 %v628_v60, %v614_v44  ;;  %v538_v53 = vmul.f32 %v2185_v8, %v2157_v14 }
 0x110   :  { %v509_v54 = vadd.f32 %v508_v40, %v503_v56  ;;  %403 = vst [vmem:[%s2560_s7 + $0x2] sm:$0x1] %v400_v0  ;;  %v2678_v0 = vld [vmem:[#allocation5_spill] sm:$0xff] }
 0x111   :  { %1577 = vtanh.f32 %v629_v25 }
 0x112   :  { %v515_v6 = vadd.f32 %v514_v46, %v509_v54  ;;  %1579 = vtanh.f32 %v630_v37  ;;  %v2679_v37 = vld [vmem:[#allocation25_spill] sm:$0xff] }
 0x113   :  { %v2680_v54 = vld [vmem:[#allocation9_spill] sm:$0xff] }
 0x114   :  { %v521_v35 = vadd.f32 %v520_v28, %v515_v6  ;;  %v2681_v28 = vld [vmem:[#allocation24_spill] sm:$0xff] }
 0x116   :  { %v527_v58 = vadd.f32 %v526_v7, %v521_v35  ;;  %v2682_v7 = vld [vmem:[#allocation27_spill] sm:$0xff] }
 0x118   :  { %v533_v61 = vadd.f32 %v532_v4, %v527_v58  ;;  %v2683_v58 = vld [vmem:[#allocation6_spill] sm:$0xff] }
 0x11a   :  { %v2230_v3 = vadd.f32 %v538_v53, %v533_v61  ;;  %v2684_v53 = vld [vmem:[#allocation7_spill] sm:$0xff] }
 0x11b   :  { %v1578_v60 = vpop.eup %1577 }
 0x11c   :  { %v636_v30 = vrot.slane %v1578_v60, %v2638_v48  ;;  %v642_v17 = vrot.slane %v1578_v60, %v2642_v26  ;;  %1485 = vst [vmem:[%s2560_s7 + $0x4] sm:$0x3] %v2230_v3   ;;  %v1580_v12 = vpop.eup %1579  ;;  %v660_v51 = vrot.slane %v1578_v60, %v1982_v49  ;;  %v666_v24 = vrot.slane %v1578_v60, %v1995_v55 }
 0x11d   :  { %v648_v23 = vrot.slane %v1578_v60, %v2644_v21  ;;  %v654_v2 = vrot.slane %v1578_v60, %v1799_v63  ;;  %v684_v13 = vrot.slane %v1580_v12, %v2638_v48  ;;  %v690_v31 = vrot.slane %v1580_v12, %v2642_v26 }
 0x11e   :  { %v744_v44 = vmul.f32 %v636_v30, %v2650_v62  ;;  %v745_v8 = vmul.f32 %v636_v30, %v1969_v22  ;;  %v746_v36 = vmul.f32 %v642_v17, %v1933_v59  ;;  %v747_v19 = vmul.f32 %v642_v17, %v1988_v27 }
 0x11f   :  { %v752_v42 = vmul.f32 %v660_v51, %v1887_v9  ;;  %v753_v57 = vmul.f32 %v660_v51, %v1942_v45  ;;  %v756_v33 = vmul.f32 %v666_v24, %v1978_v47  ;;  %v757_v39 = vmul.f32 %v666_v24, %v1971_v38 }
 0x120   :  { %v672_v18 = vrot.slane %v1578_v60, %v2675_v41  ;;  %v678_v16 = vrot.slane %v1578_v60, %v2676_v32  ;;  %v748_v20 = vmul.f32 %v648_v23, %v2677_v15  ;;  %v749_v25 = vmul.f32 %v648_v23, %v2678_v0  ;;  %v2689_v0 = vld [vmem:[#allocation30_spill] sm:$0xff]  ;;  %v2691_v32 = vld [vmem:[#allocation28_spill] sm:$0xff]  ;;  %v2693_v41 = vld [vmem:[#allocation11_spill] sm:$0xff] }
 0x121   :  { %v754_v10 = vadd.f32 %v752_v42, %v744_v44  ;;  %v755_v1 = vadd.f32 %v753_v57, %v745_v8  ;;  %v758_v56 = vadd.f32 %v756_v33, %v746_v36  ;;  %v759_v40 = vadd.f32 %v757_v39, %v747_v19  ;;  %v2685_v44 = vld [vmem:[#allocation31_spill] sm:$0xff]  ;;  %v2687_v36 = vld [vmem:[#allocation13_spill] sm:$0xff]  ;;  %v2690_v15 = vld [vmem:[#allocation26_spill] sm:$0xff] }
 0x122   :  { %v750_v46 = vmul.f32 %v654_v2, %v2679_v37  ;;  %v768_v6 = vmul.f32 %v684_v13, %v2680_v54  ;;  %v769_v35 = vmul.f32 %v684_v13, %v2681_v28  ;;  %v751_v4 = vmul.f32 %v654_v2, %v2682_v7  ;;  %v2686_v8 = vld [vmem:[#allocation3_spill] sm:$0xff]  ;;  %v1484_v39 = vld [vmem:[%s2561_s1 + $0x1] ss:$0 sm:$0xff] }
 0x123   :  { %v772_v61 = vmul.f32 %v690_v31, %v2683_v58  ;;  %v773_v12 = vmul.f32 %v690_v31, %v2684_v53  ;;  %v637_v60 = vmul.f32 %v636_v30, %v2685_v44  ;;  %v760_v42 = vmul.f32 %v672_v18, %v2686_v8  ;;  %v2688_v37 = vld [vmem:[#allocation29_spill] sm:$0xff]  ;;  %v2692_v44 = vld [vmem:[#allocation15_spill] sm:$0xff] }
 0x124   :  { %v761_v19 = vmul.f32 %v672_v18, %v2687_v36  ;;  %v770_v57 = vadd.f32 %v768_v6, %v754_v10  ;;  %v771_v33 = vadd.f32 %v769_v35, %v755_v1  ;;  %v643_v58 = vmul.f32 %v642_v17, %v2689_v0 }
 0x125   :  { %v774_v54 = vadd.f32 %v772_v61, %v758_v56  ;;  %v775_v28 = vadd.f32 %v773_v12, %v759_v40  ;;  %v638_v7 = vadd.f32 %v637_v60, %v2688_v37  ;;  %v764_v53 = vmul.f32 %v678_v16, %v2690_v15 }
 0x126   :  { %v765_v30 = vmul.f32 %v678_v16, %v2691_v32  ;;  %v776_v8 = vadd.f32 %v770_v57, %v2692_v44  ;;  %v777_v36 = vadd.f32 %v771_v33, %v2693_v41  ;;  %v649_v10 = vmul.f32 %v648_v23, %v2131_v43 }
 0x127   :  { %v644_v1 = vadd.f32 %v643_v58, %v638_v7  ;;  %v548_v6 = vmul.f32 %v1484_v39, %v2230_v3  ;;  %v762_v35 = vadd.f32 %v760_v42, %v748_v20  ;;  %v763_v56 = vadd.f32 %v761_v19, %v749_v25 }
 0x128   :  { %v778_v40 = vadd.f32 %v776_v8, %v774_v54  ;;  %v779_v61 = vadd.f32 %v777_v36, %v775_v28  ;;  %v655_v17 = vmul.f32 %v654_v2, %v2078_v34  ;;  %v766_v15 = vadd.f32 %v764_v53, %v750_v46 }
 0x129   :  { %v650_v12 = vadd.f32 %v649_v10, %v644_v1  ;;  %v550_v60 = vrot.slane %v548_v6, 1  ;;  %v767_v0 = vadd.f32 %v765_v30, %v751_v4  ;;  %v661_v41 = vmul.f32 %v660_v51, %v2113_v5  ;;  %v2694_v6 = vld [vmem:[#allocation12_spill] sm:$0xff] }
 0x12a   :  { %v780_v32 = vadd.f32 %v778_v40, %v762_v35  ;;  %v781_v37 = vadd.f32 %v779_v61, %v763_v56  ;;  %v667_v20 = vmul.f32 %v666_v24, %v2143_v11  ;;  %v673_v46 = vmul.f32 %v672_v18, %v2136_v52  ;;  %v2695_v61 = vld [vmem:[#allocation8_spill] sm:$0xff] }
 0x12b   :  { %v656_v44 = vadd.f32 %v655_v17, %v650_v12  ;;  %v552_v23 = vadd.f32 %v550_v60, %v2230_v3  ;;  %v679_v28 = vmul.f32 %v678_v16, %v2145_v50  ;;  %v685_v51 = vmul.f32 %v684_v13, %v2155_v29  ;;  %v2696_v17 = vld [vmem:[#allocation4_spill] sm:$0xff] }
 0x12c   :  { %v782_v7 = vadd.f32 %v780_v32, %v766_v15  ;;  %v783_v58 = vadd.f32 %v781_v37, %v767_v0  ;;  %v691_v15 = vmul.f32 %v690_v31, %v2157_v14 }
 0x12d   :  { %v662_v25 = vadd.f32 %v661_v41, %v656_v44  ;;  %1487 = vst [vmem:[%s2560_s7 + $0x6] sm:$0x1] %v552_v23  ;;  %v2697_v23 = vld [vmem:[#allocation5_spill] sm:$0xff] }
 0x12e   :  { %1581 = vtanh.f32 %v782_v7 }
 0x12f   :  { %v668_v2 = vadd.f32 %v667_v20, %v662_v25  ;;  %1583 = vtanh.f32 %v783_v58  ;;  %v2698_v58 = vld [vmem:[#allocation25_spill] sm:$0xff] }
 0x130   :  { %v2699_v25 = vld [vmem:[#allocation9_spill] sm:$0xff] }
 0x131   :  { %v674_v54 = vadd.f32 %v673_v46, %v668_v2  ;;  %v2700_v46 = vld [vmem:[#allocation24_spill] sm:$0xff] }
 0x133   :  { %v680_v3 = vadd.f32 %v679_v28, %v674_v54  ;;  %v2701_v28 = vld [vmem:[#allocation27_spill] sm:$0xff] }
 0x135   :  { %v686_v32 = vadd.f32 %v685_v51, %v680_v3  ;;  %v2702_v3 = vld [vmem:[#allocation6_spill] sm:$0xff] }
 0x137   :  { %v2287_v24 = vadd.f32 %v691_v15, %v686_v32  ;;  %v2703_v15 = vld [vmem:[#allocation7_spill] sm:$0xff] }
 0x138   :  { %v1582_v0 = vpop.eup %1581 }
 0x139   :  { %v789_v37 = vrot.slane %v1582_v0, %v2638_v48  ;;  %v795_v4 = vrot.slane %v1582_v0, %v2642_v26  ;;  %1491 = vst [vmem:[%s2560_s7 + $0x8] sm:$0x3] %v2287_v24   ;;  %v1584_v18 = vpop.eup %1583  ;;  %v813_v16 = vrot.slane %v1582_v0, %v1982_v49  ;;  %v819_v13 = vrot.slane %v1582_v0, %v1995_v55 }
 0x13a   :  { %v801_v8 = vrot.slane %v1582_v0, %v2644_v21  ;;  %v807_v19 = vrot.slane %v1582_v0, %v1799_v63  ;;  %v837_v57 = vrot.slane %v1584_v18, %v2638_v48  ;;  %v843_v30 = vrot.slane %v1584_v18, %v2642_v26 }
 0x13b   :  { %v897_v53 = vmul.f32 %v789_v37, %v2650_v62  ;;  %v898_v31 = vmul.f32 %v789_v37, %v1969_v22  ;;  %v899_v42 = vmul.f32 %v795_v4, %v1933_v59  ;;  %v900_v36 = vmul.f32 %v795_v4, %v1988_v27 }
 0x13c   :  { %v905_v33 = vmul.f32 %v813_v16, %v1887_v9  ;;  %v906_v39 = vmul.f32 %v813_v16, %v1942_v45  ;;  %v909_v10 = vmul.f32 %v819_v13, %v1978_v47  ;;  %v910_v1 = vmul.f32 %v819_v13, %v1971_v38 }
 0x13d   :  { %v825_v35 = vrot.slane %v1582_v0, %v2694_v6  ;;  %v831_v12 = vrot.slane %v1582_v0, %v2695_v61  ;;  %v901_v60 = vmul.f32 %v801_v8, %v2696_v17  ;;  %v902_v7 = vmul.f32 %v801_v8, %v2697_v23  ;;  %v2708_v23 = vld [vmem:[#allocation30_spill] sm:$0xff]  ;;  %v2710_v61 = vld [vmem:[#allocation28_spill] sm:$0xff] }
 0x13e   :  { %v907_v56 = vadd.f32 %v905_v33, %v897_v53  ;;  %v908_v40 = vadd.f32 %v906_v39, %v898_v31  ;;  %v911_v44 = vadd.f32 %v909_v10, %v899_v42  ;;  %v912_v41 = vadd.f32 %v910_v1, %v900_v36  ;;  %v2704_v53 = vld [vmem:[#allocation31_spill] sm:$0xff]  ;;  %v2706_v42 = vld [vmem:[#allocation13_spill] sm:$0xff]  ;;  %v2709_v17 = vld [vmem:[#allocation26_spill] sm:$0xff] }
 0x13f   :  { %v903_v20 = vmul.f32 %v807_v19, %v2698_v58  ;;  %v921_v2 = vmul.f32 %v837_v57, %v2699_v25  ;;  %v922_v54 = vmul.f32 %v837_v57, %v2700_v46  ;;  %v904_v51 = vmul.f32 %v807_v19, %v2701_v28  ;;  %v2705_v31 = vld [vmem:[#allocation3_spill] sm:$0xff]  ;;  %v1490_v1 = vld [vmem:[%s2561_s1 + $0x2] ss:$0 sm:$0xff]  ;;  %v2712_v6 = vld [vmem:[#allocation20_spill] sm:$0xff] }
 0x140   :  { %v925_v32 = vmul.f32 %v843_v30, %v2702_v3  ;;  %v926_v18 = vmul.f32 %v843_v30, %v2703_v15  ;;  %v790_v0 = vmul.f32 %v789_v37, %v2704_v53  ;;  %v913_v33 = vmul.f32 %v825_v35, %v2705_v31  ;;  %v2707_v58 = vld [vmem:[#allocation29_spill] sm:$0xff]  ;;  %v2711_v53 = vld [vmem:[#allocation16_spill] sm:$0xff] }
 0x141   :  { %v914_v36 = vmul.f32 %v825_v35, %v2706_v42  ;;  %v923_v39 = vadd.f32 %v921_v2, %v907_v56  ;;  %v924_v10 = vadd.f32 %v922_v54, %v908_v40  ;;  %v796_v3 = vmul.f32 %v795_v4, %v2708_v23 }
 0x142   :  { %v927_v25 = vadd.f32 %v925_v32, %v911_v44  ;;  %v928_v46 = vadd.f32 %v926_v18, %v912_v41  ;;  %v791_v28 = vadd.f32 %v790_v0, %v2707_v58  ;;  %v917_v15 = vmul.f32 %v831_v12, %v2709_v17 }
 0x143   :  { %v918_v37 = vmul.f32 %v831_v12, %v2710_v61  ;;  %v929_v31 = vadd.f32 %v923_v39, %v2711_v53  ;;  %v930_v42 = vadd.f32 %v924_v10, %v2712_v6  ;;  %v802_v56 = vmul.f32 %v801_v8, %v2131_v43 }
 0x144   :  { %v797_v40 = vadd.f32 %v796_v3, %v791_v28  ;;  %v701_v2 = vmul.f32 %v1490_v1, %v2287_v24  ;;  %v915_v54 = vadd.f32 %v913_v33, %v901_v60  ;;  %v916_v44 = vadd.f32 %v914_v36, %v902_v7 }
 0x145   :  { %v931_v41 = vadd.f32 %v929_v31, %v927_v25  ;;  %v932_v32 = vadd.f32 %v930_v42, %v928_v46  ;;  %v808_v4 = vmul.f32 %v807_v19, %v2078_v34  ;;  %v919_v17 = vadd.f32 %v917_v15, %v903_v20 }
 0x146   :  { %v803_v18 = vadd.f32 %v802_v56, %v797_v40  ;;  %v703_v0 = vrot.slane %v701_v2, 1  ;;  %v920_v23 = vadd.f32 %v918_v37, %v904_v51  ;;  %v814_v6 = vmul.f32 %v813_v16, %v2113_v5  ;;  %v2713_v2 = vld [vmem:[#allocation12_spill] sm:$0xff] }
 0x147   :  { %v933_v61 = vadd.f32 %v931_v41, %v915_v54  ;;  %v934_v58 = vadd.f32 %v932_v32, %v916_v44  ;;  %v820_v60 = vmul.f32 %v819_v13, %v2143_v11  ;;  %v826_v20 = vmul.f32 %v825_v35, %v2136_v52  ;;  %v2714_v32 = vld [vmem:[#allocation8_spill] sm:$0xff] }
 0x148   :  { %v809_v53 = vadd.f32 %v808_v4, %v803_v18  ;;  %v705_v8 = vadd.f32 %v703_v0, %v2287_v24  ;;  %v832_v46 = vmul.f32 %v831_v12, %v2145_v50  ;;  %v838_v16 = vmul.f32 %v837_v57, %v2155_v29  ;;  %v2715_v4 = vld [vmem:[#allocation4_spill] sm:$0xff] }
 0x149   :  { %v935_v28 = vadd.f32 %v933_v61, %v919_v17  ;;  %v936_v3 = vadd.f32 %v934_v58, %v920_v23  ;;  %v844_v17 = vmul.f32 %v843_v30, %v2157_v14 }
 0x14a   :  { %v815_v7 = vadd.f32 %v814_v6, %v809_v53  ;;  %1493 = vst [vmem:[%s2560_s7 + $0xa] sm:$0x1] %v705_v8  ;;  %v2716_v8 = vld [vmem:[#allocation5_spill] sm:$0xff] }
 0x14b   :  { %1585 = vtanh.f32 %v935_v28 }
 0x14c   :  { %v821_v19 = vadd.f32 %v820_v60, %v815_v7  ;;  %1587 = vtanh.f32 %v936_v3  ;;  %v2717_v3 = vld [vmem:[#allocation25_spill] sm:$0xff] }
 0x14d   :  { %v2718_v7 = vld [vmem:[#allocation9_spill] sm:$0xff] }
 0x14e   :  { %v827_v25 = vadd.f32 %v826_v20, %v821_v19  ;;  %v2719_v20 = vld [vmem:[#allocation24_spill] sm:$0xff] }
 0x150   :  { %v833_v24 = vadd.f32 %v832_v46, %v827_v25  ;;  %v2720_v46 = vld [vmem:[#allocation27_spill] sm:$0xff] }
 0x152   :  { %v839_v61 = vadd.f32 %v838_v16, %v833_v24  ;;  %v2721_v24 = vld [vmem:[#allocation6_spill] sm:$0xff] }
 0x154   :  { %v2344_v13 = vadd.f32 %v844_v17, %v839_v61  ;;  %v2722_v17 = vld [vmem:[#allocation7_spill] sm:$0xff] }
 0x155   :  { %v1586_v23 = vpop.eup %1585 }
 0x156   :  { %v942_v58 = vrot.slane %v1586_v23, %v2638_v48  ;;  %v948_v51 = vrot.slane %v1586_v23, %v2642_v26  ;;  %1497 = vst [vmem:[%s2560_s7 + $0xc] sm:$0x3] %v2344_v13   ;;  %v1588_v35 = vpop.eup %1587  ;;  %v966_v12 = vrot.slane %v1586_v23, %v1982_v49  ;;  %v972_v57 = vrot.slane %v1586_v23, %v1995_v55 }
 0x157   :  { %v954_v31 = vrot.slane %v1586_v23, %v2644_v21  ;;  %v960_v36 = vrot.slane %v1586_v23, %v1799_v63  ;;  %v990_v39 = vrot.slane %v1588_v35, %v2638_v48  ;;  %v996_v37 = vrot.slane %v1588_v35, %v2642_v26 }
 0x158   :  { %v1050_v15 = vmul.f32 %v942_v58, %v2650_v62  ;;  %v1051_v30 = vmul.f32 %v942_v58, %v1969_v22  ;;  %v1052_v33 = vmul.f32 %v948_v51, %v1933_v59  ;;  %v1053_v42 = vmul.f32 %v948_v51, %v1988_v27 }
 0x159   :  { %v1058_v10 = vmul.f32 %v966_v12, %v1887_v9  ;;  %v1059_v1 = vmul.f32 %v966_v12, %v1942_v45  ;;  %v1062_v56 = vmul.f32 %v972_v57, %v1978_v47  ;;  %v1063_v40 = vmul.f32 %v972_v57, %v1971_v38 }
 0x15a   :  { %v978_v54 = vrot.slane %v1586_v23, %v2713_v2  ;;  %v984_v18 = vrot.slane %v1586_v23, %v2714_v32  ;;  %v1054_v0 = vmul.f32 %v954_v31, %v2715_v4  ;;  %v1055_v28 = vmul.f32 %v954_v31, %v2716_v8  ;;  %v2727_v8 = vld [vmem:[#allocation30_spill] sm:$0xff]  ;;  %v2729_v32 = vld [vmem:[#allocation28_spill] sm:$0xff]  ;;  %v2731_v2 = vld [vmem:[#allocation21_spill] sm:$0xff] }
 0x15b   :  { %v1060_v44 = vadd.f32 %v1058_v10, %v1050_v15  ;;  %v1061_v41 = vadd.f32 %v1059_v1, %v1051_v30  ;;  %v1064_v53 = vadd.f32 %v1062_v56, %v1052_v33  ;;  %v1065_v6 = vadd.f32 %v1063_v40, %v1053_v42  ;;  %v2723_v15 = vld [vmem:[#allocation31_spill] sm:$0xff]  ;;  %v2725_v33 = vld [vmem:[#allocation13_spill] sm:$0xff]  ;;  %v2728_v4 = vld [vmem:[#allocation26_spill] sm:$0xff] }
 0x15c   :  { %v1056_v60 = vmul.f32 %v960_v36, %v2717_v3  ;;  %v1074_v19 = vmul.f32 %v990_v39, %v2718_v7  ;;  %v1075_v25 = vmul.f32 %v990_v39, %v2719_v20  ;;  %v1057_v16 = vmul.f32 %v960_v36, %v2720_v46  ;;  %v2724_v30 = vld [vmem:[#allocation3_spill] sm:$0xff]  ;;  %v1496_v40 = vld [vmem:[%s2561_s1 + $0x3] ss:$0 sm:$0xff] }
 0x15d   :  { %v1078_v61 = vmul.f32 %v996_v37, %v2721_v24  ;;  %v1079_v35 = vmul.f32 %v996_v37, %v2722_v17  ;;  %v943_v23 = vmul.f32 %v942_v58, %v2723_v15  ;;  %v1066_v10 = vmul.f32 %v978_v54, %v2724_v30  ;;  %v2726_v3 = vld [vmem:[#allocation29_spill] sm:$0xff] }
 0x15e   :  { %v1067_v42 = vmul.f32 %v978_v54, %v2725_v33  ;;  %v1076_v1 = vadd.f32 %v1074_v19, %v1060_v44  ;;  %v1077_v56 = vadd.f32 %v1075_v25, %v1061_v41  ;;  %v949_v24 = vmul.f32 %v948_v51, %v2727_v8  ;;  %v2730_v15 = vld [vmem:[#allocation17_spill] sm:$0xff] }
 0x15f   :  { %v1080_v7 = vadd.f32 %v1078_v61, %v1064_v53  ;;  %v1081_v20 = vadd.f32 %v1079_v35, %v1065_v6  ;;  %v944_v46 = vadd.f32 %v943_v23, %v2726_v3  ;;  %v1070_v17 = vmul.f32 %v984_v18, %v2728_v4 }
 0x160   :  { %v1071_v58 = vmul.f32 %v984_v18, %v2729_v32  ;;  %v1082_v30 = vadd.f32 %v1076_v1, %v2730_v15  ;;  %v1083_v33 = vadd.f32 %v1077_v56, %v2731_v2  ;;  %v955_v44 = vmul.f32 %v954_v31, %v2131_v43 }
 0x161   :  { %v950_v41 = vadd.f32 %v949_v24, %v944_v46  ;;  %v854_v19 = vmul.f32 %v1496_v40, %v2344_v13  ;;  %v1068_v25 = vadd.f32 %v1066_v10, %v1054_v0  ;;  %v1069_v53 = vadd.f32 %v1067_v42, %v1055_v28 }
 0x162   :  { %v1084_v6 = vadd.f32 %v1082_v30, %v1080_v7  ;;  %v1085_v61 = vadd.f32 %v1083_v33, %v1081_v20  ;;  %v961_v51 = vmul.f32 %v960_v36, %v2078_v34  ;;  %v1072_v4 = vadd.f32 %v1070_v17, %v1056_v60 }
 0x163   :  { %v956_v35 = vadd.f32 %v955_v44, %v950_v41  ;;  %v856_v23 = vrot.slane %v854_v19, 1  ;;  %v1073_v8 = vadd.f32 %v1071_v58, %v1057_v16  ;;  %v967_v2 = vmul.f32 %v966_v12, %v2113_v5  ;;  %v2732_v19 = vld [vmem:[#allocation12_spill] sm:$0xff] }
 0x164   :  { %v1086_v32 = vadd.f32 %v1084_v6, %v1068_v25  ;;  %v1087_v3 = vadd.f32 %v1085_v61, %v1069_v53  ;;  %v973_v0 = vmul.f32 %v972_v57, %v2143_v11  ;;  %v979_v60 = vmul.f32 %v978_v54, %v2136_v52  ;;  %v2733_v61 = vld [vmem:[#allocation8_spill] sm:$0xff] }
 0x165   :  { %v962_v15 = vadd.f32 %v961_v51, %v956_v35  ;;  %v858_v31 = vadd.f32 %v856_v23, %v2344_v13  ;;  %v985_v20 = vmul.f32 %v984_v18, %v2145_v50  ;;  %v991_v12 = vmul.f32 %v990_v39, %v2155_v29  ;;  %v2734_v51 = vld [vmem:[#allocation4_spill] sm:$0xff] }
 0x166   :  { %v1088_v46 = vadd.f32 %v1086_v32, %v1072_v4  ;;  %v1089_v24 = vadd.f32 %v1087_v3, %v1073_v8  ;;  %v997_v4 = vmul.f32 %v996_v37, %v2157_v14 }
 0x167   :  { %v968_v28 = vadd.f32 %v967_v2, %v962_v15  ;;  %1499 = vst [vmem:[%s2560_s7 + $0xe] sm:$0x1] %v858_v31  ;;  %v2735_v31 = vld [vmem:[#allocation5_spill] sm:$0xff] }
 0x168   :  { %1589 = vtanh.f32 %v1088_v46 }
 0x169   :  { %v974_v36 = vadd.f32 %v973_v0, %v968_v28  ;;  %1591 = vtanh.f32 %v1089_v24  ;;  %v2736_v24 = vld [vmem:[#allocation25_spill] sm:$0xff] }
 0x16a   :  { %v2737_v28 = vld [vmem:[#allocation9_spill] sm:$0xff] }
 0x16b   :  { %v980_v7 = vadd.f32 %v979_v60, %v974_v36  ;;  %v2738_v60 = vld [vmem:[#allocation24_spill] sm:$0xff] }
 0x16d   :  { %v986_v13 = vadd.f32 %v985_v20, %v980_v7  ;;  %v2739_v20 = vld [vmem:[#allocation27_spill] sm:$0xff] }
 0x16f   :  { %v992_v32 = vadd.f32 %v991_v12, %v986_v13  ;;  %v2740_v13 = vld [vmem:[#allocation6_spill] sm:$0xff] }
 0x171   :  { %v2401_v57 = vadd.f32 %v997_v4, %v992_v32  ;;  %v2741_v4 = vld [vmem:[#allocation7_spill] sm:$0xff] }
 0x172   :  { %v1590_v8 = vpop.eup %1589 }
 0x173   :  { %v1095_v3 = vrot.slane %v1590_v8, %v2638_v48  ;;  %v1101_v16 = vrot.slane %v1590_v8, %v2642_v26  ;;  %1503 = vst [vmem:[%s2560_s7 + $0x10] sm:$0x3] %v2401_v57   ;;  %v1592_v54 = vpop.eup %1591  ;;  %v1119_v18 = vrot.slane %v1590_v8, %v1982_v49  ;;  %v1125_v39 = vrot.slane %v1590_v8, %v1995_v55 }
 0x174   :  { %v1107_v30 = vrot.slane %v1590_v8, %v2644_v21  ;;  %v1113_v42 = vrot.slane %v1590_v8, %v1799_v63  ;;  %v1143_v1 = vrot.slane %v1592_v54, %v2638_v48  ;;  %v1149_v58 = vrot.slane %v1592_v54, %v2642_v26 }
 0x175   :  { %v1203_v17 = vmul.f32 %v1095_v3, %v2650_v62  ;;  %v1204_v37 = vmul.f32 %v1095_v3, %v1969_v22  ;;  %v1205_v10 = vmul.f32 %v1101_v16, %v1933_v59  ;;  %v1206_v33 = vmul.f32 %v1101_v16, %v1988_v27 }
 0x176   :  { %v1211_v56 = vmul.f32 %v1119_v18, %v1887_v9  ;;  %v1212_v40 = vmul.f32 %v1119_v18, %v1942_v45  ;;  %v1215_v44 = vmul.f32 %v1125_v39, %v1978_v47  ;;  %v1216_v41 = vmul.f32 %v1125_v39, %v1971_v38 }
 0x177   :  { %v1131_v25 = vrot.slane %v1590_v8, %v2732_v19  ;;  %v1137_v35 = vrot.slane %v1590_v8, %v2733_v61  ;;  %v1207_v23 = vmul.f32 %v1107_v30, %v2734_v51  ;;  %v1208_v46 = vmul.f32 %v1107_v30, %v2735_v31  ;;  %v2746_v31 = vld [vmem:[#allocation30_spill] sm:$0xff]  ;;  %v2748_v61 = vld [vmem:[#allocation28_spill] sm:$0xff] }
 0x178   :  { %v1213_v53 = vadd.f32 %v1211_v56, %v1203_v17  ;;  %v1214_v6 = vadd.f32 %v1212_v40, %v1204_v37  ;;  %v1217_v15 = vadd.f32 %v1215_v44, %v1205_v10  ;;  %v1218_v2 = vadd.f32 %v1216_v41, %v1206_v33  ;;  %v2742_v17 = vld [vmem:[#allocation31_spill] sm:$0xff]  ;;  %v2744_v10 = vld [vmem:[#allocation13_spill] sm:$0xff]  ;;  %v2747_v51 = vld [vmem:[#allocation26_spill] sm:$0xff] }
 0x179   :  { %v1209_v0 = vmul.f32 %v1113_v42, %v2736_v24  ;;  %v1227_v36 = vmul.f32 %v1143_v1, %v2737_v28  ;;  %v1228_v7 = vmul.f32 %v1143_v1, %v2738_v60  ;;  %v1210_v12 = vmul.f32 %v1113_v42, %v2739_v20  ;;  %v2743_v37 = vld [vmem:[#allocation3_spill] sm:$0xff]  ;;  %v1502_v41 = vld [vmem:[%s2561_s1 + $0x4] ss:$0 sm:$0xff]  ;;  %v2750_v19 = vld [vmem:[#allocation22_spill] sm:$0xff] }
 0x17a   :  { %v1231_v32 = vmul.f32 %v1149_v58, %v2740_v13  ;;  %v1232_v54 = vmul.f32 %v1149_v58, %v2741_v4  ;;  %v1096_v8 = vmul.f32 %v1095_v3, %v2742_v17  ;;  %v1219_v56 = vmul.f32 %v1131_v25, %v2743_v37  ;;  %v2745_v24 = vld [vmem:[#allocation29_spill] sm:$0xff]  ;;  %v2749_v17 = vld [vmem:[#allocation18_spill] sm:$0xff] }
 0x17b   :  { %v1220_v33 = vmul.f32 %v1131_v25, %v2744_v10  ;;  %v1229_v40 = vadd.f32 %v1227_v36, %v1213_v53  ;;  %v1230_v44 = vadd.f32 %v1228_v7, %v1214_v6  ;;  %v1102_v13 = vmul.f32 %v1101_v16, %v2746_v31 }
 0x17c   :  { %v1233_v28 = vadd.f32 %v1231_v32, %v1217_v15  ;;  %v1234_v60 = vadd.f32 %v1232_v54, %v1218_v2  ;;  %v1097_v20 = vadd.f32 %v1096_v8, %v2745_v24  ;;  %v1223_v4 = vmul.f32 %v1137_v35, %v2747_v51 }
 0x17d   :  { %v1224_v3 = vmul.f32 %v1137_v35, %v2748_v61  ;;  %v1235_v37 = vadd.f32 %v1229_v40, %v2749_v17  ;;  %v1236_v10 = vadd.f32 %v1230_v44, %v2750_v19  ;;  %v1108_v53 = vmul.f32 %v1107_v30, %v2131_v43 }
 0x17e   :  { %v1103_v6 = vadd.f32 %v1102_v13, %v1097_v20  ;;  %v1007_v36 = vmul.f32 %v1502_v41, %v2401_v57  ;;  %v1221_v7 = vadd.f32 %v1219_v56, %v1207_v23  ;;  %v1222_v15 = vadd.f32 %v1220_v33, %v1208_v46 }
 0x17f   :  { %v1237_v2 = vadd.f32 %v1235_v37, %v1233_v28  ;;  %v1238_v32 = vadd.f32 %v1236_v10, %v1234_v60  ;;  %v1114_v16 = vmul.f32 %v1113_v42, %v2078_v34  ;;  %v1225_v51 = vadd.f32 %v1223_v4, %v1209_v0 }
 0x180   :  { %v1109_v54 = vadd.f32 %v1108_v53, %v1103_v6  ;;  %v1009_v8 = vrot.slane %v1007_v36, 1  ;;  %v1226_v31 = vadd.f32 %v1224_v3, %v1210_v12  ;;  %v1120_v19 = vmul.f32 %v1119_v18, %v2113_v5  ;;  %v2751_v53 = vld [vmem:[#allocation12_spill] sm:$0xff] }
 0x181   :  { %v1239_v61 = vadd.f32 %v1237_v2, %v1221_v7  ;;  %v1240_v24 = vadd.f32 %v1238_v32, %v1222_v15  ;;  %v1126_v23 = vmul.f32 %v1125_v39, %v2143_v11  ;;  %v1132_v0 = vmul.f32 %v1131_v25, %v2136_v52  ;;  %v2752_v7 = vld [vmem:[#allocation8_spill] sm:$0xff] }
 0x182   :  { %v1115_v17 = vadd.f32 %v1114_v16, %v1109_v54  ;;  %v1011_v30 = vadd.f32 %v1009_v8, %v2401_v57  ;;  %v1138_v60 = vmul.f32 %v1137_v35, %v2145_v50  ;;  %v1144_v18 = vmul.f32 %v1143_v1, %v2155_v29  ;;  %v2753_v15 = vld [vmem:[#allocation4_spill] sm:$0xff]  ;;  %v2754_v16 = vld [vmem:[#allocation5_spill] sm:$0xff] }
 0x183   :  { %v1241_v20 = vadd.f32 %v1239_v61, %v1225_v51  ;;  %v1242_v13 = vadd.f32 %v1240_v24, %v1226_v31  ;;  %v1150_v51 = vmul.f32 %v1149_v58, %v2157_v14  ;;  %v2755_v8 = vld [vmem:[#allocation25_spill] sm:$0xff] }
 0x184   :  { %v1121_v46 = vadd.f32 %v1120_v19, %v1115_v17  ;;  %1505 = vst [vmem:[%s2560_s7 + $0x12] sm:$0x1] %v1011_v30  ;;  %v2756_v17 = vld [vmem:[#allocation9_spill] sm:$0xff]  ;;  %v2757_v30 = vld [vmem:[#allocation24_spill] sm:$0xff] }
 0x185   :  { %1593 = vtanh.f32 %v1241_v20  ;;  %v2758_v20 = vld [vmem:[#allocation27_spill] sm:$0xff] }
 0x186   :  { %v1127_v42 = vadd.f32 %v1126_v23, %v1121_v46  ;;  %1595 = vtanh.f32 %v1242_v13  ;;  %v2759_v13 = vld [vmem:[#allocation6_spill] sm:$0xff]  ;;  %v2760_v46 = vld [vmem:[#allocation7_spill] sm:$0xff] }
 0x188   :  { %v1133_v28 = vadd.f32 %v1132_v0, %v1127_v42  ;;  %v2761_v0 = vld [vmem:[#allocation31_spill] sm:$0xff] }
 0x18a   :  { %v1139_v57 = vadd.f32 %v1138_v60, %v1133_v28  ;;  %v2762_v60 = vld [vmem:[#allocation3_spill] sm:$0xff] }
 0x18c   :  { %v1145_v61 = vadd.f32 %v1144_v18, %v1139_v57  ;;  %v2763_v57 = vld [vmem:[#allocation13_spill] sm:$0xff] }
 0x18e   :  { %v2458_v39 = vadd.f32 %v1150_v51, %v1145_v61 }
 0x18f   :  { %v1594_v31 = vpop.eup %1593 }
 0x190   :  { %v1248_v24 = vrot.slane %v1594_v31, %v2638_v48  ;;  %v1254_v12 = vrot.slane %v1594_v31, %v2642_v26  ;;  %1509 = vst [vmem:[%s2560_s7 + $0x14] sm:$0x3] %v2458_v39   ;;  %v1596_v25 = vpop.eup %1595  ;;  %v1272_v35 = vrot.slane %v1594_v31, %v1982_v49  ;;  %v1278_v1 = vrot.slane %v1594_v31, %v1995_v55 }
 0x191   :  { %v1260_v37 = vrot.slane %v1594_v31, %v2644_v21  ;;  %v1266_v33 = vrot.slane %v1594_v31, %v1799_v63  ;;  %v1296_v40 = vrot.slane %v1596_v25, %v2638_v48  ;;  %v1302_v3 = vrot.slane %v1596_v25, %v2642_v26  ;;  %v1508_v25 = vld [vmem:[%s2561_s1 + $0x5] ss:$0 sm:$0xff] }
 0x192   :  { %v1356_v4 = vmul.f32 %v1248_v24, %v2650_v62  ;;  %v1357_v58 = vmul.f32 %v1248_v24, %v1969_v22  ;;  %v1358_v56 = vmul.f32 %v1254_v12, %v1933_v59  ;;  %v1359_v10 = vmul.f32 %v1254_v12, %v1988_v27 }
 0x193   :  { %v1364_v44 = vmul.f32 %v1272_v35, %v1887_v9  ;;  %v1365_v41 = vmul.f32 %v1272_v35, %v1942_v45  ;;  %v1368_v62 = vmul.f32 %v1278_v1, %v1978_v47  ;;  %v1369_v22 = vmul.f32 %v1278_v1, %v1971_v38 }
 0x194   :  { %v1284_v6 = vrot.slane %v1594_v31, %v2751_v53  ;;  %v1290_v27 = vrot.slane %v1594_v31, %v2752_v7  ;;  %v1360_v2 = vmul.f32 %v1260_v37, %v2753_v15  ;;  %v1361_v9 = vmul.f32 %v1260_v37, %v2754_v16  ;;  %v2767_v15 = vld [vmem:[#allocation28_spill] sm:$0xff]  ;;  %v2768_v16 = vld [vmem:[#allocation19_spill] sm:$0xff] }
 0x195   :  { %v1366_v36 = vadd.f32 %v1364_v44, %v1356_v4  ;;  %v1367_v59 = vadd.f32 %v1365_v41, %v1357_v58  ;;  %v1370_v32 = vadd.f32 %v1368_v62, %v1358_v56  ;;  %v1371_v54 = vadd.f32 %v1369_v22, %v1359_v10  ;;  %v2764_v56 = vld [vmem:[#allocation29_spill] sm:$0xff]  ;;  %v2765_v44 = vld [vmem:[#allocation30_spill] sm:$0xff] }
 0x196   :  { %v1362_v45 = vmul.f32 %v1266_v33, %v2755_v8  ;;  %v1380_v19 = vmul.f32 %v1296_v40, %v2756_v17  ;;  %v1381_v47 = vmul.f32 %v1296_v40, %v2757_v30  ;;  %v1363_v38 = vmul.f32 %v1266_v33, %v2758_v20  ;;  %v2766_v62 = vld [vmem:[#allocation26_spill] sm:$0xff]  ;;  %v2769_v17 = vld [vmem:[#allocation23_spill] sm:$0xff] }
 0x197   :  { %v1384_v23 = vmul.f32 %v1302_v3, %v2759_v13  ;;  %v1385_v42 = vmul.f32 %v1302_v3, %v2760_v46  ;;  %v1249_v28 = vmul.f32 %v1248_v24, %v2761_v0  ;;  %v1372_v18 = vmul.f32 %v1284_v6, %v2762_v60 }
 0x198   :  { %v1373_v61 = vmul.f32 %v1284_v6, %v2763_v57  ;;  %v1382_v51 = vadd.f32 %v1380_v19, %v1366_v36  ;;  %v1383_v31 = vadd.f32 %v1381_v47, %v1367_v59  ;;  %v1255_v41 = vmul.f32 %v1254_v12, %v2765_v44 }
 0x199   :  { %v1386_v4 = vadd.f32 %v1384_v23, %v1370_v32  ;;  %v1387_v58 = vadd.f32 %v1385_v42, %v1371_v54  ;;  %v1250_v10 = vadd.f32 %v1249_v28, %v2764_v56  ;;  %v1376_v22 = vmul.f32 %v1290_v27, %v2766_v62 }
 0x19a   :  { %v1377_v24 = vmul.f32 %v1290_v27, %v2767_v15  ;;  %v1388_v8 = vadd.f32 %v1382_v51, %v2768_v16  ;;  %v1389_v30 = vadd.f32 %v1383_v31, %v2769_v17  ;;  %v1261_v36 = vmul.f32 %v1260_v37, %v2131_v43 }
 0x19b   :  { %v1256_v59 = vadd.f32 %v1255_v41, %v1250_v10  ;;  %v1160_v19 = vmul.f32 %v1508_v25, %v2458_v39  ;;  %v1374_v47 = vadd.f32 %v1372_v18, %v1360_v2  ;;  %v1375_v32 = vadd.f32 %v1373_v61, %v1361_v9 }
 0x19c   :  { %v1390_v54 = vadd.f32 %v1388_v8, %v1386_v4  ;;  %v1391_v20 = vadd.f32 %v1389_v30, %v1387_v58  ;;  %v1267_v12 = vmul.f32 %v1266_v33, %v2078_v34  ;;  %v1378_v46 = vadd.f32 %v1376_v22, %v1362_v45 }
 0x19d   :  { %v1262_v13 = vadd.f32 %v1261_v36, %v1256_v59  ;;  %v1162_v23 = vrot.slane %v1160_v19, 1  ;;  %v1379_v42 = vadd.f32 %v1377_v24, %v1363_v38  ;;  %v1273_v51 = vmul.f32 %v1272_v35, %v2113_v5 }
 0x19e   :  { %v1392_v28 = vadd.f32 %v1390_v54, %v1374_v47  ;;  %v1393_v60 = vadd.f32 %v1391_v20, %v1375_v32  ;;  %v1279_v2 = vmul.f32 %v1278_v1, %v2143_v11  ;;  %v1285_v45 = vmul.f32 %v1284_v6, %v2136_v52 }
 0x19f   :  { %v1268_v57 = vadd.f32 %v1267_v12, %v1262_v13  ;;  %v1164_v37 = vadd.f32 %v1162_v23, %v2458_v39  ;;  %v1291_v18 = vmul.f32 %v1290_v27, %v2145_v50  ;;  %v1297_v35 = vmul.f32 %v1296_v40, %v2155_v29  ;;  %v1514_v40 = vld [vmem:[%s2561_s1 + $0x6] ss:$0 sm:$0xff] }
 0x1a0   :  { %v1394_v31 = vadd.f32 %v1392_v28, %v1378_v46  ;;  %v1395_v10 = vadd.f32 %v1393_v60, %v1379_v42  ;;  %v1303_v25 = vmul.f32 %v1302_v3, %v2157_v14 }
 0x1a1   :  { %v1274_v9 = vadd.f32 %v1273_v51, %v1268_v57  ;;  %1511 = vst [vmem:[%s2560_s7 + $0x16] sm:$0x1] %v1164_v37 }
 0x1a2   :  { %1597 = vtanh.f32 %v1394_v31 }
 0x1a3   :  { %1599 = vtanh.f32 %v1395_v10  ;;  %v1280_v33 = vadd.f32 %v1279_v2, %v1274_v9 }
 0x1a5   :  { %v1286_v38 = vadd.f32 %v1285_v45, %v1280_v33 }
 0x1a7   :  { %v1292_v39 = vadd.f32 %v1291_v18, %v1286_v38 }
 0x1a9   :  { %v1298_v61 = vadd.f32 %v1297_v35, %v1292_v39 }
 0x1ab   :  { %v1304_v1 = vadd.f32 %v1303_v25, %v1298_v61 }
 0x1ac   :  { %v1598_v4 = vpop.eup %1597 }
 0x1ad   :  { %v1600_v58 = vpop.eup %1599  ;;  %v1401_v41 = vrot.slane %v1598_v4, %v2638_v48  ;;  %v1407_v62 = vrot.slane %v1598_v4, %v2642_v26  ;;  %1515 = vst [vmem:[%s2560_s7 + $0x18] sm:$0x3] %v1304_v1   ;;  %v1413_v3 = vrot.slane %v1598_v4, %v2644_v21  ;;  %v1419_v15 = vrot.slane %v1598_v4, %v1799_v63 }
 0x1ae   :  { %1476 = vst [vmem:[#allocation2 + $0x8] sm:$0x3] %v1600_v58  ;;  %v1313_v24 = vmul.f32 %v1514_v40, %v1304_v1  ;;  %v1425_v17 = vrot.slane %v1598_v4, %v1982_v49  ;;  %v1431_v36 = vrot.slane %v1598_v4, %v1995_v55  ;;  %v1443_v49 = vrot.slane %v1598_v4, %v2752_v7 }
 0x1af   :  { %v1402_v6 = vmul.f32 %v1401_v41, %v2761_v0  ;;  %v1408_v22 = vmul.f32 %v1407_v62, %v2765_v44  ;;  %v1414_v16 = vmul.f32 %v1413_v3, %v2131_v43  ;;  %v1420_v0 = vmul.f32 %v1419_v15, %v2078_v34 }
 0x1b0   :  { %v1315_v30 = vrot.slane %v1313_v24, 1  ;;  %v1437_v44 = vrot.slane %v1598_v4, %v2751_v53  ;;  %v1432_v63 = vmul.f32 %v1431_v36, %v2143_v11  ;;  %v1449_v55 = vrot.slane %v1600_v58, %v2638_v48  ;;  %v1520_v11 = vld [vmem:[%s2561_s1 + $0x7] ss:$0 sm:$0xff] }
 0x1b1   :  { %v1403_v27 = vadd.f32 %v1402_v6, %v2764_v56  ;;  %v1426_v56 = vmul.f32 %v1425_v17, %v2113_v5  ;;  %v1444_v54 = vmul.f32 %v1443_v49, %v2145_v50  ;;  %v1455_v5 = vrot.slane %v1600_v58, %v2642_v26 }
 0x1b2   :  { %v1317_v19 = vadd.f32 %v1315_v30, %v1304_v1  ;;  %v1438_v34 = vmul.f32 %v1437_v44, %v2136_v52  ;;  %v1450_v53 = vmul.f32 %v1449_v55, %v2155_v29 }
 0x1b3   :  { %v1409_v8 = vadd.f32 %v1408_v22, %v1403_v27  ;;  %v1456_v12 = vmul.f32 %v1455_v5, %v2157_v14 }
 0x1b4   :  { %1517 = vst [vmem:[%s2560_s7 + $0x1a] sm:$0x1] %v1317_v19 }
 0x1b5   :  { %v1415_v59 = vadd.f32 %v1414_v16, %v1409_v8 }
 0x1b7   :  { %v1421_v21 = vadd.f32 %v1420_v0, %v1415_v59 }
 0x1b9   :  { %v1427_v43 = vadd.f32 %v1426_v56, %v1421_v21 }
 0x1bb   :  { %v1433_v47 = vadd.f32 %v1432_v63, %v1427_v43 }
 0x1bd   :  { %v1439_v32 = vadd.f32 %v1438_v34, %v1433_v47 }
 0x1bf   :  { %v1445_v20 = vadd.f32 %v1444_v54, %v1439_v32 }
 0x1c1   :  { %v1451_v13 = vadd.f32 %v1450_v53, %v1445_v20 }
 0x1c3   :  { %v1457_v7 = vadd.f32 %v1456_v12, %v1451_v13 }
 0x1c5   :  { %v1466_v48 = vmul.f32 %v1520_v11, %v1457_v7  ;;  %1521 = vst [vmem:[%s2560_s7 + $0x1c] sm:$0x3] %v1457_v7  }
 0x1c7   :  { %v1468_v52 = vrot.slane %v1466_v48, 1 }
 0x1c9   :  { %v1470_v50 = vadd.f32 %v1468_v52, %v1457_v7 }
 0x1cb   :  { %1523 = vst [vmem:[%s2560_s7 + $0x1e] sm:$0x1] %v1470_v50 }

</bundles_post_ra>
